<compile_context>
chip_gen: v7x
topology: tpu7x:2x2x1
jax: 0.10.0
libtpu: 0.0.40
codegen_flags: <defaults>
</compile_context>

<pallas_src>
import math

import jax
import jax.numpy as jnp
from jax.experimental import pallas as pl
from jax.experimental.pallas import tpu as pltpu

# ---- model config ('8M' ESM embedder => embed_dim = 320) ----
MODEL_NAME = "8M"
EMBED_DIM = 320
N_HEAD = 4
D_HIDDEN = EMBED_DIM // N_HEAD          # 80
D_PAD = 128                             # lane-aligned per-head width
D_QKV = N_HEAD * D_PAD                  # 512
D_QKV3 = 3 * D_QKV                      # 1536 (fused q|k|v output width)
R_FF = 4
D_FF = EMBED_DIM * R_FF                 # 1280
LN_EPS = 1e-5
SCALING = 1.0 / math.sqrt(D_HIDDEN)


def _transblock_kernel(x_ref,
                       g1_ref, be1_ref, g2_ref, be2_ref,
                       wqkv_ref, wo_ref, bo_ref,
                       w1_ref, bf1_ref, w2_ref, bf2_ref,
                       o_ref):
    bf16, f32 = jnp.bfloat16, jnp.float32
    TB, L, D = x_ref.shape
    R = TB * L
    x = x_ref[...].reshape(R, D)                          # (R, D) f32 slab

    # ---------------- LayerNorm 1 (f32 statistics) ----------------
    mu = jnp.mean(x, axis=-1, keepdims=True)
    var = jnp.mean((x - mu) ** 2, axis=-1, keepdims=True)
    xn = (x - mu) * jax.lax.rsqrt(var + LN_EPS) * g1_ref[...] + be1_ref[...]
    xn_bf = xn.astype(bf16)

    # ---------------- fused QKV projection (scaling folded into q columns) -----
    qkv = jnp.dot(xn_bf, wqkv_ref[...], preferred_element_type=f32)       # (R, 1536)
    qkv_bf = qkv.astype(bf16).reshape(TB, L, D_QKV3)                      # cast ONCE

    # ---------------- per-head attention (static unrolled head loop) -----------
    # NOTE: for very large L the (TB, L, L) scores would need flash-style key
    # tiling; unnecessary at the shapes this block is used with.
    head_outs = []
    for h in range(N_HEAD):
        q_sl = slice(h * D_PAD, (h + 1) * D_PAD)                          # 128-aligned
        k_sl = slice(D_QKV + h * D_PAD, D_QKV + (h + 1) * D_PAD)
        v_sl = slice(2 * D_QKV + h * D_PAD, 2 * D_QKV + (h + 1) * D_PAD)
        qh = qkv_bf[:, :, q_sl]                                           # (TB, L, 128)
        kh = qkv_bf[:, :, k_sl]
        vh = qkv_bf[:, :, v_sl]
        s = jnp.einsum("bqd,bkd->bqk", qh, kh,
                       preferred_element_type=f32)                        # (TB, L, L)
        s = s - jnp.max(s, axis=-1, keepdims=True)
        p = jnp.exp(s)
        p = p / jnp.sum(p, axis=-1, keepdims=True)                        # exact softmax
        oh = jnp.einsum("bqk,bkd->bqd", p.astype(bf16), vh,
                        preferred_element_type=f32)                       # (TB, L, 128)
        head_outs.append(oh.reshape(R, D_PAD).astype(bf16))

    # single K=512 output projection (fills the 256-deep MXU on v6e/v7x);
    # concat pieces are 128-wide and lane-aligned -> no masked relayouts.
    o_cat = jnp.concatenate(head_outs, axis=-1)                           # (R, 512)
    attn = jnp.dot(o_cat, wo_ref[...], preferred_element_type=f32) + bo_ref[...]

    x1 = x + attn                                                         # residual 1

    # ---------------- LayerNorm 2 (f32) ----------------
    mu2 = jnp.mean(x1, axis=-1, keepdims=True)
    var2 = jnp.mean((x1 - mu2) ** 2, axis=-1, keepdims=True)
    xn2 = (x1 - mu2) * jax.lax.rsqrt(var2 + LN_EPS) * g2_ref[...] + be2_ref[...]
    xn2_bf = xn2.astype(bf16)

    # ---------------- FeedForward ----------------
    h1 = jnp.dot(xn2_bf, w1_ref[...], preferred_element_type=f32) + bf1_ref[...]
    h1 = jnp.maximum(h1, 0.0).astype(bf16)
    ff = jnp.dot(h1, w2_ref[...], preferred_element_type=f32) + bf2_ref[...]

    o_ref[...] = (x1 + ff).reshape(TB, L, D)                              # residual 2


# ---------------- one-time parameter preparation ----------------
def prepare_params(params):
    """Fold attention scaling into the q columns, pad heads 80->128 (exact zeros),
    fuse wq|wk|wv into a single weight, cast GEMM weights to bf16.
    LayerNorm params and biases stay f32."""
    f32, bf = jnp.float32, jnp.bfloat16
    D, H, DH, DP = EMBED_DIM, N_HEAD, D_HIDDEN, D_PAD

    def pad_head_cols(w):          # (D, H*DH) -> (D, H*DP)
        w = w.reshape(D, H, DH)
        w = jnp.pad(w, ((0, 0), (0, 0), (0, DP - DH)))
        return w.reshape(D, H * DP)

    def pad_head_rows(w):          # (H*DH, D) -> (H*DP, D)
        w = w.reshape(H, DH, D)
        w = jnp.pad(w, ((0, 0), (0, DP - DH), (0, 0)))
        return w.reshape(H * DP, D)

    # NOTE: folding SCALING into wq before the bf16 cast rounds slightly differently
    # than scaling f32 activations after the GEMM; covered by the test tolerances.
    wq = pad_head_cols(params["wq"] * SCALING)
    wk = pad_head_cols(params["wk"])
    wv = pad_head_cols(params["wv"])
    wqkv = jnp.concatenate([wq, wk, wv], axis=1).astype(bf)   # (320, 1536)

    return {
        "g1": params["g1"].astype(f32), "be1": params["be1"].astype(f32),
        "g2": params["g2"].astype(f32), "be2": params["be2"].astype(f32),
        "wqkv": wqkv,
        "wo": pad_head_rows(params["wo"]).astype(bf),
        "bo": params["bo"].astype(f32),
        "w1": params["w1"].astype(bf), "bf1": params["bf1"].astype(f32),
        "w2": params["w2"].astype(bf), "bf2": params["bf2"].astype(f32),
    }


_WEIGHT_NAMES = ["g1", "be1", "g2", "be2",
                 "wqkv", "wo", "bo",
                 "w1", "bf1", "w2", "bf2"]


# ---------------- generation-aware tiling ----------------
def _is_v7x():
    try:
        kind = jax.devices()[0].device_kind.lower()
    except Exception:
        return False
    return "v7" in kind


def _pick_tb(B, L, is_v7x):
    """Batch elements per grid step: fill the MXU M dimension without blowing VMEM.
    v7x: smaller score budget (64 MiB VMEM) and keep >=2 grid steps (2 TensorCores)."""
    m_cap = 512 if is_v7x else 1024
    score_cap = (1 << 19) if is_v7x else (1 << 20)
    tb_hi = max(1, B // 2) if (is_v7x and B > 1) else B
    best = 1
    for tb in range(1, tb_hi + 1):
        if B % tb:                         # requires a divisor of B (correct fallback: tb=1)
            continue
        if tb * L <= m_cap and tb * L * L <= score_cap:
            best = tb
    return best


def _vmem_limit_bytes(tb, L, weight_bytes, is_v7x):
    """Explicit scoped-VMEM budget: double-buffered x/out tiles + resident weights
    (double-buffered by the default pipeliner) + f32/bf16 intermediates."""
    R = tb * L
    io = 4 * tb * L * EMBED_DIM * 4                       # in + out, double-buffered, f32
    wts = 2 * weight_bytes
    inter = R * (D_QKV3 * 6 + EMBED_DIM * 28 + D_FF * 6) + 2 * tb * L * L * 12
    plan = io + wts + inter
    cap = (48 << 20) if is_v7x else (100 << 20)
    return int(min(max(2 * plan, 32 << 20), cap))


def trans_block(x, y, prep_params):
    """x: (B, L, D) f32; y: unused (dm_embeds); prep_params: output of prepare_params."""
    del y
    B, L, D = x.shape
    assert D == EMBED_DIM
    weights = [prep_params[n] for n in _WEIGHT_NAMES]
    weight_bytes = sum(int(w.size) * w.dtype.itemsize for w in weights)

    is_v7x = _is_v7x()
    tb = _pick_tb(B, L, is_v7x)

    def full_spec(arr):
        # Constant index map -> the weight block is never re-fetched across grid steps.
        # TODO(synk): single-buffer these (pipeline_mode=pl.Buffered(1)) once confirmed
        # supported by the pallas_call pipeliner; would save ~1.5 MiB of VMEM.
        return pl.BlockSpec(arr.shape, lambda b, _nd=arr.ndim: (0,) * _nd)

    in_specs = [pl.BlockSpec((tb, L, D), lambda b: (b, 0, 0))]
    in_specs += [full_spec(w) for w in weights]

    return pl.pallas_call(
        _transblock_kernel,
        out_shape=jax.ShapeDtypeStruct((B, L, D), jnp.float32),
        grid_spec=pltpu.PrefetchScalarGridSpec(
            num_scalar_prefetch=0,
            grid=(B // tb,),
            in_specs=in_specs,
            out_specs=pl.BlockSpec((tb, L, D), lambda b: (b, 0, 0)),
        ),
        compiler_params=pltpu.CompilerParams(
            dimension_semantics=("parallel",),
            vmem_limit_bytes=_vmem_limit_bytes(tb, L, weight_bytes, is_v7x)),
    )(x, *weights)


# ---------------- deterministic parameter init ----------------
def init_params(key):
    ks = jax.random.split(key, 6)

    def xavier(k, fan_in, fan_out):
        limit = math.sqrt(6.0 / (fan_in + fan_out))
        return jax.random.uniform(k, (fan_in, fan_out), jnp.float32, -limit, limit)

    D, H = EMBED_DIM, D_FF
    return {
        "g1": jnp.ones((1, D), jnp.float32),
        "be1": jnp.zeros((1, D), jnp.float32),
        "g2": jnp.ones((1, D), jnp.float32),
        "be2": jnp.zeros((1, D), jnp.float32),
        "wq": xavier(ks[0], D, D),
        "wk": xavier(ks[1], D, D),
        "wv": xavier(ks[2], D, D),
        "wo": xavier(ks[3], D, D),
        "bo": jnp.zeros((1, D), jnp.float32),
        "w1": jax.random.normal(ks[4], (D, H), jnp.float32) * math.sqrt(2.0 / D),
        "bf1": jnp.zeros((1, H), jnp.float32),
        "w2": xavier(ks[5], H, D),
        "bf2": jnp.zeros((1, D), jnp.float32),
    }


# ---------------- references ----------------
def trans_block_ref_f32(x, y, p):
    """Pure-f32 semantic reference (exact PyTorch math)."""
    del y

    def ln(v, g, b):
        mu = jnp.mean(v, axis=-1, keepdims=True)
        var = jnp.mean((v - mu) ** 2, axis=-1, keepdims=True)
        return (v - mu) / jnp.sqrt(var + LN_EPS) * g + b

    B, L, D = x.shape
    xn = ln(x, p["g1"], p["be1"])
    q = (xn @ p["wq"]).reshape(B, L, N_HEAD, D_HIDDEN) * SCALING
    k = (xn @ p["wk"]).reshape(B, L, N_HEAD, D_HIDDEN)
    v = (xn @ p["wv"]).reshape(B, L, N_HEAD, D_HIDDEN)
    s = jnp.einsum("bqhd,bkhd->bhqk", q, k)
    w = jax.nn.softmax(s, axis=-1)
    o = jnp.einsum("bhqk,bkhd->bqhd", w, v).reshape(B, L, D)
    o = o @ p["wo"] + p["bo"]
    x1 = x + o
    xn2 = ln(x1, p["g2"], p["be2"])
    h1 = jax.nn.relu(xn2 @ p["w1"] + p["bf1"])
    ff = h1 @ p["w2"] + p["bf2"]
    return x1 + ff


def trans_block_ref_matched(x, y, pp):
    """Pure-JAX replica of the kernel's numerics (bf16 GEMM inputs, padded heads,
    fused QKV, exact softmax, single W_o GEMM)."""
    del y
    bf, f32 = jnp.bfloat16, jnp.float32

    def ln(v, g, b):
        mu = jnp.mean(v, axis=-1, keepdims=True)
        var = jnp.mean((v - mu) ** 2, axis=-1, keepdims=True)
        return (v - mu) * jax.lax.rsqrt(var + LN_EPS) * g + b

    B, L, D = x.shape
    x2 = x.reshape(B * L, D)
    xn = ln(x2, pp["g1"], pp["be1"]).astype(bf)
    qkv = jnp.dot(xn, pp["wqkv"], preferred_element_type=f32).astype(bf)
    q = qkv[:, :D_QKV].reshape(B, L, N_HEAD, D_PAD)
    k = qkv[:, D_QKV:2 * D_QKV].reshape(B, L, N_HEAD, D_PAD)
    v = qkv[:, 2 * D_QKV:].reshape(B, L, N_HEAD, D_PAD)
    s = jnp.einsum("bqhd,bkhd->bhqk", q, k, preferred_element_type=f32)
    w = jax.nn.softmax(s, axis=-1)
    o = jnp.einsum("bhqk,bkhd->bqhd", w.astype(bf), v, preferred_element_type=f32)
    o = o.reshape(B * L, D_QKV).astype(bf)
    attn = jnp.dot(o, pp["wo"], preferred_element_type=f32) + pp["bo"]
    x1 = x2 + attn
    xn2 = ln(x1, pp["g2"], pp["be2"]).astype(bf)
    h1 = jnp.dot(xn2, pp["w1"], preferred_element_type=f32) + pp["bf1"]
    h1 = jnp.maximum(h1, 0.0).astype(bf)
    ff = jnp.dot(h1, pp["w2"], preferred_element_type=f32) + pp["bf2"]
    return (x1 + ff).reshape(B, L, D)


if __name__ == "__main__":
    key = jax.random.PRNGKey(0)
    kx, ky, kp = jax.random.split(key, 3)

    B, L, D = 2, 8, EMBED_DIM
    x = jax.random.normal(kx, (B, L, D), jnp.float32)
    y = jax.random.normal(ky, (B, L, D), jnp.float32)   # dm_embeds (unused)
    params = init_params(kp)
    prep = prepare_params(params)                        # one-time weight transform

    out = jax.block_until_ready(trans_block(x, y, prep))
    assert out.shape == (B, L, D)

    # check against a reference using identical (bf16, padded-head, fused-QKV) numerics
    ref_m = trans_block_ref_matched(x, y, prep)
    assert jnp.allclose(out, ref_m, atol=2e-2, rtol=2e-2), "mismatch vs matched reference"

    # loose semantic check against the pure-f32 reference (tolerance reflects bf16 GEMMs)
    ref = trans_block_ref_f32(x, y, params)
    assert jnp.allclose(out, ref, atol=3e-1, rtol=1e-1), "mismatch vs f32 reference"

    print("KERNEL_OK")
</pallas_src>

<mosaic_0001>
module attributes {stable_mosaic.version = 11 : i64} {
  func.func @_transblock_kernel(%arg0: i32, %arg1: memref<2x8x320xf32, #tpu.memory_space<vmem>>, %arg2: memref<1x320xf32, #tpu.memory_space<vmem>>, %arg3: memref<1x320xf32, #tpu.memory_space<vmem>>, %arg4: memref<1x320xf32, #tpu.memory_space<vmem>>, %arg5: memref<1x320xf32, #tpu.memory_space<vmem>>, %arg6: memref<320x1536xbf16, #tpu.memory_space<vmem>>, %arg7: memref<512x320xbf16, #tpu.memory_space<vmem>>, %arg8: memref<1x320xf32, #tpu.memory_space<vmem>>, %arg9: memref<320x1280xbf16, #tpu.memory_space<vmem>>, %arg10: memref<1x1280xf32, #tpu.memory_space<vmem>>, %arg11: memref<1280x320xbf16, #tpu.memory_space<vmem>>, %arg12: memref<1x320xf32, #tpu.memory_space<vmem>>, %arg13: memref<2x8x320xf32, #tpu.memory_space<vmem>>) attributes {dimension_semantics = [#tpu.dimension_semantics<parallel>], iteration_bounds = array<i64: 1>, scalar_prefetch = 0 : i64, scratch_operands = 0 : i64, tpu.core_type = #tpu.core_type<tc>, window_params = [{transform_indices = @transform_0, window_bounds = array<i64: 2, 8, 320>}, {pipeline_mode = #tpu.pipeline_mode<synchronous>, transform_indices = @transform_1, window_bounds = array<i64: 1, 320>}, {pipeline_mode = #tpu.pipeline_mode<synchronous>, transform_indices = @transform_2, window_bounds = array<i64: 1, 320>}, {pipeline_mode = #tpu.pipeline_mode<synchronous>, transform_indices = @transform_3, window_bounds = array<i64: 1, 320>}, {pipeline_mode = #tpu.pipeline_mode<synchronous>, transform_indices = @transform_4, window_bounds = array<i64: 1, 320>}, {pipeline_mode = #tpu.pipeline_mode<synchronous>, transform_indices = @transform_5, window_bounds = array<i64: 320, 1536>}, {pipeline_mode = #tpu.pipeline_mode<synchronous>, transform_indices = @transform_6, window_bounds = array<i64: 512, 320>}, {pipeline_mode = #tpu.pipeline_mode<synchronous>, transform_indices = @transform_7, window_bounds = array<i64: 1, 320>}, {pipeline_mode = #tpu.pipeline_mode<synchronous>, transform_indices = @transform_8, window_bounds = array<i64: 320, 1280>}, {pipeline_mode = #tpu.pipeline_mode<synchronous>, transform_indices = @transform_9, window_bounds = array<i64: 1, 1280>}, {pipeline_mode = #tpu.pipeline_mode<synchronous>, transform_indices = @transform_10, window_bounds = array<i64: 1280, 320>}, {pipeline_mode = #tpu.pipeline_mode<synchronous>, transform_indices = @transform_11, window_bounds = array<i64: 1, 320>}, {transform_indices = @transform_12, window_bounds = array<i64: 2, 8, 320>}]} {
    %c0 = arith.constant 0 : index
    %c0_0 = arith.constant 0 : index
    %c0_1 = arith.constant 0 : index
    %0 = vector.load %arg1[%c0, %c0_0, %c0_1] : memref<2x8x320xf32, #tpu.memory_space<vmem>>, vector<2x8x320xf32>
    %1 = vector.shape_cast %0 : vector<2x8x320xf32> to vector<16x320xf32>
    %cst = arith.constant dense<0.000000e+00> : vector<16xf32>
    %2 = vector.multi_reduction <add>, %1, %cst [1] : vector<16x320xf32> to vector<16xf32>
    %3 = vector.shape_cast %2 : vector<16xf32> to vector<16x1xf32>
    %cst_2 = arith.constant 3.200000e+02 : f32
    %4 = vector.broadcast %cst_2 : f32 to vector<16x1xf32>
    %5 = arith.divf %3, %4 : vector<16x1xf32>
    %6 = vector.broadcast %5 : vector<16x1xf32> to vector<16x320xf32>
    %7 = arith.subf %1, %6 : vector<16x320xf32>
    %8 = arith.mulf %7, %7 : vector<16x320xf32>
    %cst_3 = arith.constant dense<0.000000e+00> : vector<16xf32>
    %9 = vector.multi_reduction <add>, %8, %cst_3 [1] : vector<16x320xf32> to vector<16xf32>
    %10 = vector.shape_cast %9 : vector<16xf32> to vector<16x1xf32>
    %cst_4 = arith.constant 3.200000e+02 : f32
    %11 = vector.broadcast %cst_4 : f32 to vector<16x1xf32>
    %12 = arith.divf %10, %11 : vector<16x1xf32>
    %13 = vector.broadcast %5 : vector<16x1xf32> to vector<16x320xf32>
    %14 = arith.subf %1, %13 : vector<16x320xf32>
    %cst_5 = arith.constant 9.99999974E-6 : f32
    %15 = vector.broadcast %cst_5 : f32 to vector<16x1xf32>
    %16 = arith.addf %12, %15 : vector<16x1xf32>
    %17 = math.rsqrt %16 : vector<16x1xf32>
    %18 = vector.broadcast %17 : vector<16x1xf32> to vector<16x320xf32>
    %19 = arith.mulf %14, %18 : vector<16x320xf32>
    %c0_6 = arith.constant 0 : index
    %c0_7 = arith.constant 0 : index
    %20 = vector.load %arg2[%c0_6, %c0_7] : memref<1x320xf32, #tpu.memory_space<vmem>>, vector<1x320xf32>
    %21 = vector.broadcast %20 : vector<1x320xf32> to vector<16x320xf32>
    %22 = arith.mulf %19, %21 : vector<16x320xf32>
    %c0_8 = arith.constant 0 : index
    %c0_9 = arith.constant 0 : index
    %23 = vector.load %arg3[%c0_8, %c0_9] : memref<1x320xf32, #tpu.memory_space<vmem>>, vector<1x320xf32>
    %24 = vector.broadcast %23 : vector<1x320xf32> to vector<16x320xf32>
    %25 = arith.addf %22, %24 : vector<16x320xf32>
    %26 = arith.truncf %25 : vector<16x320xf32> to vector<16x320xbf16>
    %c0_10 = arith.constant 0 : index
    %c0_11 = arith.constant 0 : index
    %27 = vector.load %arg6[%c0_10, %c0_11] : memref<320x1536xbf16, #tpu.memory_space<vmem>>, vector<320x1536xbf16>
    %cst_12 = arith.constant dense<0.000000e+00> : vector<16x1536xf32>
    %28 = tpu.matmul %26, %27, %cst_12 {dimension_numbers = #tpu.dot_dimension_numbers<[1], [0], [0], [1], [0, 0, 1, 1], [], []>} : vector<16x320xbf16>, vector<320x1536xbf16>, vector<16x1536xf32> -> vector<16x1536xf32>
    %29 = arith.truncf %28 : vector<16x1536xf32> to vector<16x1536xbf16>
    %30 = vector.shape_cast %29 : vector<16x1536xbf16> to vector<2x8x1536xbf16>
    %31 = vector.extract_strided_slice %30 {offsets = [0, 0, 0], sizes = [2, 8, 128], strides = [1, 1, 1]} : vector<2x8x1536xbf16> to vector<2x8x128xbf16>
    %32 = vector.extract_strided_slice %30 {offsets = [0, 0, 512], sizes = [2, 8, 128], strides = [1, 1, 1]} : vector<2x8x1536xbf16> to vector<2x8x128xbf16>
    %33 = vector.extract_strided_slice %30 {offsets = [0, 0, 1024], sizes = [2, 8, 128], strides = [1, 1, 1]} : vector<2x8x1536xbf16> to vector<2x8x128xbf16>
    "tpu.trace_start"() <{level = 10 : i32, message = "bqd,bkd->bqk"}> : () -> ()
    %cst_13 = arith.constant dense<0.000000e+00> : vector<2x8x8xf32>
    %34 = tpu.matmul %31, %32, %cst_13 {dimension_numbers = #tpu.dot_dimension_numbers<[2], [2], [1], [1], [0, 0, 0, 1, 1, 1], [0], [0]>} : vector<2x8x128xbf16>, vector<2x8x128xbf16>, vector<2x8x8xf32> -> vector<2x8x8xf32>
    "tpu.trace_stop"() : () -> ()
    %cst_14 = arith.constant dense<0xFF800000> : vector<2x8xf32>
    %35 = vector.multi_reduction <maximumf>, %34, %cst_14 [2] : vector<2x8x8xf32> to vector<2x8xf32>
    %36 = vector.shape_cast %35 : vector<2x8xf32> to vector<2x8x1xf32>
    %37 = vector.broadcast %36 : vector<2x8x1xf32> to vector<2x8x8xf32>
    %38 = arith.subf %34, %37 : vector<2x8x8xf32>
    %39 = math.exp %38 : vector<2x8x8xf32>
    %cst_15 = arith.constant dense<0.000000e+00> : vector<2x8xf32>
    %40 = vector.multi_reduction <add>, %39, %cst_15 [2] : vector<2x8x8xf32> to vector<2x8xf32>
    %41 = vector.shape_cast %40 : vector<2x8xf32> to vector<2x8x1xf32>
    %42 = vector.broadcast %41 : vector<2x8x1xf32> to vector<2x8x8xf32>
    %43 = arith.divf %39, %42 : vector<2x8x8xf32>
    %44 = arith.truncf %43 : vector<2x8x8xf32> to vector<2x8x8xbf16>
    "tpu.trace_start"() <{level = 10 : i32, message = "bqk,bkd->bqd"}> : () -> ()
    %cst_16 = arith.constant dense<0.000000e+00> : vector<2x8x128xf32>
    %45 = tpu.matmul %44, %33, %cst_16 {dimension_numbers = #tpu.dot_dimension_numbers<[2], [1], [1], [2], [0, 0, 0, 1, 1, 2], [0], [0]>} : vector<2x8x8xbf16>, vector<2x8x128xbf16>, vector<2x8x128xf32> -> vector<2x8x128xf32>
    "tpu.trace_stop"() : () -> ()
    %46 = vector.shape_cast %45 : vector<2x8x128xf32> to vector<16x128xf32>
    %47 = arith.truncf %46 : vector<16x128xf32> to vector<16x128xbf16>
    %48 = vector.extract_strided_slice %30 {offsets = [0, 0, 128], sizes = [2, 8, 128], strides = [1, 1, 1]} : vector<2x8x1536xbf16> to vector<2x8x128xbf16>
    %49 = vector.extract_strided_slice %30 {offsets = [0, 0, 640], sizes = [2, 8, 128], strides = [1, 1, 1]} : vector<2x8x1536xbf16> to vector<2x8x128xbf16>
    %50 = vector.extract_strided_slice %30 {offsets = [0, 0, 1152], sizes = [2, 8, 128], strides = [1, 1, 1]} : vector<2x8x1536xbf16> to vector<2x8x128xbf16>
    "tpu.trace_start"() <{level = 10 : i32, message = "bqd,bkd->bqk"}> : () -> ()
    %cst_17 = arith.constant dense<0.000000e+00> : vector<2x8x8xf32>
    %51 = tpu.matmul %48, %49, %cst_17 {dimension_numbers = #tpu.dot_dimension_numbers<[2], [2], [1], [1], [0, 0, 0, 1, 1, 1], [0], [0]>} : vector<2x8x128xbf16>, vector<2x8x128xbf16>, vector<2x8x8xf32> -> vector<2x8x8xf32>
    "tpu.trace_stop"() : () -> ()
    %cst_18 = arith.constant dense<0xFF800000> : vector<2x8xf32>
    %52 = vector.multi_reduction <maximumf>, %51, %cst_18 [2] : vector<2x8x8xf32> to vector<2x8xf32>
    %53 = vector.shape_cast %52 : vector<2x8xf32> to vector<2x8x1xf32>
    %54 = vector.broadcast %53 : vector<2x8x1xf32> to vector<2x8x8xf32>
    %55 = arith.subf %51, %54 : vector<2x8x8xf32>
    %56 = math.exp %55 : vector<2x8x8xf32>
    %cst_19 = arith.constant dense<0.000000e+00> : vector<2x8xf32>
    %57 = vector.multi_reduction <add>, %56, %cst_19 [2] : vector<2x8x8xf32> to vector<2x8xf32>
    %58 = vector.shape_cast %57 : vector<2x8xf32> to vector<2x8x1xf32>
    %59 = vector.broadcast %58 : vector<2x8x1xf32> to vector<2x8x8xf32>
    %60 = arith.divf %56, %59 : vector<2x8x8xf32>
    %61 = arith.truncf %60 : vector<2x8x8xf32> to vector<2x8x8xbf16>
    "tpu.trace_start"() <{level = 10 : i32, message = "bqk,bkd->bqd"}> : () -> ()
    %cst_20 = arith.constant dense<0.000000e+00> : vector<2x8x128xf32>
    %62 = tpu.matmul %61, %50, %cst_20 {dimension_numbers = #tpu.dot_dimension_numbers<[2], [1], [1], [2], [0, 0, 0, 1, 1, 2], [0], [0]>} : vector<2x8x8xbf16>, vector<2x8x128xbf16>, vector<2x8x128xf32> -> vector<2x8x128xf32>
    "tpu.trace_stop"() : () -> ()
    %63 = vector.shape_cast %62 : vector<2x8x128xf32> to vector<16x128xf32>
    %64 = arith.truncf %63 : vector<16x128xf32> to vector<16x128xbf16>
    %65 = vector.extract_strided_slice %30 {offsets = [0, 0, 256], sizes = [2, 8, 128], strides = [1, 1, 1]} : vector<2x8x1536xbf16> to vector<2x8x128xbf16>
    %66 = vector.extract_strided_slice %30 {offsets = [0, 0, 768], sizes = [2, 8, 128], strides = [1, 1, 1]} : vector<2x8x1536xbf16> to vector<2x8x128xbf16>
    %67 = vector.extract_strided_slice %30 {offsets = [0, 0, 1280], sizes = [2, 8, 128], strides = [1, 1, 1]} : vector<2x8x1536xbf16> to vector<2x8x128xbf16>
    "tpu.trace_start"() <{level = 10 : i32, message = "bqd,bkd->bqk"}> : () -> ()
    %cst_21 = arith.constant dense<0.000000e+00> : vector<2x8x8xf32>
    %68 = tpu.matmul %65, %66, %cst_21 {dimension_numbers = #tpu.dot_dimension_numbers<[2], [2], [1], [1], [0, 0, 0, 1, 1, 1], [0], [0]>} : vector<2x8x128xbf16>, vector<2x8x128xbf16>, vector<2x8x8xf32> -> vector<2x8x8xf32>
    "tpu.trace_stop"() : () -> ()
    %cst_22 = arith.constant dense<0xFF800000> : vector<2x8xf32>
    %69 = vector.multi_reduction <maximumf>, %68, %cst_22 [2] : vector<2x8x8xf32> to vector<2x8xf32>
    %70 = vector.shape_cast %69 : vector<2x8xf32> to vector<2x8x1xf32>
    %71 = vector.broadcast %70 : vector<2x8x1xf32> to vector<2x8x8xf32>
    %72 = arith.subf %68, %71 : vector<2x8x8xf32>
    %73 = math.exp %72 : vector<2x8x8xf32>
    %cst_23 = arith.constant dense<0.000000e+00> : vector<2x8xf32>
    %74 = vector.multi_reduction <add>, %73, %cst_23 [2] : vector<2x8x8xf32> to vector<2x8xf32>
    %75 = vector.shape_cast %74 : vector<2x8xf32> to vector<2x8x1xf32>
    %76 = vector.broadcast %75 : vector<2x8x1xf32> to vector<2x8x8xf32>
    %77 = arith.divf %73, %76 : vector<2x8x8xf32>
    %78 = arith.truncf %77 : vector<2x8x8xf32> to vector<2x8x8xbf16>
    "tpu.trace_start"() <{level = 10 : i32, message = "bqk,bkd->bqd"}> : () -> ()
    %cst_24 = arith.constant dense<0.000000e+00> : vector<2x8x128xf32>
    %79 = tpu.matmul %78, %67, %cst_24 {dimension_numbers = #tpu.dot_dimension_numbers<[2], [1], [1], [2], [0, 0, 0, 1, 1, 2], [0], [0]>} : vector<2x8x8xbf16>, vector<2x8x128xbf16>, vector<2x8x128xf32> -> vector<2x8x128xf32>
    "tpu.trace_stop"() : () -> ()
    %80 = vector.shape_cast %79 : vector<2x8x128xf32> to vector<16x128xf32>
    %81 = arith.truncf %80 : vector<16x128xf32> to vector<16x128xbf16>
    %82 = vector.extract_strided_slice %30 {offsets = [0, 0, 384], sizes = [2, 8, 128], strides = [1, 1, 1]} : vector<2x8x1536xbf16> to vector<2x8x128xbf16>
    %83 = vector.extract_strided_slice %30 {offsets = [0, 0, 896], sizes = [2, 8, 128], strides = [1, 1, 1]} : vector<2x8x1536xbf16> to vector<2x8x128xbf16>
    %84 = vector.extract_strided_slice %30 {offsets = [0, 0, 1408], sizes = [2, 8, 128], strides = [1, 1, 1]} : vector<2x8x1536xbf16> to vector<2x8x128xbf16>
    "tpu.trace_start"() <{level = 10 : i32, message = "bqd,bkd->bqk"}> : () -> ()
    %cst_25 = arith.constant dense<0.000000e+00> : vector<2x8x8xf32>
    %85 = tpu.matmul %82, %83, %cst_25 {dimension_numbers = #tpu.dot_dimension_numbers<[2], [2], [1], [1], [0, 0, 0, 1, 1, 1], [0], [0]>} : vector<2x8x128xbf16>, vector<2x8x128xbf16>, vector<2x8x8xf32> -> vector<2x8x8xf32>
    "tpu.trace_stop"() : () -> ()
    %cst_26 = arith.constant dense<0xFF800000> : vector<2x8xf32>
    %86 = vector.multi_reduction <maximumf>, %85, %cst_26 [2] : vector<2x8x8xf32> to vector<2x8xf32>
    %87 = vector.shape_cast %86 : vector<2x8xf32> to vector<2x8x1xf32>
    %88 = vector.broadcast %87 : vector<2x8x1xf32> to vector<2x8x8xf32>
    %89 = arith.subf %85, %88 : vector<2x8x8xf32>
    %90 = math.exp %89 : vector<2x8x8xf32>
    %cst_27 = arith.constant dense<0.000000e+00> : vector<2x8xf32>
    %91 = vector.multi_reduction <add>, %90, %cst_27 [2] : vector<2x8x8xf32> to vector<2x8xf32>
    %92 = vector.shape_cast %91 : vector<2x8xf32> to vector<2x8x1xf32>
    %93 = vector.broadcast %92 : vector<2x8x1xf32> to vector<2x8x8xf32>
    %94 = arith.divf %90, %93 : vector<2x8x8xf32>
    %95 = arith.truncf %94 : vector<2x8x8xf32> to vector<2x8x8xbf16>
    "tpu.trace_start"() <{level = 10 : i32, message = "bqk,bkd->bqd"}> : () -> ()
    %cst_28 = arith.constant dense<0.000000e+00> : vector<2x8x128xf32>
    %96 = tpu.matmul %95, %84, %cst_28 {dimension_numbers = #tpu.dot_dimension_numbers<[2], [1], [1], [2], [0, 0, 0, 1, 1, 2], [0], [0]>} : vector<2x8x8xbf16>, vector<2x8x128xbf16>, vector<2x8x128xf32> -> vector<2x8x128xf32>
    "tpu.trace_stop"() : () -> ()
    %97 = vector.shape_cast %96 : vector<2x8x128xf32> to vector<16x128xf32>
    %98 = arith.truncf %97 : vector<16x128xf32> to vector<16x128xbf16>
    %99 = tpu.concatenate %47, %64, %81, %98 in 1 : vector<16x128xbf16>, vector<16x128xbf16>, vector<16x128xbf16>, vector<16x128xbf16> -> vector<16x512xbf16>
    %c0_29 = arith.constant 0 : index
    %c0_30 = arith.constant 0 : index
    %100 = vector.load %arg7[%c0_29, %c0_30] : memref<512x320xbf16, #tpu.memory_space<vmem>>, vector<512x320xbf16>
    %cst_31 = arith.constant dense<0.000000e+00> : vector<16x320xf32>
    %101 = tpu.matmul %99, %100, %cst_31 {dimension_numbers = #tpu.dot_dimension_numbers<[1], [0], [0], [1], [0, 0, 1, 1], [], []>} : vector<16x512xbf16>, vector<512x320xbf16>, vector<16x320xf32> -> vector<16x320xf32>
    %c0_32 = arith.constant 0 : index
    %c0_33 = arith.constant 0 : index
    %102 = vector.load %arg8[%c0_32, %c0_33] : memref<1x320xf32, #tpu.memory_space<vmem>>, vector<1x320xf32>
    %103 = vector.broadcast %102 : vector<1x320xf32> to vector<16x320xf32>
    %104 = arith.addf %101, %103 : vector<16x320xf32>
    %105 = arith.addf %1, %104 : vector<16x320xf32>
    %cst_34 = arith.constant dense<0.000000e+00> : vector<16xf32>
    %106 = vector.multi_reduction <add>, %105, %cst_34 [1] : vector<16x320xf32> to vector<16xf32>
    %107 = vector.shape_cast %106 : vector<16xf32> to vector<16x1xf32>
    %cst_35 = arith.constant 3.200000e+02 : f32
    %108 = vector.broadcast %cst_35 : f32 to vector<16x1xf32>
    %109 = arith.divf %107, %108 : vector<16x1xf32>
    %110 = vector.broadcast %109 : vector<16x1xf32> to vector<16x320xf32>
    %111 = arith.subf %105, %110 : vector<16x320xf32>
    %112 = arith.mulf %111, %111 : vector<16x320xf32>
    %cst_36 = arith.constant dense<0.000000e+00> : vector<16xf32>
    %113 = vector.multi_reduction <add>, %112, %cst_36 [1] : vector<16x320xf32> to vector<16xf32>
    %114 = vector.shape_cast %113 : vector<16xf32> to vector<16x1xf32>
    %cst_37 = arith.constant 3.200000e+02 : f32
    %115 = vector.broadcast %cst_37 : f32 to vector<16x1xf32>
    %116 = arith.divf %114, %115 : vector<16x1xf32>
    %117 = vector.broadcast %109 : vector<16x1xf32> to vector<16x320xf32>
    %118 = arith.subf %105, %117 : vector<16x320xf32>
    %cst_38 = arith.constant 9.99999974E-6 : f32
    %119 = vector.broadcast %cst_38 : f32 to vector<16x1xf32>
    %120 = arith.addf %116, %119 : vector<16x1xf32>
    %121 = math.rsqrt %120 : vector<16x1xf32>
    %122 = vector.broadcast %121 : vector<16x1xf32> to vector<16x320xf32>
    %123 = arith.mulf %118, %122 : vector<16x320xf32>
    %c0_39 = arith.constant 0 : index
    %c0_40 = arith.constant 0 : index
    %124 = vector.load %arg4[%c0_39, %c0_40] : memref<1x320xf32, #tpu.memory_space<vmem>>, vector<1x320xf32>
    %125 = vector.broadcast %124 : vector<1x320xf32> to vector<16x320xf32>
    %126 = arith.mulf %123, %125 : vector<16x320xf32>
    %c0_41 = arith.constant 0 : index
    %c0_42 = arith.constant 0 : index
    %127 = vector.load %arg5[%c0_41, %c0_42] : memref<1x320xf32, #tpu.memory_space<vmem>>, vector<1x320xf32>
    %128 = vector.broadcast %127 : vector<1x320xf32> to vector<16x320xf32>
    %129 = arith.addf %126, %128 : vector<16x320xf32>
    %130 = arith.truncf %129 : vector<16x320xf32> to vector<16x320xbf16>
    %c0_43 = arith.constant 0 : index
    %c0_44 = arith.constant 0 : index
    %131 = vector.load %arg9[%c0_43, %c0_44] : memref<320x1280xbf16, #tpu.memory_space<vmem>>, vector<320x1280xbf16>
    %cst_45 = arith.constant dense<0.000000e+00> : vector<16x1280xf32>
    %132 = tpu.matmul %130, %131, %cst_45 {dimension_numbers = #tpu.dot_dimension_numbers<[1], [0], [0], [1], [0, 0, 1, 1], [], []>} : vector<16x320xbf16>, vector<320x1280xbf16>, vector<16x1280xf32> -> vector<16x1280xf32>
    %c0_46 = arith.constant 0 : index
    %c0_47 = arith.constant 0 : index
    %133 = vector.load %arg10[%c0_46, %c0_47] : memref<1x1280xf32, #tpu.memory_space<vmem>>, vector<1x1280xf32>
    %134 = vector.broadcast %133 : vector<1x1280xf32> to vector<16x1280xf32>
    %135 = arith.addf %132, %134 : vector<16x1280xf32>
    %cst_48 = arith.constant 0.000000e+00 : f32
    %136 = vector.broadcast %cst_48 : f32 to vector<16x1280xf32>
    %137 = arith.maximumf %135, %136 : vector<16x1280xf32>
    %138 = arith.truncf %137 : vector<16x1280xf32> to vector<16x1280xbf16>
    %c0_49 = arith.constant 0 : index
    %c0_50 = arith.constant 0 : index
    %139 = vector.load %arg11[%c0_49, %c0_50] : memref<1280x320xbf16, #tpu.memory_space<vmem>>, vector<1280x320xbf16>
    %cst_51 = arith.constant dense<0.000000e+00> : vector<16x320xf32>
    %140 = tpu.matmul %138, %139, %cst_51 {dimension_numbers = #tpu.dot_dimension_numbers<[1], [0], [0], [1], [0, 0, 1, 1], [], []>} : vector<16x1280xbf16>, vector<1280x320xbf16>, vector<16x320xf32> -> vector<16x320xf32>
    %c0_52 = arith.constant 0 : index
    %c0_53 = arith.constant 0 : index
    %141 = vector.load %arg12[%c0_52, %c0_53] : memref<1x320xf32, #tpu.memory_space<vmem>>, vector<1x320xf32>
    %142 = vector.broadcast %141 : vector<1x320xf32> to vector<16x320xf32>
    %143 = arith.addf %140, %142 : vector<16x320xf32>
    %144 = arith.addf %105, %143 : vector<16x320xf32>
    %145 = vector.shape_cast %144 : vector<16x320xf32> to vector<2x8x320xf32>
    %c0_54 = arith.constant 0 : index
    %c0_55 = arith.constant 0 : index
    %c0_56 = arith.constant 0 : index
    %146 = vector.load %arg13[%c0_54, %c0_55, %c0_56] : memref<2x8x320xf32, #tpu.memory_space<vmem>>, vector<2x8x320xf32>
    tpu.vector_store %arg13[%c0_54, %c0_55, %c0_56], %145 {strides = array<i32>} : memref<2x8x320xf32, #tpu.memory_space<vmem>>, vector<2x8x320xf32>,
    return
  }
  func.func @transform_0(%arg0: i32) -> (i32, i32, i32) {
    %c0_i32 = arith.constant 0 : i32
    %c0_i32_0 = arith.constant 0 : i32
    %c0_i32_1 = arith.constant 0 : i32
    return %arg0, %c0_i32, %c0_i32_0 : i32, i32, i32
  }
  func.func @transform_1(%arg0: i32) -> (i32, i32) {
    %c0_i32 = arith.constant 0 : i32
    %c0_i32_0 = arith.constant 0 : i32
    %c0_i32_1 = arith.constant 0 : i32
    return %c0_i32, %c0_i32_0 : i32, i32
  }
  func.func @transform_2(%arg0: i32) -> (i32, i32) {
    %c0_i32 = arith.constant 0 : i32
    %c0_i32_0 = arith.constant 0 : i32
    %c0_i32_1 = arith.constant 0 : i32
    return %c0_i32, %c0_i32_0 : i32, i32
  }
  func.func @transform_3(%arg0: i32) -> (i32, i32) {
    %c0_i32 = arith.constant 0 : i32
    %c0_i32_0 = arith.constant 0 : i32
    %c0_i32_1 = arith.constant 0 : i32
    return %c0_i32, %c0_i32_0 : i32, i32
  }
  func.func @transform_4(%arg0: i32) -> (i32, i32) {
    %c0_i32 = arith.constant 0 : i32
    %c0_i32_0 = arith.constant 0 : i32
    %c0_i32_1 = arith.constant 0 : i32
    return %c0_i32, %c0_i32_0 : i32, i32
  }
  func.func @transform_5(%arg0: i32) -> (i32, i32) {
    %c0_i32 = arith.constant 0 : i32
    %c0_i32_0 = arith.constant 0 : i32
    %c0_i32_1 = arith.constant 0 : i32
    return %c0_i32, %c0_i32_0 : i32, i32
  }
  func.func @transform_6(%arg0: i32) -> (i32, i32) {
    %c0_i32 = arith.constant 0 : i32
    %c0_i32_0 = arith.constant 0 : i32
    %c0_i32_1 = arith.constant 0 : i32
    return %c0_i32, %c0_i32_0 : i32, i32
  }
  func.func @transform_7(%arg0: i32) -> (i32, i32) {
    %c0_i32 = arith.constant 0 : i32
    %c0_i32_0 = arith.constant 0 : i32
    %c0_i32_1 = arith.constant 0 : i32
    return %c0_i32, %c0_i32_0 : i32, i32
  }
  func.func @transform_8(%arg0: i32) -> (i32, i32) {
    %c0_i32 = arith.constant 0 : i32
    %c0_i32_0 = arith.constant 0 : i32
    %c0_i32_1 = arith.constant 0 : i32
    return %c0_i32, %c0_i32_0 : i32, i32
  }
  func.func @transform_9(%arg0: i32) -> (i32, i32) {
    %c0_i32 = arith.constant 0 : i32
    %c0_i32_0 = arith.constant 0 : i32
    %c0_i32_1 = arith.constant 0 : i32
    return %c0_i32, %c0_i32_0 : i32, i32
  }
  func.func @transform_10(%arg0: i32) -> (i32, i32) {
    %c0_i32 = arith.constant 0 : i32
    %c0_i32_0 = arith.constant 0 : i32
    %c0_i32_1 = arith.constant 0 : i32
    return %c0_i32, %c0_i32_0 : i32, i32
  }
  func.func @transform_11(%arg0: i32) -> (i32, i32) {
    %c0_i32 = arith.constant 0 : i32
    %c0_i32_0 = arith.constant 0 : i32
    %c0_i32_1 = arith.constant 0 : i32
    return %c0_i32, %c0_i32_0 : i32, i32
  }
  func.func @transform_12(%arg0: i32) -> (i32, i32, i32) {
    %c0_i32 = arith.constant 0 : i32
    %c0_i32_0 = arith.constant 0 : i32
    %c0_i32_1 = arith.constant 0 : i32
    return %arg0, %c0_i32, %c0_i32_0 : i32, i32, i32
  }
}

</mosaic_0001>

<bundles_post_ra>
// kernel: tpu_custom_call.1
= control target key start
LH: loop header
LB: loop body
LE: loop exit
PB: predicated region body
PF: predicated region fallthrough
CT: control target
= control target key end

     0   :  { %vm50_vm0 = vcmask 523264   ;;  %s12915_s0 = inlined_call_operand.vmem [shape: f32[2,8,320], index: 0, kind: input, shape index: {}]   ;;  %s12916_s1 = inlined_call_operand.vmem [shape: f32[1,320], index: 1, kind: input, shape index: {}]   ;;  %s12917_s2 = inlined_call_operand.vmem [shape: f32[1,320], index: 2, kind: input, shape index: {}]   ;;  %s12918_s3 = inlined_call_operand.vmem [shape: f32[1,320], index: 3, kind: input, shape index: {}]   ;;  %s12919_s4 = inlined_call_operand.vmem [shape: f32[1,320], index: 4, kind: input, shape index: {}]   ;;  %s12920_s5 = inlined_call_operand.vmem [shape: bf16[320,1536], index: 5, kind: input, shape index: {}]   ;;  %s12921_s6 = inlined_call_operand.vmem [shape: bf16[512,320], index: 6, kind: input, shape index: {}]   ;;  %s12922_s7 = inlined_call_operand.vmem [shape: f32[1,320], index: 7, kind: input, shape index: {}]   ;;  %s12923_s8 = inlined_call_operand.vmem [shape: bf16[320,1280], index: 8, kind: input, shape index: {}]   ;;  %s12924_s9 = inlined_call_operand.vmem [shape: f32[1,1280], index: 9, kind: input, shape index: {}]   ;;  %s12925_s10 = inlined_call_operand.vmem [shape: bf16[1280,320], index: 10, kind: input, shape index: {}]   ;;  %s12926_s11 = inlined_call_operand.vmem [shape: f32[1,320], index: 11, kind: input, shape index: {}]   ;;  %s12927_s12 = inlined_call_operand.hbm [shape: f32[2,8,320], index: 12, kind: output, shape index: {}]  }
   0x1   :  { %v43_v0 = vld [vmem:[%s12915_s0] sm:$0xff]  ;;  %v44_v1 = vld [vmem:[%s12915_s0 + $0x8] sm:$0xff]  ;;  %v45_v2 = vld [vmem:[%s12915_s0 + $0x10] sm:$0xff] }
   0x2   :  { %v49_v3 = vadd.f32 %v44_v1, %v43_v0  ;;  %v51_v4 = vsel %vm50_vm0, %v45_v2, 0.0  ;;  %v46_v5 = vld [vmem:[%s12915_s0 + $0x18] sm:$0xff]  ;;  %v47_v6 = vld [vmem:[%s12915_s0 + $0x20] sm:$0xff]  ;;  %v48_v7 = vld [vmem:[%s12915_s0 + $0x28] sm:$0xff] }
   0x3   :  { %v55_v8 = vadd.f32 %v47_v6, %v46_v5  ;;  %v56_v9 = vsel %vm50_vm0, %v48_v7, 0.0  ;;  %v8890_v12 = vld [vmem:[%s12920_s5 + $0x4] ss:$48 sps:$4 sm:$0xff]   ;;  %v8892_v13 = vld [vmem:[%s12920_s5] ss:$48 sps:$4 sm:$0xff]  }
   0x4   :  { %v52_v10 = vadd.f32 %v51_v4, %v49_v3  ;;  %v8893_v14 = vld [vmem:[%s12920_s5 + $0x64] ss:$48 sps:$4 sm:$0xff]   ;;  %1589 = vmatprep.subr.bf16.mxu1 %v8890_v12  ;;  %v8895_v15 = vld [vmem:[%s12920_s5 + $0x60] ss:$48 sps:$4 sm:$0xff]   ;;  %v8955_v12 = vld [vmem:[%s12920_s5 + $0xc] ss:$48 sps:$4 sm:$0xff]  }
   0x5   :  { %v57_v11 = vadd.f32 %v56_v9, %v55_v8  ;;  %1590 = vmatpush1.bf16.msra.mxu1 %v8892_v13  ;;  %v8896_v16 = vld [vmem:[%s12920_s5 + $0xc4] ss:$48 sps:$4 sm:$0xff]   ;;  %v8898_v17 = vld [vmem:[%s12920_s5 + $0xc0] ss:$48 sps:$4 sm:$0xff]  }
   0x6   :  { %53 = vadd.xlane.f32.xlu0 %v52_v10  ;;  %1591 = vmatprep.subr.bf16.mxu1 %v8893_v14  ;;  %v8899_v18 = vld [vmem:[%s12920_s5 + $0x124] ss:$48 sps:$4 sm:$0xff]   ;;  %v8901_v19 = vld [vmem:[%s12920_s5 + $0x120] ss:$48 sps:$4 sm:$0xff]  }
   0x7   :  { %v8902_v20 = vld [vmem:[%s12920_s5 + $0x184] ss:$48 sps:$4 sm:$0xff]   ;;  %v8904_v21 = vld [vmem:[%s12920_s5 + $0x180] ss:$48 sps:$4 sm:$0xff]  }
   0x8   :  { %v8905_v22 = vld [vmem:[%s12920_s5 + $0x1e4] ss:$48 sps:$4 sm:$0xff]   ;;  %v8907_v23 = vld [vmem:[%s12920_s5 + $0x1e0] ss:$48 sps:$4 sm:$0xff]  }
   0x9   :  { %1592 = vmatpush1.bf16.msra.mxu1 %v8895_v15  ;;  %v8908_v24 = vld [vmem:[%s12920_s5 + $0x244] ss:$48 sps:$4 sm:$0xff]   ;;  %v8910_v25 = vld [vmem:[%s12920_s5 + $0x240] ss:$48 sps:$4 sm:$0xff]  }
   0xa   :  { %58 = vadd.xlane.f32.xlu0 %v57_v11  ;;  %1593 = vmatprep.subr.bf16.mxu1 %v8896_v16  ;;  %v8911_v26 = vld [vmem:[%s12920_s5 + $0x2a4] ss:$48 sps:$4 sm:$0xff]   ;;  %v8913_v27 = vld [vmem:[%s12920_s5 + $0x2a0] ss:$48 sps:$4 sm:$0xff]   ;;  %v99_v16 = vlaneseq }
   0xb   :  { %v8914_v28 = vld [vmem:[%s12920_s5 + $0x304] ss:$48 sps:$4 sm:$0xff]   ;;  %v8916_v29 = vld [vmem:[%s12920_s5 + $0x300] ss:$48 sps:$4 sm:$0xff]  }
   0xc   :  { %v8917_v30 = vld [vmem:[%s12920_s5 + $0x364] ss:$48 sps:$4 sm:$0xff]   ;;  %v8919_v53 = vld [vmem:[%s12920_s5 + $0x360] ss:$48 sps:$4 sm:$0xff]  }
   0xd   :  { %1594 = vmatpush1.bf16.msra.mxu1 %v8898_v17  ;;  %v8920_v54 = vld [vmem:[%s12920_s5 + $0x3c4] ss:$48 sps:$4 sm:$0xff]   ;;  %v8922_v55 = vld [vmem:[%s12920_s5 + $0x3c0] ss:$48 sps:$4 sm:$0xff]  }
   0xe   :  { %1595 = vmatprep.subr.bf16.mxu1 %v8899_v18  ;;  %v8923_v56 = vld [vmem:[%s12920_s5 + $0x424] ss:$48 sps:$4 sm:$0xff]   ;;  %v8925_v57 = vld [vmem:[%s12920_s5 + $0x420] ss:$48 sps:$4 sm:$0xff]  }
   0xf   :  { %v8926_v58 = vld [vmem:[%s12920_s5 + $0x604] ss:$48 sps:$4 sm:$0xff]   ;;  %v8930_v60 = vld [vmem:[%s12920_s5 + $0x600] ss:$48 sps:$4 sm:$0xff]  }
  0x10   :  { %v8928_v59 = vld [vmem:[%s12920_s5 + $0x484] ss:$48 sps:$4 sm:$0xff]   ;;  %v8931_v61 = vld [vmem:[%s12920_s5 + $0x480] ss:$48 sps:$4 sm:$0xff]   ;;  %1632 = vmatprep.subr.bf16.mxu0 %v8926_v58 }
  0x11   :  { %1596 = vmatpush1.bf16.msra.mxu1 %v8901_v19  ;;  %v8932_v62 = vld [vmem:[%s12920_s5 + $0x664] ss:$48 sps:$4 sm:$0xff]   ;;  %1633 = vmatpush1.bf16.msra.mxu0 %v8930_v60  ;;  %v8942_v4 = vld [vmem:[%s12920_s5 + $0x6c0] ss:$48 sps:$4 sm:$0xff]   ;;  %v8959_v60 = vld [vmem:[%s12920_s5 + $0x68] ss:$48 sps:$4 sm:$0xff]  }
  0x12   :  { %1597 = vmatprep.subr.bf16.mxu1 %v8902_v20  ;;  %v8934_v63 = vld [vmem:[%s12920_s5 + $0x4e4] ss:$48 sps:$4 sm:$0xff]   ;;  %1634 = vmatprep.subr.bf16.mxu0 %v8932_v62  ;;  %v8948_v9 = vld [vmem:[%s12920_s5 + $0x720] ss:$48 sps:$4 sm:$0xff]   ;;  %v10312_v20 = vshrl.u32 %v99_v16, 7 }
  0x13   :  { %v8940_v3 = vld [vmem:[%s12920_s5 + $0x544] ss:$48 sps:$4 sm:$0xff]   ;;  %v8949_v11 = vld [vmem:[%s12920_s5 + $0x5a0] ss:$48 sps:$4 sm:$0xff]   ;;  %v8991_v16 = vld [vmem:[%s12920_s5 + $0x24c] ss:$48 sps:$4 sm:$0xff]  }
  0x14   :  { %v8946_v8 = vld [vmem:[%s12920_s5 + $0x5a4] ss:$48 sps:$4 sm:$0xff]   ;;  %v8956_v58 = vld [vmem:[%s12920_s5 + $0x70] ss:$48 sps:$4 sm:$0xff]  }
  0x15   :  { %1598 = vmatpush1.bf16.msra.mxu1 %v8904_v21  ;;  %v8952_v10 = vld [vmem:[%s12920_s5 + $0x14] ss:$48 sps:$4 sm:$0xff]   ;;  %v97_v21 = vld [vmem:[%s12916_s1] sm:$0x7] }
  0x16   :  { %1599 = vmatprep.subr.bf16.mxu1 %v8905_v22  ;;  %v10318_v22 = vsub.s32 1, %v10312_v20  ;;  %v8962_v62 = vld [vmem:[%s12920_s5 + $0xd0] ss:$48 sps:$4 sm:$0xff]  }
  0x19   :  { %1600 = vmatpush1.bf16.msra.mxu1 %v8907_v23  ;;  %v10321_v23 = vsub.s32 2, %v10312_v20 }
  0x1a   :  { %1601 = vmatprep.subr.bf16.mxu1 %v8908_v24  ;;  %v10324_v24 = vsub.s32 0, %v10312_v20 }
  0x1d   :  { %1602 = vmatpush1.bf16.msra.mxu1 %v8910_v25 }
  0x1e   :  { %1603 = vmatprep.subr.bf16.mxu1 %v8911_v26  ;;  %v120_v26 = vld [vmem:[%s12917_s2] sm:$0x7] }
  0x21   :  { %1604 = vmatpush1.bf16.msra.mxu1 %v8913_v27 }
  0x22   :  { %1605 = vmatprep.subr.bf16.mxu1 %v8914_v28  ;;  %v106_v28 = vrot.slane %v97_v21, %v10318_v22 }
  0x25   :  { %1606 = vmatpush1.bf16.msra.mxu1 %v8916_v29 }
  0x26   :  { %1607 = vmatprep.subr.bf16.mxu1 %v8917_v30  ;;  %v110_v30 = vrot.slane %v97_v21, %v10321_v23 }
  0x29   :  { %1608 = vmatpush1.bf16.msra.mxu1 %v8919_v53 }
  0x2a   :  { %1609 = vmatprep.subr.bf16.mxu1 %v8920_v54 }
  0x2d   :  { %1610 = vmatpush1.bf16.msra.mxu1 %v8922_v55 }
  0x2e   :  { %1611 = vmatprep.subr.bf16.mxu1 %v8923_v56  ;;  %v8958_v56 = vld [vmem:[%s12920_s5 + $0x74] ss:$48 sps:$4 sm:$0xff]  }
  0x31   :  { %1612 = vmatpush1.bf16.msra.mxu1 %v8925_v57 }
  0x32   :  { %1613 = vmatprep.subr.bf16.mxu1 %v8928_v59  ;;  %v8961_v59 = vld [vmem:[%s12920_s5 + $0x6c] ss:$48 sps:$4 sm:$0xff]  }
  0x35   :  { %1614 = vmatpush1.bf16.msra.mxu1 %v8931_v61  ;;  %v8964_v61 = vld [vmem:[%s12920_s5 + $0xd4] ss:$48 sps:$4 sm:$0xff]  }
  0x36   :  { %1615 = vmatprep.subr.bf16.mxu1 %v8934_v63  ;;  %v8967_v63 = vld [vmem:[%s12920_s5 + $0xcc] ss:$48 sps:$4 sm:$0xff]  }
  0x93   :  { %v54_v31 = vpop.xlane.xlu0 %53 }
  0x94   :  { %v61_v32 = vmul.f32 0.003125, %v54_v31 }
  0x96   :  { %v10216_v33 = vsub.f32 %v43_v0, %v61_v32  ;;  %v10218_v34 = vsub.f32 %v44_v1, %v61_v32  ;;  %v10220_v35 = vsub.f32 %v45_v2, %v61_v32  ;;  %v8936_v0 = vld [vmem:[%s12920_s5 + $0x660] ss:$48 sps:$4 sm:$0xff]   ;;  %v8938_v1 = vld [vmem:[%s12920_s5 + $0x6c4] ss:$48 sps:$4 sm:$0xff]   ;;  %v102_v32 = vrot.slane %v97_v21, %v10324_v24  ;;  %v8997_v21 = vld [vmem:[%s12920_s5 + $0x2ac] ss:$48 sps:$4 sm:$0xff]  }
  0x97   :  { %v59_v36 = vpop.xlane.xlu0 %58  ;;  %v8937_v2 = vld [vmem:[%s12920_s5 + $0x4e0] ss:$48 sps:$4 sm:$0xff]   ;;  %1635 = vmatpush1.bf16.msra.mxu0 %v8936_v0  ;;  %v8965_v0 = vld [vmem:[%s12920_s5 + $0xc8] ss:$48 sps:$4 sm:$0xff]  }
  0x98   :  { %v62_v37 = vmul.f32 0.003125, %v59_v36  ;;  %v69_v38 = vmul.f32 %v10216_v33, %v10216_v33  ;;  %v70_v39 = vmul.f32 %v10218_v34, %v10218_v34  ;;  %v71_v40 = vmul.f32 %v10220_v35, %v10220_v35  ;;  %1636 = vmatprep.subr.bf16.mxu0 %v8938_v1  ;;  %1616 = vmatpush1.bf16.msra.mxu1 %v8937_v2  ;;  %v8970_v1 = vld [vmem:[%s12920_s5 + $0x134] ss:$48 sps:$4 sm:$0xff]   ;;  %v8968_v2 = vld [vmem:[%s12920_s5 + $0x130] ss:$48 sps:$4 sm:$0xff]  }
  0x99   :  { %1617 = vmatprep.subr.bf16.mxu1 %v8940_v3  ;;  %v8973_v3 = vld [vmem:[%s12920_s5 + $0x12c] ss:$48 sps:$4 sm:$0xff]  }
  0x9a   :  { %v10228_v41 = vsub.f32 %v46_v5, %v62_v37  ;;  %v10230_v42 = vsub.f32 %v47_v6, %v62_v37  ;;  %v10232_v43 = vsub.f32 %v48_v7, %v62_v37  ;;  %v75_v44 = vadd.f32 %v70_v39, %v69_v38  ;;  %v8943_v6 = vld [vmem:[%s12920_s5 + $0x540] ss:$48 sps:$4 sm:$0xff]   ;;  %v8944_v7 = vld [vmem:[%s12920_s5 + $0x724] ss:$48 sps:$4 sm:$0xff]  }
  0x9b   :  { %v76_v45 = vsel %vm50_vm0, %v71_v40, 0.0  ;;  %v10068_v5 = vmov 0   ;;  %1637 = vmatpush1.bf16.msra.mxu0 %v8942_v4  ;;  %v129_v37 = vrot.slane %v120_v26, %v10318_v22  ;;  %v133_v38 = vrot.slane %v120_v26, %v10321_v23  ;;  %v8971_v4 = vld [vmem:[%s12920_s5 + $0x128] ss:$48 sps:$4 sm:$0xff]  }
  0x9c   :  { %v77_v46 = vadd.f32 %v76_v45, %v75_v44  ;;  %v72_v47 = vmul.f32 %v10228_v41, %v10228_v41  ;;  %v73_v48 = vmul.f32 %v10230_v42, %v10230_v42  ;;  %v74_v49 = vmul.f32 %v10232_v43, %v10232_v43  ;;  %1664 = vmatprep.mubr.bf16.mxu0 %v10068_v5 }
  0x9d   :  { %1638 = vmatprep.subr.bf16.mxu0 %v8944_v7  ;;  %1618 = vmatpush1.bf16.msra.mxu1 %v8943_v6  ;;  %v8976_v6 = vld [vmem:[%s12920_s5 + $0x194] ss:$48 sps:$4 sm:$0xff]   ;;  %v8974_v7 = vld [vmem:[%s12920_s5 + $0x190] ss:$48 sps:$4 sm:$0xff]  }
  0x9e   :  { %78 = vadd.xlane.f32.xlu1 %v77_v46  ;;  %v80_v50 = vadd.f32 %v73_v48, %v72_v47  ;;  %v81_v51 = vsel %vm50_vm0, %v74_v49, 0.0  ;;  %1619 = vmatprep.subr.bf16.mxu1 %v8946_v8  ;;  %v125_v46 = vrot.slane %v120_v26, %v10324_v24  ;;  %v8950_v48 = vld [vmem:[%s12920_s5 + $0x10] ss:$48 sps:$4 sm:$0xff]   ;;  %v8979_v8 = vld [vmem:[%s12920_s5 + $0x18c] ss:$48 sps:$4 sm:$0xff]  }
  0x9f   :  { %1639 = vmatpush1.bf16.msra.mxu0 %v8948_v9  ;;  %v8977_v9 = vld [vmem:[%s12920_s5 + $0x188] ss:$48 sps:$4 sm:$0xff]   ;;  %v9000_v26 = vld [vmem:[%s12920_s5 + $0x314] ss:$48 sps:$4 sm:$0xff]  }
  0xa0   :  { %v82_v52 = vadd.f32 %v81_v51, %v80_v50  ;;  %1761 = vmatprep.subr.bf16.mxu0 %v8952_v10  ;;  %v8982_v10 = vld [vmem:[%s12920_s5 + $0x1f4] ss:$48 sps:$4 sm:$0xff]  }
  0xa1   :  { %1620 = vmatpush1.bf16.msra.mxu1 %v8949_v11  ;;  %v8985_v11 = vld [vmem:[%s12920_s5 + $0x1ec] ss:$48 sps:$4 sm:$0xff]  }
  0xa2   :  { %83 = vadd.xlane.f32.xlu1 %v82_v52  ;;  %1675 = vmatprep.subr.bf16.mxu1 %v8955_v12  ;;  %v8980_v12 = vld [vmem:[%s12920_s5 + $0x1f0] ss:$48 sps:$4 sm:$0xff]  }
 0x12b   :  { %v79_v13 = vpop.xlane.xlu1 %78 }
 0x12c   :  { %v85_v14 = vmul.f32 0.003125, %v79_v13  ;;  %v8983_v13 = vld [vmem:[%s12920_s5 + $0x1e8] ss:$48 sps:$4 sm:$0xff]  }
 0x12e   :  { %v87_v15 = vadd.f32 1e-05, %v85_v14  ;;  %v8988_v14 = vld [vmem:[%s12920_s5 + $0x254] ss:$48 sps:$4 sm:$0xff]  }
 0x12f   :  { %v84_v17 = vpop.xlane.xlu1 %83 }
 0x130   :  { %9998 = vrsqrt.f32 %v87_v15  ;;  %v86_v18 = vmul.f32 0.003125, %v84_v17  ;;  %v8986_v15 = vld [vmem:[%s12920_s5 + $0x250] ss:$48 sps:$4 sm:$0xff]   ;;  %v8989_v17 = vld [vmem:[%s12920_s5 + $0x248] ss:$48 sps:$4 sm:$0xff]  }
 0x132   :  { %v88_v19 = vadd.f32 1e-05, %v86_v18  ;;  %v8994_v18 = vld [vmem:[%s12920_s5 + $0x2b4] ss:$48 sps:$4 sm:$0xff]  }
 0x134   :  { %10000 = vrsqrt.f32 %v88_v19  ;;  %v8992_v19 = vld [vmem:[%s12920_s5 + $0x2b0] ss:$48 sps:$4 sm:$0xff]  }
 0x13a   :  { %v9999_v25 = vpop.eup %9998 }
 0x13b   :  { %v92_v27 = vmul.f32 %v9999_v25, %v10218_v34  ;;  %v93_v29 = vmul.f32 %v9999_v25, %v10220_v35  ;;  %v91_v31 = vmul.f32 %v9999_v25, %v10216_v33  ;;  %v8995_v25 = vld [vmem:[%s12920_s5 + $0x2a8] ss:$48 sps:$4 sm:$0xff]  }
 0x13d   :  { %v115_v40 = vmul.f32 %v106_v28, %v92_v27  ;;  %v116_v44 = vmul.f32 %v110_v30, %v93_v29  ;;  %v114_v35 = vmul.f32 %v102_v32, %v91_v31  ;;  %v8998_v27 = vld [vmem:[%s12920_s5 + $0x310] ss:$48 sps:$4 sm:$0xff]   ;;  %v9001_v29 = vld [vmem:[%s12920_s5 + $0x308] ss:$48 sps:$4 sm:$0xff]   ;;  %v9009_v31 = vld [vmem:[%s12920_s5 + $0x36c] ss:$48 sps:$4 sm:$0xff]  }
 0x13e   :  { %v10001_v36 = vpop.eup %10000 }
 0x13f   :  { %v95_v39 = vmul.f32 %v10001_v36, %v10230_v42  ;;  %v96_v34 = vmul.f32 %v10001_v36, %v10232_v43  ;;  %v94_v45 = vmul.f32 %v10001_v36, %v10228_v41  ;;  %v138_v50 = vadd.f32 %v129_v37, %v115_v40  ;;  %v8953_v41 = vld [vmem:[%s12920_s5 + $0x8] ss:$48 sps:$4 sm:$0xff]  }
 0x140   :  { %v139_v52 = vadd.f32 %v133_v38, %v116_v44  ;;  %v137_v53 = vadd.f32 %v125_v46, %v114_v35  ;;  %v9007_v36 = vld [vmem:[%s12920_s5 + $0x368] ss:$48 sps:$4 sm:$0xff]   ;;  %v9021_v44 = vld [vmem:[%s12920_s5 + $0x42c] ss:$48 sps:$4 sm:$0xff]  }
 0x141   :  { %v118_v47 = vmul.f32 %v106_v28, %v95_v39  ;;  %v119_v33 = vmul.f32 %v110_v30, %v96_v34  ;;  %v117_v49 = vmul.f32 %v102_v32, %v94_v45  ;;  %v9003_v28 = vld [vmem:[%s12920_s5 + $0x30c] ss:$48 sps:$4 sm:$0xff]   ;;  %v9006_v30 = vld [vmem:[%s12920_s5 + $0x374] ss:$48 sps:$4 sm:$0xff]   ;;  %v9004_v32 = vld [vmem:[%s12920_s5 + $0x370] ss:$48 sps:$4 sm:$0xff]  }
 0x142   :  { %v9010_v39 = vld [vmem:[%s12920_s5 + $0x3d0] ss:$48 sps:$4 sm:$0xff]   ;;  %v9013_v40 = vld [vmem:[%s12920_s5 + $0x3c8] ss:$48 sps:$4 sm:$0xff]   ;;  %v9018_v34 = vld [vmem:[%s12920_s5 + $0x434] ss:$48 sps:$4 sm:$0xff]  }
 0x143   :  { %v141_v51 = vadd.f32 %v129_v37, %v118_v47  ;;  %v142_v42 = vadd.f32 %v133_v38, %v119_v33  ;;  %v140_v54 = vadd.f32 %v125_v46, %v117_v49  ;;  %v9012_v37 = vld [vmem:[%s12920_s5 + $0x3d4] ss:$48 sps:$4 sm:$0xff]   ;;  %v9015_v38 = vld [vmem:[%s12920_s5 + $0x3cc] ss:$48 sps:$4 sm:$0xff]   ;;  %v9016_v45 = vld [vmem:[%s12920_s5 + $0x430] ss:$48 sps:$4 sm:$0xff]  }
 0x144   :  { %v9019_v35 = vld [vmem:[%s12920_s5 + $0x428] ss:$48 sps:$4 sm:$0xff]   ;;  %v9024_v46 = vld [vmem:[%s12920_s5 + $0x494] ss:$48 sps:$4 sm:$0xff]   ;;  %v9027_v47 = vld [vmem:[%s12920_s5 + $0x48c] ss:$48 sps:$4 sm:$0xff]  }
 0x145   :  { %v10344_v43 = vpack.c.bf16 %v141_v51, %v138_v50  ;;  %v10346_v55 = vpack.c.bf16 %v142_v42, %v139_v52  ;;  %v10354_v57 = vpack.c.bf16 %v140_v54, %v137_v53 }
 0x147   :  { %1621 = vmatprep.mubr.bf16.mxu1 %v10344_v43  ;;  %7931 = vmatmul.mubr.msk.bf16.vlgmr.msra.gmra.mrb[0].mxu0 %vm50_vm0, %v10346_v55 }
 0x148   :  { %1762 = vmatpush1.bf16.msra.mxu0 %v8950_v48  ;;  %1622 = vmatmul.mubr.bf16.vlgmr.msra.gmra.mrb[0].mxu1 %v10354_v57 }
 0x149   :  { %1676 = vmatpush1.bf16.msra.mxu1 %v8953_v41  ;;  %1793 = vmatprep.mubr.bf16.mxu0 %v10344_v43 }
 0x14a   :  { %1707 = vmatprep.mubr.bf16.mxu1 %v10344_v43  ;;  %1763 = vmatprep.subr.bf16.mxu0 %v8958_v56 }
 0x14b   :  { %1677 = vmatprep.subr.bf16.mxu1 %v8961_v59 }
 0x14c   :  { %1764 = vmatpush1.bf16.msra.mxu0 %v8956_v58 }
 0x14d   :  { %1678 = vmatpush1.bf16.msra.mxu1 %v8959_v60  ;;  %1765 = vmatprep.subr.bf16.mxu0 %v8964_v61 }
 0x14e   :  { %1679 = vmatprep.subr.bf16.mxu1 %v8967_v63 }
 0x150   :  { %1766 = vmatpush1.bf16.msra.mxu0 %v8962_v62 }
 0x151   :  { %1680 = vmatpush1.bf16.msra.mxu1 %v8965_v0  ;;  %1767 = vmatprep.subr.bf16.mxu0 %v8970_v1 }
 0x152   :  { %1681 = vmatprep.subr.bf16.mxu1 %v8973_v3 }
 0x154   :  { %1768 = vmatpush1.bf16.msra.mxu0 %v8968_v2 }
 0x155   :  { %1682 = vmatpush1.bf16.msra.mxu1 %v8971_v4  ;;  %1769 = vmatprep.subr.bf16.mxu0 %v8976_v6 }
 0x156   :  { %1683 = vmatprep.subr.bf16.mxu1 %v8979_v8 }
 0x158   :  { %1770 = vmatpush1.bf16.msra.mxu0 %v8974_v7 }
 0x159   :  { %1684 = vmatpush1.bf16.msra.mxu1 %v8977_v9  ;;  %1771 = vmatprep.subr.bf16.mxu0 %v8982_v10 }
 0x15a   :  { %1685 = vmatprep.subr.bf16.mxu1 %v8985_v11 }
 0x15c   :  { %1772 = vmatpush1.bf16.msra.mxu0 %v8980_v12 }
 0x15d   :  { %1686 = vmatpush1.bf16.msra.mxu1 %v8983_v13  ;;  %1773 = vmatprep.subr.bf16.mxu0 %v8988_v14 }
 0x15e   :  { %1687 = vmatprep.subr.bf16.mxu1 %v8991_v16 }
 0x160   :  { %1774 = vmatpush1.bf16.msra.mxu0 %v8986_v15 }
 0x161   :  { %1688 = vmatpush1.bf16.msra.mxu1 %v8989_v17  ;;  %1775 = vmatprep.subr.bf16.mxu0 %v8994_v18 }
 0x162   :  { %1689 = vmatprep.subr.bf16.mxu1 %v8997_v21 }
 0x164   :  { %1776 = vmatpush1.bf16.msra.mxu0 %v8992_v19 }
 0x165   :  { %1690 = vmatpush1.bf16.msra.mxu1 %v8995_v25  ;;  %1777 = vmatprep.subr.bf16.mxu0 %v9000_v26 }
 0x166   :  { %1691 = vmatprep.subr.bf16.mxu1 %v9003_v28 }
 0x168   :  { %1778 = vmatpush1.bf16.msra.mxu0 %v8998_v27 }
 0x169   :  { %1692 = vmatpush1.bf16.msra.mxu1 %v9001_v29  ;;  %1779 = vmatprep.subr.bf16.mxu0 %v9006_v30 }
 0x16a   :  { %1693 = vmatprep.subr.bf16.mxu1 %v9009_v31 }
 0x16c   :  { %1780 = vmatpush1.bf16.msra.mxu0 %v9004_v32 }
 0x16d   :  { %1694 = vmatpush1.bf16.msra.mxu1 %v9007_v36  ;;  %1781 = vmatprep.subr.bf16.mxu0 %v9012_v37 }
 0x16e   :  { %1695 = vmatprep.subr.bf16.mxu1 %v9015_v38 }
 0x170   :  { %1782 = vmatpush1.bf16.msra.mxu0 %v9010_v39 }
 0x171   :  { %1696 = vmatpush1.bf16.msra.mxu1 %v9013_v40  ;;  %1783 = vmatprep.subr.bf16.mxu0 %v9018_v34 }
 0x172   :  { %1697 = vmatprep.subr.bf16.mxu1 %v9021_v44 }
 0x173   :  { %17 = vsyncpa [#allocation3], 0  ;;  %v9022_v33 = vld [vmem:[%s12920_s5 + $0x490] ss:$48 sps:$4 sm:$0xff]   ;;  %v9025_v48 = vld [vmem:[%s12920_s5 + $0x488] ss:$48 sps:$4 sm:$0xff]  }
 0x174   :  { %1784 = vmatpush1.bf16.msra.mxu0 %v9016_v45  ;;  %v9030_v49 = vld [vmem:[%s12920_s5 + $0x4f4] ss:$48 sps:$4 sm:$0xff]   ;;  %v9033_v50 = vld [vmem:[%s12920_s5 + $0x4ec] ss:$48 sps:$4 sm:$0xff]   ;;  %v9028_v51 = vld [vmem:[%s12920_s5 + $0x4f0] ss:$48 sps:$4 sm:$0xff]  }
 0x175   :  { %1698 = vmatpush1.bf16.msra.mxu1 %v9019_v35  ;;  %1785 = vmatprep.subr.bf16.mxu0 %v9024_v46  ;;  %v9031_v52 = vld [vmem:[%s12920_s5 + $0x4e8] ss:$48 sps:$4 sm:$0xff]   ;;  %v9036_v42 = vld [vmem:[%s12920_s5 + $0x554] ss:$48 sps:$4 sm:$0xff]   ;;  %v9039_v53 = vld [vmem:[%s12920_s5 + $0x54c] ss:$48 sps:$4 sm:$0xff]  }
 0x176   :  { %1699 = vmatprep.subr.bf16.mxu1 %v9027_v47  ;;  %v9034_v54 = vld [vmem:[%s12920_s5 + $0x550] ss:$48 sps:$4 sm:$0xff]   ;;  %v9037_v41 = vld [vmem:[%s12920_s5 + $0x548] ss:$48 sps:$4 sm:$0xff]   ;;  %v9042_v56 = vld [vmem:[%s12920_s5 + $0x5b4] ss:$48 sps:$4 sm:$0xff]  }
 0x177   :  { %v9045_v58 = vld [vmem:[%s12920_s5 + $0x5ac] ss:$48 sps:$4 sm:$0xff]   ;;  %v9040_v59 = vld [vmem:[%s12920_s5 + $0x5b0] ss:$48 sps:$4 sm:$0xff]   ;;  %v9043_v60 = vld [vmem:[%s12920_s5 + $0x5a8] ss:$48 sps:$4 sm:$0xff]  }
 0x178   :  { %1786 = vmatpush1.bf16.msra.mxu0 %v9022_v33  ;;  %v9048_v61 = vld [vmem:[%s12920_s5 + $0x614] ss:$48 sps:$4 sm:$0xff]   ;;  %v9051_v62 = vld [vmem:[%s12920_s5 + $0x60c] ss:$48 sps:$4 sm:$0xff]   ;;  %v9046_v63 = vld [vmem:[%s12920_s5 + $0x610] ss:$48 sps:$4 sm:$0xff]  }
 0x179   :  { %1700 = vmatpush1.bf16.msra.mxu1 %v9025_v48  ;;  %1787 = vmatprep.subr.bf16.mxu0 %v9030_v49  ;;  %v9049_v0 = vld [vmem:[%s12920_s5 + $0x608] ss:$48 sps:$4 sm:$0xff]   ;;  %v9054_v1 = vld [vmem:[%s12920_s5 + $0x674] ss:$48 sps:$4 sm:$0xff]   ;;  %v9057_v2 = vld [vmem:[%s12920_s5 + $0x66c] ss:$48 sps:$4 sm:$0xff]  }
 0x17a   :  { %1701 = vmatprep.subr.bf16.mxu1 %v9033_v50  ;;  %v9052_v3 = vld [vmem:[%s12920_s5 + $0x670] ss:$48 sps:$4 sm:$0xff]   ;;  %v9055_v4 = vld [vmem:[%s12920_s5 + $0x668] ss:$48 sps:$4 sm:$0xff]   ;;  %v9060_v6 = vld [vmem:[%s12920_s5 + $0x6d4] ss:$48 sps:$4 sm:$0xff]  }
 0x17b   :  { %v9063_v7 = vld [vmem:[%s12920_s5 + $0x6cc] ss:$48 sps:$4 sm:$0xff]   ;;  %v9058_v8 = vld [vmem:[%s12920_s5 + $0x6d0] ss:$48 sps:$4 sm:$0xff]   ;;  %v9061_v9 = vld [vmem:[%s12920_s5 + $0x6c8] ss:$48 sps:$4 sm:$0xff]  }
 0x17c   :  { %1788 = vmatpush1.bf16.msra.mxu0 %v9028_v51  ;;  %v9066_v10 = vld [vmem:[%s12920_s5 + $0x734] ss:$48 sps:$4 sm:$0xff]   ;;  %v9069_v11 = vld [vmem:[%s12920_s5 + $0x72c] ss:$48 sps:$4 sm:$0xff]   ;;  %v9064_v12 = vld [vmem:[%s12920_s5 + $0x730] ss:$48 sps:$4 sm:$0xff]  }
 0x17d   :  { %1702 = vmatpush1.bf16.msra.mxu1 %v9031_v52  ;;  %1789 = vmatprep.subr.bf16.mxu0 %v9036_v42  ;;  %v9067_v13 = vld [vmem:[%s12920_s5 + $0x728] ss:$48 sps:$4 sm:$0xff]   ;;  %v9072_v14 = vld [vmem:[%s12920_s5 + $0x24] ss:$48 sps:$4 sm:$0xff]   ;;  %v9075_v15 = vld [vmem:[%s12920_s5 + $0x1c] ss:$48 sps:$4 sm:$0xff]  }
 0x17e   :  { %1703 = vmatprep.subr.bf16.mxu1 %v9039_v53  ;;  %v9070_v16 = vld [vmem:[%s12920_s5 + $0x20] ss:$48 sps:$4 sm:$0xff]   ;;  %v9073_v17 = vld [vmem:[%s12920_s5 + $0x18] ss:$48 sps:$4 sm:$0xff]   ;;  %v9078_v18 = vld [vmem:[%s12920_s5 + $0x84] ss:$48 sps:$4 sm:$0xff]  }
 0x17f   :  { %v9081_v19 = vld [vmem:[%s12920_s5 + $0x7c] ss:$48 sps:$4 sm:$0xff]   ;;  %v9076_v21 = vld [vmem:[%s12920_s5 + $0x80] ss:$48 sps:$4 sm:$0xff]   ;;  %v9079_v25 = vld [vmem:[%s12920_s5 + $0x78] ss:$48 sps:$4 sm:$0xff]  }
 0x180   :  { %1790 = vmatpush1.bf16.msra.mxu0 %v9034_v54  ;;  %v9084_v26 = vld [vmem:[%s12920_s5 + $0xe4] ss:$48 sps:$4 sm:$0xff]   ;;  %v9087_v27 = vld [vmem:[%s12920_s5 + $0xdc] ss:$48 sps:$4 sm:$0xff]   ;;  %v9082_v28 = vld [vmem:[%s12920_s5 + $0xe0] ss:$48 sps:$4 sm:$0xff]  }
 0x181   :  { %1704 = vmatpush1.bf16.msra.mxu1 %v9037_v41  ;;  %1791 = vmatprep.subr.bf16.mxu0 %v9042_v56  ;;  %v9085_v29 = vld [vmem:[%s12920_s5 + $0xd8] ss:$48 sps:$4 sm:$0xff]   ;;  %v9090_v30 = vld [vmem:[%s12920_s5 + $0x144] ss:$48 sps:$4 sm:$0xff]   ;;  %v9093_v31 = vld [vmem:[%s12920_s5 + $0x13c] ss:$48 sps:$4 sm:$0xff]  }
 0x182   :  { %1705 = vmatprep.subr.bf16.mxu1 %v9045_v58  ;;  %v9088_v32 = vld [vmem:[%s12920_s5 + $0x140] ss:$48 sps:$4 sm:$0xff]   ;;  %v9091_v36 = vld [vmem:[%s12920_s5 + $0x138] ss:$48 sps:$4 sm:$0xff]   ;;  %v9096_v37 = vld [vmem:[%s12920_s5 + $0x1a4] ss:$48 sps:$4 sm:$0xff]  }
 0x183   :  { %v9099_v38 = vld [vmem:[%s12920_s5 + $0x19c] ss:$48 sps:$4 sm:$0xff]   ;;  %v9094_v39 = vld [vmem:[%s12920_s5 + $0x1a0] ss:$48 sps:$4 sm:$0xff]   ;;  %v9097_v40 = vld [vmem:[%s12920_s5 + $0x198] ss:$48 sps:$4 sm:$0xff]  }
 0x184   :  { %1792 = vmatpush1.bf16.msra.mxu0 %v9040_v59  ;;  %v9102_v34 = vld [vmem:[%s12920_s5 + $0x204] ss:$48 sps:$4 sm:$0xff]   ;;  %v9105_v44 = vld [vmem:[%s12920_s5 + $0x1fc] ss:$48 sps:$4 sm:$0xff]   ;;  %v9100_v45 = vld [vmem:[%s12920_s5 + $0x200] ss:$48 sps:$4 sm:$0xff]  }
 0x185   :  { %1706 = vmatpush1.bf16.msra.mxu1 %v9043_v60  ;;  %1804 = vmatprep.subr.bf16.mxu0 %v9048_v61  ;;  %v9103_v35 = vld [vmem:[%s12920_s5 + $0x1f8] ss:$48 sps:$4 sm:$0xff]   ;;  %v9108_v46 = vld [vmem:[%s12920_s5 + $0x264] ss:$48 sps:$4 sm:$0xff]   ;;  %v9111_v47 = vld [vmem:[%s12920_s5 + $0x25c] ss:$48 sps:$4 sm:$0xff]  }
 0x186   :  { %1718 = vmatprep.subr.bf16.mxu1 %v9051_v62  ;;  %v9106_v33 = vld [vmem:[%s12920_s5 + $0x260] ss:$48 sps:$4 sm:$0xff]   ;;  %v9109_v48 = vld [vmem:[%s12920_s5 + $0x258] ss:$48 sps:$4 sm:$0xff]   ;;  %v9114_v49 = vld [vmem:[%s12920_s5 + $0x2c4] ss:$48 sps:$4 sm:$0xff]  }
 0x187   :  { %1794 = vmatmul.mubr.bf16.vlgmr.msra.gmra.mrb[4].mxu0 %v10354_v57  ;;  %v9117_v50 = vld [vmem:[%s12920_s5 + $0x2bc] ss:$48 sps:$4 sm:$0xff]   ;;  %v9112_v51 = vld [vmem:[%s12920_s5 + $0x2c0] ss:$48 sps:$4 sm:$0xff]   ;;  %v9115_v52 = vld [vmem:[%s12920_s5 + $0x2b8] ss:$48 sps:$4 sm:$0xff]  }
 0x188   :  { %1708 = vmatmul.mubr.bf16.vlgmr.msra.gmra.mrb[4].mxu1 %v10354_v57  ;;  %1805 = vmatpush1.bf16.msra.mxu0 %v9046_v63  ;;  %v9120_v42 = vld [vmem:[%s12920_s5 + $0x324] ss:$48 sps:$4 sm:$0xff]   ;;  %v9123_v53 = vld [vmem:[%s12920_s5 + $0x31c] ss:$48 sps:$4 sm:$0xff]   ;;  %v9118_v54 = vld [vmem:[%s12920_s5 + $0x320] ss:$48 sps:$4 sm:$0xff]  }
 0x189   :  { %1719 = vmatpush1.bf16.msra.mxu1 %v9049_v0  ;;  %1806 = vmatprep.subr.bf16.mxu0 %v9054_v1  ;;  %v9121_v41 = vld [vmem:[%s12920_s5 + $0x318] ss:$48 sps:$4 sm:$0xff]   ;;  %v9126_v56 = vld [vmem:[%s12920_s5 + $0x384] ss:$48 sps:$4 sm:$0xff]   ;;  %v9129_v58 = vld [vmem:[%s12920_s5 + $0x37c] ss:$48 sps:$4 sm:$0xff]  }
 0x18a   :  { %1720 = vmatprep.subr.bf16.mxu1 %v9057_v2  ;;  %1836 = vmatprep.mubr.bf16.mxu0 %v10068_v5  ;;  %v9124_v59 = vld [vmem:[%s12920_s5 + $0x380] ss:$48 sps:$4 sm:$0xff]   ;;  %v9127_v60 = vld [vmem:[%s12920_s5 + $0x378] ss:$48 sps:$4 sm:$0xff]   ;;  %v9132_v61 = vld [vmem:[%s12920_s5 + $0x3e4] ss:$48 sps:$4 sm:$0xff]  }
 0x18b   :  { %1750 = vmatprep.mubr.bf16.mxu1 %v10068_v5  ;;  %v9135_v62 = vld [vmem:[%s12920_s5 + $0x3dc] ss:$48 sps:$4 sm:$0xff]   ;;  %v9130_v63 = vld [vmem:[%s12920_s5 + $0x3e0] ss:$48 sps:$4 sm:$0xff]   ;;  %v9133_v0 = vld [vmem:[%s12920_s5 + $0x3d8] ss:$48 sps:$4 sm:$0xff]  }
 0x18c   :  { %1807 = vmatpush1.bf16.msra.mxu0 %v9052_v3  ;;  %v9138_v1 = vld [vmem:[%s12920_s5 + $0x444] ss:$48 sps:$4 sm:$0xff]   ;;  %v9141_v2 = vld [vmem:[%s12920_s5 + $0x43c] ss:$48 sps:$4 sm:$0xff]   ;;  %v9136_v3 = vld [vmem:[%s12920_s5 + $0x440] ss:$48 sps:$4 sm:$0xff]  }
 0x18d   :  { %1721 = vmatpush1.bf16.msra.mxu1 %v9055_v4  ;;  %1808 = vmatprep.subr.bf16.mxu0 %v9060_v6  ;;  %v9139_v4 = vld [vmem:[%s12920_s5 + $0x438] ss:$48 sps:$4 sm:$0xff]   ;;  %v9144_v6 = vld [vmem:[%s12920_s5 + $0x4a4] ss:$48 sps:$4 sm:$0xff]   ;;  %vm10070_vm1 = vmmov 0   ;;  %vm2281_vm2 = vcmask 1043456  }
 0x18e   :  { %1722 = vmatprep.subr.bf16.mxu1 %v9063_v7  ;;  %v9147_v7 = vld [vmem:[%s12920_s5 + $0x49c] ss:$48 sps:$4 sm:$0xff]   ;;  %vm2253_vm3 = vcmask 64512  }
 0x190   :  { %1809 = vmatpush1.bf16.msra.mxu0 %v9058_v8  ;;  %v9142_v8 = vld [vmem:[%s12920_s5 + $0x4a0] ss:$48 sps:$4 sm:$0xff]  }
 0x191   :  { %1723 = vmatpush1.bf16.msra.mxu1 %v9061_v9  ;;  %1810 = vmatprep.subr.bf16.mxu0 %v9066_v10  ;;  %v9145_v9 = vld [vmem:[%s12920_s5 + $0x498] ss:$48 sps:$4 sm:$0xff]   ;;  %v9150_v10 = vld [vmem:[%s12920_s5 + $0x504] ss:$48 sps:$4 sm:$0xff]  }
 0x192   :  { %1724 = vmatprep.subr.bf16.mxu1 %v9069_v11  ;;  %v9153_v11 = vld [vmem:[%s12920_s5 + $0x4fc] ss:$48 sps:$4 sm:$0xff]  }
 0x194   :  { %1811 = vmatpush1.bf16.msra.mxu0 %v9064_v12  ;;  %v9148_v12 = vld [vmem:[%s12920_s5 + $0x500] ss:$48 sps:$4 sm:$0xff]  }
 0x195   :  { %1725 = vmatpush1.bf16.msra.mxu1 %v9067_v13  ;;  %1933 = vmatprep.subr.bf16.mxu0 %v9072_v14  ;;  %v9151_v13 = vld [vmem:[%s12920_s5 + $0x4f8] ss:$48 sps:$4 sm:$0xff]   ;;  %v9156_v14 = vld [vmem:[%s12920_s5 + $0x564] ss:$48 sps:$4 sm:$0xff]  }
 0x196   :  { %1847 = vmatprep.subr.bf16.mxu1 %v9075_v15  ;;  %v9159_v15 = vld [vmem:[%s12920_s5 + $0x55c] ss:$48 sps:$4 sm:$0xff]  }
 0x197   :  { %7933 = vmatmul.mubr.msk.bf16.vlgmr.msra.gmra.mrb[4].mxu0 %vm50_vm0, %v10346_v55 }
 0x198   :  { %7932 = vmatmul.mubr.msk.bf16.vlgmr.msra.gmra.mrb[4].mxu1 %vm50_vm0, %v10346_v55  ;;  %1934 = vmatpush1.bf16.msra.mxu0 %v9070_v16  ;;  %v9154_v16 = vld [vmem:[%s12920_s5 + $0x560] ss:$48 sps:$4 sm:$0xff]  }
 0x199   :  { %1965 = vmatprep.mubr.bf16.mxu0 %v10344_v43  ;;  %1848 = vmatpush1.bf16.msra.mxu1 %v9073_v17  ;;  %v9157_v17 = vld [vmem:[%s12920_s5 + $0x558] ss:$48 sps:$4 sm:$0xff]  }
 0x19a   :  { %1879 = vmatprep.mubr.bf16.mxu1 %v10344_v43  ;;  %1935 = vmatprep.subr.bf16.mxu0 %v9078_v18  ;;  %v9162_v18 = vld [vmem:[%s12920_s5 + $0x5c4] ss:$48 sps:$4 sm:$0xff]  }
 0x19b   :  { %1849 = vmatprep.subr.bf16.mxu1 %v9081_v19  ;;  %v9165_v19 = vld [vmem:[%s12920_s5 + $0x5bc] ss:$48 sps:$4 sm:$0xff]  }
 0x19c   :  { %1936 = vmatpush1.bf16.msra.mxu0 %v9076_v21  ;;  %v9160_v21 = vld [vmem:[%s12920_s5 + $0x5c0] ss:$48 sps:$4 sm:$0xff]  }
 0x19d   :  { %1850 = vmatpush1.bf16.msra.mxu1 %v9079_v25  ;;  %1937 = vmatprep.subr.bf16.mxu0 %v9084_v26  ;;  %v9163_v25 = vld [vmem:[%s12920_s5 + $0x5b8] ss:$48 sps:$4 sm:$0xff]   ;;  %v9168_v26 = vld [vmem:[%s12920_s5 + $0x624] ss:$48 sps:$4 sm:$0xff]  }
 0x19e   :  { %1851 = vmatprep.subr.bf16.mxu1 %v9087_v27  ;;  %v9171_v27 = vld [vmem:[%s12920_s5 + $0x61c] ss:$48 sps:$4 sm:$0xff]  }
 0x1a0   :  { %1938 = vmatpush1.bf16.msra.mxu0 %v9082_v28  ;;  %v9166_v28 = vld [vmem:[%s12920_s5 + $0x620] ss:$48 sps:$4 sm:$0xff]  }
 0x1a1   :  { %1852 = vmatpush1.bf16.msra.mxu1 %v9085_v29  ;;  %1939 = vmatprep.subr.bf16.mxu0 %v9090_v30  ;;  %v9169_v29 = vld [vmem:[%s12920_s5 + $0x618] ss:$48 sps:$4 sm:$0xff]   ;;  %v9174_v30 = vld [vmem:[%s12920_s5 + $0x684] ss:$48 sps:$4 sm:$0xff]  }
 0x1a2   :  { %1853 = vmatprep.subr.bf16.mxu1 %v9093_v31  ;;  %v9177_v31 = vld [vmem:[%s12920_s5 + $0x67c] ss:$48 sps:$4 sm:$0xff]  }
 0x1a4   :  { %1940 = vmatpush1.bf16.msra.mxu0 %v9088_v32  ;;  %v9172_v32 = vld [vmem:[%s12920_s5 + $0x680] ss:$48 sps:$4 sm:$0xff]  }
 0x1a5   :  { %1854 = vmatpush1.bf16.msra.mxu1 %v9091_v36  ;;  %1941 = vmatprep.subr.bf16.mxu0 %v9096_v37  ;;  %v9175_v36 = vld [vmem:[%s12920_s5 + $0x678] ss:$48 sps:$4 sm:$0xff]   ;;  %v9180_v37 = vld [vmem:[%s12920_s5 + $0x6e4] ss:$48 sps:$4 sm:$0xff]  }
 0x1a6   :  { %1855 = vmatprep.subr.bf16.mxu1 %v9099_v38  ;;  %v9183_v38 = vld [vmem:[%s12920_s5 + $0x6dc] ss:$48 sps:$4 sm:$0xff]  }
 0x1a8   :  { %1942 = vmatpush1.bf16.msra.mxu0 %v9094_v39  ;;  %v9178_v39 = vld [vmem:[%s12920_s5 + $0x6e0] ss:$48 sps:$4 sm:$0xff]  }
 0x1a9   :  { %1856 = vmatpush1.bf16.msra.mxu1 %v9097_v40  ;;  %1943 = vmatprep.subr.bf16.mxu0 %v9102_v34  ;;  %v9181_v40 = vld [vmem:[%s12920_s5 + $0x6d8] ss:$48 sps:$4 sm:$0xff]   ;;  %v9186_v34 = vld [vmem:[%s12920_s5 + $0x744] ss:$48 sps:$4 sm:$0xff]  }
 0x1aa   :  { %1857 = vmatprep.subr.bf16.mxu1 %v9105_v44  ;;  %v9189_v44 = vld [vmem:[%s12920_s5 + $0x73c] ss:$48 sps:$4 sm:$0xff]  }
 0x1ac   :  { %1944 = vmatpush1.bf16.msra.mxu0 %v9100_v45  ;;  %v9184_v45 = vld [vmem:[%s12920_s5 + $0x740] ss:$48 sps:$4 sm:$0xff]  }
 0x1ad   :  { %1858 = vmatpush1.bf16.msra.mxu1 %v9103_v35  ;;  %1945 = vmatprep.subr.bf16.mxu0 %v9108_v46  ;;  %v9187_v35 = vld [vmem:[%s12920_s5 + $0x738] ss:$48 sps:$4 sm:$0xff]   ;;  %v9192_v46 = vld [vmem:[%s12920_s5 + $0x2c] ss:$48 sps:$4 sm:$0xff]  }
 0x1ae   :  { %1859 = vmatprep.subr.bf16.mxu1 %v9111_v47  ;;  %v9190_v47 = vld [vmem:[%s12920_s5 + $0x28] ss:$48 sps:$4 sm:$0xff]  }
 0x1b0   :  { %1946 = vmatpush1.bf16.msra.mxu0 %v9106_v33  ;;  %v9195_v33 = vld [vmem:[%s12920_s5 + $0x8c] ss:$48 sps:$4 sm:$0xff]  }
 0x1b1   :  { %1860 = vmatpush1.bf16.msra.mxu1 %v9109_v48  ;;  %1947 = vmatprep.subr.bf16.mxu0 %v9114_v49  ;;  %v9193_v48 = vld [vmem:[%s12920_s5 + $0x88] ss:$48 sps:$4 sm:$0xff]   ;;  %v9198_v49 = vld [vmem:[%s12920_s5 + $0xec] ss:$48 sps:$4 sm:$0xff]  }
 0x1b2   :  { %1861 = vmatprep.subr.bf16.mxu1 %v9117_v50  ;;  %v9196_v50 = vld [vmem:[%s12920_s5 + $0xe8] ss:$48 sps:$4 sm:$0xff]  }
 0x1b4   :  { %1948 = vmatpush1.bf16.msra.mxu0 %v9112_v51  ;;  %v9201_v51 = vld [vmem:[%s12920_s5 + $0x14c] ss:$48 sps:$4 sm:$0xff]  }
 0x1b5   :  { %1862 = vmatpush1.bf16.msra.mxu1 %v9115_v52  ;;  %1949 = vmatprep.subr.bf16.mxu0 %v9120_v42  ;;  %v9199_v52 = vld [vmem:[%s12920_s5 + $0x148] ss:$48 sps:$4 sm:$0xff]   ;;  %v9204_v42 = vld [vmem:[%s12920_s5 + $0x1ac] ss:$48 sps:$4 sm:$0xff]  }
 0x1b6   :  { %1863 = vmatprep.subr.bf16.mxu1 %v9123_v53  ;;  %v9202_v53 = vld [vmem:[%s12920_s5 + $0x1a8] ss:$48 sps:$4 sm:$0xff]  }
 0x1b8   :  { %1950 = vmatpush1.bf16.msra.mxu0 %v9118_v54  ;;  %v9207_v54 = vld [vmem:[%s12920_s5 + $0x20c] ss:$48 sps:$4 sm:$0xff]  }
 0x1b9   :  { %1864 = vmatpush1.bf16.msra.mxu1 %v9121_v41  ;;  %1951 = vmatprep.subr.bf16.mxu0 %v9126_v56  ;;  %v9205_v41 = vld [vmem:[%s12920_s5 + $0x208] ss:$48 sps:$4 sm:$0xff]   ;;  %v9210_v56 = vld [vmem:[%s12920_s5 + $0x26c] ss:$48 sps:$4 sm:$0xff]  }
 0x1ba   :  { %1865 = vmatprep.subr.bf16.mxu1 %v9129_v58  ;;  %v9208_v58 = vld [vmem:[%s12920_s5 + $0x268] ss:$48 sps:$4 sm:$0xff]  }
 0x1bc   :  { %1952 = vmatpush1.bf16.msra.mxu0 %v9124_v59  ;;  %v9213_v59 = vld [vmem:[%s12920_s5 + $0x2cc] ss:$48 sps:$4 sm:$0xff]  }
 0x1bd   :  { %1866 = vmatpush1.bf16.msra.mxu1 %v9127_v60  ;;  %1953 = vmatprep.subr.bf16.mxu0 %v9132_v61  ;;  %v9211_v60 = vld [vmem:[%s12920_s5 + $0x2c8] ss:$48 sps:$4 sm:$0xff]   ;;  %v9216_v61 = vld [vmem:[%s12920_s5 + $0x32c] ss:$48 sps:$4 sm:$0xff]  }
 0x1be   :  { %1867 = vmatprep.subr.bf16.mxu1 %v9135_v62  ;;  %v9214_v62 = vld [vmem:[%s12920_s5 + $0x328] ss:$48 sps:$4 sm:$0xff]  }
 0x1c0   :  { %1954 = vmatpush1.bf16.msra.mxu0 %v9130_v63  ;;  %v9219_v63 = vld [vmem:[%s12920_s5 + $0x38c] ss:$48 sps:$4 sm:$0xff]  }
 0x1c1   :  { %1868 = vmatpush1.bf16.msra.mxu1 %v9133_v0  ;;  %1955 = vmatprep.subr.bf16.mxu0 %v9138_v1  ;;  %v9217_v0 = vld [vmem:[%s12920_s5 + $0x388] ss:$48 sps:$4 sm:$0xff]   ;;  %v9222_v1 = vld [vmem:[%s12920_s5 + $0x3ec] ss:$48 sps:$4 sm:$0xff]  }
 0x1c2   :  { %1869 = vmatprep.subr.bf16.mxu1 %v9141_v2  ;;  %v9220_v2 = vld [vmem:[%s12920_s5 + $0x3e8] ss:$48 sps:$4 sm:$0xff]  }
 0x1c4   :  { %1956 = vmatpush1.bf16.msra.mxu0 %v9136_v3  ;;  %v9225_v3 = vld [vmem:[%s12920_s5 + $0x44c] ss:$48 sps:$4 sm:$0xff]  }
 0x1c5   :  { %1870 = vmatpush1.bf16.msra.mxu1 %v9139_v4  ;;  %1957 = vmatprep.subr.bf16.mxu0 %v9144_v6  ;;  %v9223_v4 = vld [vmem:[%s12920_s5 + $0x448] ss:$48 sps:$4 sm:$0xff]   ;;  %v9228_v6 = vld [vmem:[%s12920_s5 + $0x4ac] ss:$48 sps:$4 sm:$0xff]  }
 0x1c6   :  { %1871 = vmatprep.subr.bf16.mxu1 %v9147_v7  ;;  %v9226_v7 = vld [vmem:[%s12920_s5 + $0x4a8] ss:$48 sps:$4 sm:$0xff]  }
 0x1c8   :  { %1958 = vmatpush1.bf16.msra.mxu0 %v9142_v8  ;;  %v9231_v8 = vld [vmem:[%s12920_s5 + $0x50c] ss:$48 sps:$4 sm:$0xff]  }
 0x1c9   :  { %1872 = vmatpush1.bf16.msra.mxu1 %v9145_v9  ;;  %1959 = vmatprep.subr.bf16.mxu0 %v9150_v10  ;;  %v9229_v9 = vld [vmem:[%s12920_s5 + $0x508] ss:$48 sps:$4 sm:$0xff]  }
 0x1ca   :  { %1873 = vmatprep.subr.bf16.mxu1 %v9153_v11  ;;  %v9234_v11 = vld [vmem:[%s12920_s5 + $0x56c] ss:$48 sps:$4 sm:$0xff]  }
 0x1cc   :  { %1960 = vmatpush1.bf16.msra.mxu0 %v9148_v12 }
 0x1cd   :  { %1874 = vmatpush1.bf16.msra.mxu1 %v9151_v13  ;;  %1961 = vmatprep.subr.bf16.mxu0 %v9156_v14 }
 0x1ce   :  { %1875 = vmatprep.subr.bf16.mxu1 %v9159_v15 }
 0x1d0   :  { %1962 = vmatpush1.bf16.msra.mxu0 %v9154_v16 }
 0x1d1   :  { %1876 = vmatpush1.bf16.msra.mxu1 %v9157_v17  ;;  %1963 = vmatprep.subr.bf16.mxu0 %v9162_v18 }
 0x1d2   :  { %1877 = vmatprep.subr.bf16.mxu1 %v9165_v19 }
 0x1d4   :  { %1964 = vmatpush1.bf16.msra.mxu0 %v9160_v21  ;;  %v9232_v21 = vld [vmem:[%s12920_s5 + $0x568] ss:$48 sps:$4 sm:$0xff]  }
 0x1d5   :  { %1878 = vmatpush1.bf16.msra.mxu1 %v9163_v25  ;;  %1976 = vmatprep.subr.bf16.mxu0 %v9168_v26 }
 0x1d6   :  { %1890 = vmatprep.subr.bf16.mxu1 %v9171_v27  ;;  %v9237_v27 = vld [vmem:[%s12920_s5 + $0x5cc] ss:$48 sps:$4 sm:$0xff]  }
 0x1d7   :  { %1966 = vmatmul.mubr.bf16.vlgmr.msra.gmra.mrb[8].mxu0 %v10354_v57 }
 0x1d8   :  { %1880 = vmatmul.mubr.bf16.vlgmr.msra.gmra.mrb[8].mxu1 %v10354_v57  ;;  %1977 = vmatpush1.bf16.msra.mxu0 %v9166_v28 }
 0x1d9   :  { %1891 = vmatpush1.bf16.msra.mxu1 %v9169_v29  ;;  %1978 = vmatprep.subr.bf16.mxu0 %v9174_v30 }
 0x1da   :  { %1892 = vmatprep.subr.bf16.mxu1 %v9177_v31  ;;  %2008 = vmatprep.mubr.bf16.mxu0 %v10068_v5  ;;  %v9235_v31 = vld [vmem:[%s12920_s5 + $0x5c8] ss:$48 sps:$4 sm:$0xff]  }
 0x1db   :  { %1922 = vmatprep.mubr.bf16.mxu1 %v10068_v5 }
 0x1dc   :  { %1979 = vmatpush1.bf16.msra.mxu0 %v9172_v32  ;;  %v9240_v32 = vld [vmem:[%s12920_s5 + $0x62c] ss:$48 sps:$4 sm:$0xff]  }
 0x1dd   :  { %1893 = vmatpush1.bf16.msra.mxu1 %v9175_v36  ;;  %1980 = vmatprep.subr.bf16.mxu0 %v9180_v37  ;;  %v9238_v36 = vld [vmem:[%s12920_s5 + $0x628] ss:$48 sps:$4 sm:$0xff]   ;;  %v9243_v37 = vld [vmem:[%s12920_s5 + $0x68c] ss:$48 sps:$4 sm:$0xff]  }
 0x1de   :  { %1894 = vmatprep.subr.bf16.mxu1 %v9183_v38  ;;  %v9241_v38 = vld [vmem:[%s12920_s5 + $0x688] ss:$48 sps:$4 sm:$0xff]  }
 0x1e0   :  { %1981 = vmatpush1.bf16.msra.mxu0 %v9178_v39  ;;  %v9246_v39 = vld [vmem:[%s12920_s5 + $0x6ec] ss:$48 sps:$4 sm:$0xff]  }
 0x1e1   :  { %1895 = vmatpush1.bf16.msra.mxu1 %v9181_v40  ;;  %1982 = vmatprep.subr.bf16.mxu0 %v9186_v34  ;;  %v9244_v40 = vld [vmem:[%s12920_s5 + $0x6e8] ss:$48 sps:$4 sm:$0xff]  }
 0x1e2   :  { %1896 = vmatprep.subr.bf16.mxu1 %v9189_v44  ;;  %v9247_v34 = vld [vmem:[%s12920_s5 + $0x748] ss:$48 sps:$4 sm:$0xff]  }
 0x1e4   :  { %1983 = vmatpush1.bf16.msra.mxu0 %v9184_v45 }
 0x1e5   :  { %1897 = vmatpush1.bf16.msra.mxu1 %v9187_v35 }
 0x1e6   :  { %2019 = vmatprep.subr.bf16.mxu1 %v9192_v46 }
 0x1e7   :  { %7935 = vmatmul.mubr.msk.bf16.vlgmr.msra.gmra.mrb[8].mxu0 %vm50_vm0, %v10346_v55 }
 0x1e8   :  { %7934 = vmatmul.mubr.msk.bf16.vlgmr.msra.gmra.mrb[8].mxu1 %vm50_vm0, %v10346_v55 }
 0x1e9   :  { %2020 = vmatpush1.bf16.msra.mxu1 %v9190_v47  ;;  %2051 = vmatprep.mubr.bf16.mxu1 %v10344_v43  ;;  %v10069_v43 = vmov 0.0  }
 0x1ea   :  { %2021 = vmatprep.subr.bf16.mxu1 %v9195_v33  ;;  %8708 = vmatprep.subr.bf16.mxu0 %v10069_v43 }
 0x1eb   :  { %8710 = vmatprep.mubr.msk.bf16.mxu0 %vm10070_vm1, %v10069_v43 }
 0x1ed   :  { %2022 = vmatpush1.bf16.msra.mxu1 %v9193_v48 }
 0x1ee   :  { %2023 = vmatprep.subr.bf16.mxu1 %v9198_v49 }
 0x1f1   :  { %2024 = vmatpush1.bf16.msra.mxu1 %v9196_v50 }
 0x1f2   :  { %2025 = vmatprep.subr.bf16.mxu1 %v9201_v51 }
 0x1f5   :  { %2026 = vmatpush1.bf16.msra.mxu1 %v9199_v52 }
 0x1f6   :  { %2027 = vmatprep.subr.bf16.mxu1 %v9204_v42 }
 0x1f9   :  { %2028 = vmatpush1.bf16.msra.mxu1 %v9202_v53 }
 0x1fa   :  { %2029 = vmatprep.subr.bf16.mxu1 %v9207_v54 }
 0x1fd   :  { %2030 = vmatpush1.bf16.msra.mxu1 %v9205_v41 }
 0x1fe   :  { %2031 = vmatprep.subr.bf16.mxu1 %v9210_v56 }
 0x201   :  { %2032 = vmatpush1.bf16.msra.mxu1 %v9208_v58 }
 0x202   :  { %2033 = vmatprep.subr.bf16.mxu1 %v9213_v59 }
 0x205   :  { %2034 = vmatpush1.bf16.msra.mxu1 %v9211_v60 }
 0x206   :  { %2035 = vmatprep.subr.bf16.mxu1 %v9216_v61 }
 0x209   :  { %2036 = vmatpush1.bf16.msra.mxu1 %v9214_v62 }
 0x20a   :  { %2037 = vmatprep.subr.bf16.mxu1 %v9219_v63 }
 0x20d   :  { %2038 = vmatpush1.bf16.msra.mxu1 %v9217_v0 }
 0x20e   :  { %2039 = vmatprep.subr.bf16.mxu1 %v9222_v1 }
 0x211   :  { %2040 = vmatpush1.bf16.msra.mxu1 %v9220_v2 }
 0x212   :  { %2041 = vmatprep.subr.bf16.mxu1 %v9225_v3 }
 0x215   :  { %2042 = vmatpush1.bf16.msra.mxu1 %v9223_v4 }
 0x216   :  { %2043 = vmatprep.subr.bf16.mxu1 %v9228_v6 }
 0x219   :  { %2044 = vmatpush1.bf16.msra.mxu1 %v9226_v7 }
 0x21a   :  { %v1666_v10 = vpop.f32.mrb[0].mxu0  ;;  %2045 = vmatprep.subr.bf16.mxu1 %v9231_v8 }
 0x21b   :  { %v1623_v12 = vpop.f32.mrb[0].mxu1  ;;  %v1668_v13 = vpop.f32.mrb[1].mxu0 }
 0x21c   :  { %v1667_v14 = vadd.f32 %v1666_v10, %v1623_v12  ;;  %v1625_v15 = vpop.f32.mrb[1].mxu1  ;;  %v1670_v16 = vpop.f32.mrb[2].mxu0 }
 0x21d   :  { %v1669_v17 = vadd.f32 %v1668_v13, %v1625_v15  ;;  %2046 = vmatpush1.bf16.msra.mxu1 %v9229_v9  ;;  %v1627_v18 = vpop.f32.mrb[2].mxu1  ;;  %v1672_v19 = vpop.f32.mrb[3].mxu0 }
 0x21e   :  { %v1671_v25 = vadd.f32 %v1670_v16, %v1627_v18  ;;  %v1629_v26 = vpop.f32.mrb[3].mxu1  ;;  %2047 = vmatprep.subr.bf16.mxu1 %v9234_v11 }
 0x21f   :  { %v10942_v28 = vpack.c.bf16 %v1669_v17, %v1667_v14  ;;  %v1673_v29 = vadd.f32 %v1672_v19, %v1629_v26 }
 0x221   :  { %v10944_v30 = vpack.c.bf16 %v1673_v29, %v1671_v25  ;;  %2048 = vmatpush1.bf16.msra.mxu1 %v9232_v21 }
 0x222   :  { %2049 = vmatprep.subr.bf16.mxu1 %v9237_v27 }
 0x225   :  { %2050 = vmatpush1.bf16.msra.mxu1 %v9235_v31 }
 0x226   :  { %2062 = vmatprep.subr.bf16.mxu1 %v9240_v32 }
 0x228   :  { %2052 = vmatmul.mubr.bf16.vlgmr.msra.gmra.mrb[12].mxu1 %v10354_v57  ;;  %v9249_v57 = vld [vmem:[%s12920_s5 + $0x74c] ss:$48 sps:$4 sm:$0xff]  }
 0x229   :  { %2063 = vmatpush1.bf16.msra.mxu1 %v9238_v36  ;;  %2094 = vmatprep.mubr.bf16.mxu1 %v10068_v5 }
 0x22a   :  { %2064 = vmatprep.subr.bf16.mxu1 %v9243_v37 }
 0x22d   :  { %2065 = vmatpush1.bf16.msra.mxu1 %v9241_v38 }
 0x22e   :  { %2066 = vmatprep.subr.bf16.mxu1 %v9246_v39 }
 0x231   :  { %2067 = vmatpush1.bf16.msra.mxu1 %v9244_v40 }
 0x232   :  { %2068 = vmatprep.subr.bf16.mxu1 %v9249_v57 }
 0x235   :  { %2069 = vmatpush1.bf16.msra.mxu1 %v9247_v34 }
 0x236   :  { %8696 = vmatprep.subr.bf16.mxu1 %v10069_v43 }
 0x238   :  { %7936 = vmatmul.mubr.msk.bf16.vlgmr.msra.gmra.mrb[12].mxu1 %vm50_vm0, %v10346_v55 }
 0x239   :  { %8698 = vmatprep.mubr.msk.bf16.mxu1 %vm10070_vm1, %v10069_v43 }
 0x26a   :  { %v1838_v44 = vpop.f32.mrb[4].mxu0 }
 0x26b   :  { %v1752_v45 = vpop.f32.mrb[4].mxu1  ;;  %v1840_v35 = vpop.f32.mrb[5].mxu0 }
 0x26c   :  { %v10980_v46 = vpack.c.bf16 %v1840_v35, %v1838_v44  ;;  %v1754_v47 = vpop.f32.mrb[5].mxu1  ;;  %v1842_v33 = vpop.f32.mrb[6].mxu0 }
 0x26d   :  { %v10982_v48 = vpack.c.bf16 %v1754_v47, %v1752_v45  ;;  %v1756_v49 = vpop.f32.mrb[6].mxu1  ;;  %v1844_v50 = vpop.f32.mrb[7].mxu0 }
 0x26e   :  { %v10984_v51 = vpack.c.bf16 %v1844_v50, %v1842_v33  ;;  %v1758_v52 = vpop.f32.mrb[7].mxu1  ;;  %8697 = vmatpush3.bf16.xpose.msra.mxu1 %v10980_v46  ;;  %v2374_v45 = vrot.slane %v10980_v46, 4 }
 0x26f   :  { %v10987_v55 = vpack.c.bf16 %v1758_v52, %v1756_v49  ;;  %8702 = vmatprep.subr.bf16.mxu1 %v10069_v43  ;;  %v2372_v49 = vrot.slane %v10942_v28, 4 }
 0x270   :  { %v2418_v52 = vrot.slane %v10984_v51, 4 }
 0x275   :  { %8699 = vmatmul.mubr.bf16.vlgmr.msra.gmra.mrb[16].mxu1 %v10942_v28 }
 0x276   :  { %8703 = vmatpush3.bf16.xpose.msra.mxu1 %v10984_v51  ;;  %8704 = vmatprep.mubr.msk.bf16.mxu1 %vm10070_vm1, %v10069_v43  ;;  %v2416_v51 = vrot.slane %v10944_v30, 4 }
 0x277   :  { %8714 = vmatprep.subr.bf16.mxu1 %v10069_v43 }
 0x27d   :  { %8705 = vmatmul.mubr.bf16.vlgmr.msra.gmra.mrb[20].mxu1 %v10944_v30 }
 0x27e   :  { %8716 = vmatprep.mubr.msk.bf16.mxu1 %vm10070_vm1, %v10069_v43 }
 0x2ba   :  { %v2010_v42 = vpop.f32.mrb[8].mxu0 }
 0x2bb   :  { %v1924_v53 = vpop.f32.mrb[8].mxu1  ;;  %v2012_v54 = vpop.f32.mrb[9].mxu0 }
 0x2bc   :  { %v10998_v41 = vpack.c.bf16 %v2012_v54, %v2010_v42  ;;  %v1926_v56 = vpop.f32.mrb[9].mxu1  ;;  %v2014_v58 = vpop.f32.mrb[10].mxu0 }
 0x2bd   :  { %v11000_v59 = vpack.c.bf16 %v1926_v56, %v1924_v53  ;;  %v1928_v60 = vpop.f32.mrb[10].mxu1  ;;  %v2016_v61 = vpop.f32.mrb[11].mxu0 }
 0x2be   :  { %v2283_v62 = vsel %vm2281_vm2, %v10998_v41, 0  ;;  %v11004_v63 = vpack.c.bf16 %v2016_v61, %v2014_v58  ;;  %v1930_v0 = vpop.f32.mrb[11].mxu1  ;;  %v2484_v47 = vrot.slane %v10998_v41, 4 }
 0x2bf   :  { %v11006_v1 = vpack.c.bf16 %v1930_v0, %v1928_v60  ;;  %8709 = vmatpush3.bf16.msra.mxu0 %v2283_v62 }
 0x2c0   :  { %v2329_v2 = vsel %vm2281_vm2, %v11004_v63, 0  ;;  %8720 = vmatprep.subr.bf16.mxu0 %v10069_v43  ;;  %v2489_v46 = vsel %vm2281_vm2, %v2484_v47, 0  ;;  %v2531_v28 = vrot.slane %v11004_v63, 4 }
 0x2c1   :  { %8715 = vmatpush3.bf16.msra.mxu1 %v2329_v2 }
 0x2c2   :  { %8726 = vmatprep.subr.bf16.mxu1 %v10069_v43  ;;  %v2536_v42 = vsel %vm2281_vm2, %v2531_v28, 0 }
 0x30b   :  { %v2096_v3 = vpop.f32.mrb[12].mxu1 }
 0x30c   :  { %v2098_v4 = vpop.f32.mrb[13].mxu1 }
 0x30d   :  { %v11012_v6 = vpack.c.bf16 %v2098_v4, %v2096_v3  ;;  %v2100_v7 = vpop.f32.mrb[14].mxu1 }
 0x30e   :  { %v2102_v8 = vpop.f32.mrb[15].mxu1 }
 0x30f   :  { %v11014_v9 = vpack.c.bf16 %v2102_v8, %v2100_v7 }
 0x348   :  { %v2207_v10 = vpop.f32.mrb[16].mxu1 }
 0x349   :  { %v8700_v11 = vpop.f32.mrb[17].mxu1  ;;  %v2254_v12 = vsel %vm2253_vm3, %v2207_v10, -inf }
 0x34a   :  { %2255 = vmax.xlane.f32.xlu0 %v2254_v12  ;;  %v2210_v13 = vpop.f32.mrb[18].mxu1 }
 0x34b   :  { %v8701_v14 = vpop.f32.mrb[19].mxu1 }
 0x350   :  { %v2247_v15 = vpop.f32.mrb[20].mxu1 }
 0x351   :  { %v8706_v16 = vpop.f32.mrb[21].mxu1  ;;  %v2257_v17 = vsel %vm2253_vm3, %v2247_v15, -inf }
 0x352   :  { %2258 = vmax.xlane.f32.xlu1 %v2257_v17  ;;  %v2250_v18 = vpop.f32.mrb[22].mxu1 }
 0x353   :  { %v8707_v19 = vpop.f32.mrb[23].mxu1 }
 0x3d7   :  { %v2256_v21 = vpop.xlane.xlu0 %2255 }
 0x3d8   :  { %v2260_v25 = vsub.f32 %v2207_v10, %v2256_v21 }
 0x3da   :  { %v2262_v26 = vmul.f32 1.442695, %v2260_v25 }
 0x3dc   :  { %10002 = vpow2.f32 %v2262_v26 }
 0x3df   :  { %v2259_v27 = vpop.xlane.xlu1 %2258 }
 0x3e0   :  { %v2261_v29 = vsub.f32 %v2247_v15, %v2259_v27 }
 0x3e2   :  { %v2264_v31 = vmul.f32 1.442695, %v2261_v29 }
 0x3e4   :  { %10004 = vpow2.f32 %v2264_v31 }
 0x3e6   :  { %v10003_v32 = vpop.eup %10002 }
 0x3e7   :  { %v2266_v36 = vsel %vm2253_vm3, %v10003_v32, 0.0 }
 0x3e8   :  { %2267 = vadd.xlane.f32.xlu0 %v2266_v36 }
 0x3ee   :  { %v10005_v37 = vpop.eup %10004 }
 0x3ef   :  { %v2269_v38 = vsel %vm2253_vm3, %v10005_v37, 0.0 }
 0x3f0   :  { %2270 = vadd.xlane.f32.xlu1 %v2269_v38 }
 0x475   :  { %v2268_v39 = vpop.xlane.xlu0 %2267 }
 0x476   :  { %10006 = vrcp.f32 %v2268_v39 }
 0x47d   :  { %v2271_v40 = vpop.xlane.xlu1 %2270 }
 0x47e   :  { %10008 = vrcp.f32 %v2271_v40  ;;  %v2687_v40 = vsel %vm2281_vm2, %v11012_v6, 0 }
 0x480   :  { %v10007_v57 = vpop.eup %10006 }
 0x481   :  { %v2273_v34 = vmul.f32 %v10007_v57, %v10003_v32  ;;  %v2733_v57 = vsel %vm2281_vm2, %v11014_v9, 0 }
 0x483   :  { %v2276_v44 = vpack.c.bf16 %v2273_v34, %v2273_v34 }
 0x485   :  { %8711 = vmatmul.mubr.msk.bf16.vlgmr.msra.gmra.mrb[12].mxu0 %vm2253_vm3, %v2276_v44 }
 0x486   :  { %8721 = vmatpush3.bf16.xpose.msra.mxu0 %v2374_v45  ;;  %8722 = vmatprep.mubr.msk.bf16.mxu0 %vm10070_vm1, %v10069_v43 }
 0x487   :  { %8732 = vmatprep.subr.bf16.mxu0 %v10069_v43 }
 0x488   :  { %v10009_v35 = vpop.eup %10008 }
 0x489   :  { %v2275_v33 = vmul.f32 %v10009_v35, %v10005_v37 }
 0x48b   :  { %v2277_v50 = vpack.c.bf16 %v2275_v33, %v2275_v33 }
 0x48d   :  { %8717 = vmatmul.mubr.msk.bf16.vlgmr.msra.gmra.mrb[24].mxu1 %vm2253_vm3, %v2277_v50  ;;  %8723 = vmatmul.mubr.bf16.vlgmr.msra.gmra.mrb[16].mxu0 %v2372_v49 }
 0x48e   :  { %8727 = vmatpush3.bf16.xpose.msra.mxu1 %v2418_v52  ;;  %8733 = vmatpush3.bf16.msra.mxu0 %v2489_v46 }
 0x48f   :  { %8728 = vmatprep.mubr.msk.bf16.mxu1 %vm10070_vm1, %v10069_v43  ;;  %8738 = vmatprep.subr.bf16.mxu1 %v10069_v43 }
 0x490   :  { %8734 = vmatprep.mubr.msk.bf16.mxu0 %vm10070_vm1, %v10069_v43  ;;  %8744 = vmatprep.subr.bf16.mxu0 %v10069_v43 }
 0x495   :  { %8729 = vmatmul.mubr.bf16.vlgmr.msra.gmra.mrb[28].mxu1 %v2416_v51 }
 0x496   :  { %8739 = vmatpush3.bf16.msra.mxu1 %v2536_v42  ;;  %8740 = vmatprep.mubr.msk.bf16.mxu1 %vm10070_vm1, %v10069_v43 }
 0x497   :  { %8750 = vmatprep.subr.bf16.mxu1 %v10069_v43 }
 0x558   :  { %v2319_v53 = vpop.f32.mrb[12].mxu0 }
 0x559   :  { %v8712_v54 = vpop.f32.mrb[13].mxu0 }
 0x55a   :  { %v2322_v41 = vpop.f32.mrb[14].mxu0 }
 0x55b   :  { %v8713_v56 = vpop.f32.mrb[15].mxu0 }
 0x560   :  { %v2365_v58 = vpop.f32.mrb[24].mxu1  ;;  %v2410_v60 = vpop.f32.mrb[16].mxu0 }
 0x561   :  { %v11042_v61 = vpack.c.bf16 %v2365_v58, %v2319_v53  ;;  %v8718_v62 = vpop.f32.mrb[25].mxu1  ;;  %v8724_v63 = vpop.f32.mrb[17].mxu0  ;;  %v2460_v30 = vsel %vm2253_vm3, %v2410_v60, -inf }
 0x562   :  { %2461 = vmax.xlane.f32.xlu0 %v2460_v30  ;;  %v2368_v0 = vpop.f32.mrb[26].mxu1  ;;  %v2413_v2 = vpop.f32.mrb[18].mxu0 }
 0x563   :  { %v8719_v3 = vpop.f32.mrb[27].mxu1  ;;  %v8725_v4 = vpop.f32.mrb[19].mxu0 }
 0x568   :  { %v2454_v7 = vpop.f32.mrb[28].mxu1 }
 0x569   :  { %v8730_v8 = vpop.f32.mrb[29].mxu1  ;;  %v2463_v10 = vsel %vm2253_vm3, %v2454_v7, -inf }
 0x56a   :  { %2464 = vmax.xlane.f32.xlu1 %v2463_v10  ;;  %v2457_v11 = vpop.f32.mrb[30].mxu1 }
 0x56b   :  { %v8731_v12 = vpop.f32.mrb[31].mxu1 }
 0x5ef   :  { %v2462_v13 = vpop.xlane.xlu0 %2461 }
 0x5f0   :  { %v2466_v14 = vsub.f32 %v2410_v60, %v2462_v13 }
 0x5f2   :  { %v2468_v15 = vmul.f32 1.442695, %v2466_v14 }
 0x5f4   :  { %10010 = vpow2.f32 %v2468_v15 }
 0x5f7   :  { %v2465_v16 = vpop.xlane.xlu1 %2464 }
 0x5f8   :  { %v2467_v17 = vsub.f32 %v2454_v7, %v2465_v16  ;;  %v2778_v16 = vrot.slane %v11000_v59, 4 }
 0x5fa   :  { %v2470_v18 = vmul.f32 1.442695, %v2467_v17 }
 0x5fc   :  { %10012 = vpow2.f32 %v2470_v18  ;;  %v2888_v18 = vrot.slane %v11012_v6, 4  ;;  %v2820_v6 = vrot.slane %v10987_v55, 4 }
 0x5fe   :  { %v10011_v19 = vpop.eup %10010 }
 0x5ff   :  { %v2472_v21 = vsel %vm2253_vm3, %v10011_v19, 0.0 }
 0x600   :  { %2473 = vadd.xlane.f32.xlu0 %v2472_v21  ;;  %v2776_v21 = vrot.slane %v10982_v48, 4 }
 0x606   :  { %v10013_v25 = vpop.eup %10012 }
 0x607   :  { %v2475_v26 = vsel %vm2253_vm3, %v10013_v25, 0.0 }
 0x608   :  { %2476 = vadd.xlane.f32.xlu1 %v2475_v26  ;;  %v2822_v26 = vrot.slane %v11006_v1, 4 }
 0x68d   :  { %v2474_v27 = vpop.xlane.xlu0 %2473 }
 0x68e   :  { %10014 = vrcp.f32 %v2474_v27 }
 0x695   :  { %v2477_v29 = vpop.xlane.xlu1 %2476 }
 0x696   :  { %10016 = vrcp.f32 %v2477_v29 }
 0x698   :  { %v10015_v31 = vpop.eup %10014 }
 0x699   :  { %v2479_v32 = vmul.f32 %v10015_v31, %v10011_v19 }
 0x69b   :  { %v2482_v36 = vpack.c.bf16 %v2479_v32, %v2479_v32 }
 0x69d   :  { %8735 = vmatmul.mubr.msk.bf16.vlgmr.msra.gmra.mrb[20].mxu0 %vm2253_vm3, %v2482_v36 }
 0x69e   :  { %8745 = vmatpush3.bf16.xpose.msra.mxu0 %v11000_v59  ;;  %8746 = vmatprep.mubr.msk.bf16.mxu0 %vm10070_vm1, %v10069_v43  ;;  %v2893_v59 = vsel %vm2281_vm2, %v2888_v18, 0  ;;  %v9265_v18 = vld [vmem:[%s12921_s6 + $0x20] ss:$12 sps:$4 sm:$0xff]  }
 0x69f   :  { %8756 = vmatprep.subr.bf16.mxu0 %v10069_v43 }
 0x6a0   :  { %v10017_v37 = vpop.eup %10016 }
 0x6a1   :  { %v2481_v38 = vmul.f32 %v10017_v37, %v10013_v25 }
 0x6a3   :  { %v2483_v39 = vpack.c.bf16 %v2481_v38, %v2481_v38 }
 0x6a5   :  { %8741 = vmatmul.mubr.msk.bf16.vlgmr.msra.gmra.mrb[32].mxu1 %vm2253_vm3, %v2483_v39  ;;  %8747 = vmatmul.mubr.bf16.vlgmr.msra.gmra.mrb[24].mxu0 %v10982_v48  ;;  %v2935_v48 = vrot.slane %v11014_v9, 4 }
 0x6a6   :  { %8751 = vmatpush3.bf16.xpose.msra.mxu1 %v11006_v1  ;;  %8757 = vmatpush3.bf16.msra.mxu0 %v2687_v40 }
 0x6a7   :  { %8752 = vmatprep.mubr.msk.bf16.mxu1 %vm10070_vm1, %v10069_v43  ;;  %8762 = vmatprep.subr.bf16.mxu1 %v10069_v43  ;;  %v2940_v1 = vsel %vm2281_vm2, %v2935_v48, 0  ;;  %v9271_v48 = vld [vmem:[%s12921_s6 + $0x78] ss:$12 sps:$4 sm:$0xff]  }
 0x6a8   :  { %8758 = vmatprep.mubr.msk.bf16.mxu0 %vm10070_vm1, %v10069_v43  ;;  %8768 = vmatprep.subr.bf16.mxu0 %v10069_v43 }
 0x6ad   :  { %8753 = vmatmul.mubr.bf16.vlgmr.msra.gmra.mrb[36].mxu1 %v10987_v55 }
 0x6ae   :  { %8763 = vmatpush3.bf16.msra.mxu1 %v2733_v57  ;;  %8764 = vmatprep.mubr.msk.bf16.mxu1 %vm10070_vm1, %v10069_v43 }
 0x6af   :  { %8774 = vmatprep.subr.bf16.mxu1 %v10069_v43 }
 0x770   :  { %v2525_v34 = vpop.f32.mrb[20].mxu0 }
 0x771   :  { %v8736_v44 = vpop.f32.mrb[21].mxu0 }
 0x772   :  { %v2528_v45 = vpop.f32.mrb[22].mxu0 }
 0x773   :  { %v8737_v35 = vpop.f32.mrb[23].mxu0 }
 0x778   :  { %v2572_v47 = vpop.f32.mrb[32].mxu1  ;;  %v2613_v33 = vpop.f32.mrb[24].mxu0 }
 0x779   :  { %v11070_v49 = vpack.c.bf16 %v2572_v47, %v2525_v34  ;;  %v8742_v50 = vpop.f32.mrb[33].mxu1  ;;  %v8748_v52 = vpop.f32.mrb[25].mxu0  ;;  %v2659_v46 = vsel %vm2253_vm3, %v2613_v33, -inf }
 0x77a   :  { %2660 = vmax.xlane.f32.xlu0 %v2659_v46  ;;  %v2575_v28 = vpop.f32.mrb[34].mxu1  ;;  %v2616_v51 = vpop.f32.mrb[26].mxu0 }
 0x77b   :  { %v8743_v42 = vpop.f32.mrb[35].mxu1  ;;  %v8749_v53 = vpop.f32.mrb[27].mxu0 }
 0x780   :  { %v2653_v54 = vpop.f32.mrb[36].mxu1 }
 0x781   :  { %v8754_v41 = vpop.f32.mrb[37].mxu1  ;;  %v2662_v56 = vsel %vm2253_vm3, %v2653_v54, -inf }
 0x782   :  { %2663 = vmax.xlane.f32.xlu1 %v2662_v56  ;;  %v2656_v58 = vpop.f32.mrb[38].mxu1 }
 0x783   :  { %v8755_v60 = vpop.f32.mrb[39].mxu1  ;;  %v9252_v58 = vld [vmem:[%s12921_s6 + $0x4] ss:$12 sps:$4 sm:$0xff]  }
 0x784   :  { %v9259_v60 = vld [vmem:[%s12921_s6 + $0xc8] ss:$12 sps:$4 sm:$0xff]  }
 0x807   :  { %v2661_v62 = vpop.xlane.xlu0 %2660 }
 0x808   :  { %v2665_v63 = vsub.f32 %v2613_v33, %v2661_v62 }
 0x80a   :  { %v2667_v30 = vmul.f32 1.442695, %v2665_v63 }
 0x80c   :  { %10018 = vpow2.f32 %v2667_v30 }
 0x80f   :  { %v2664_v0 = vpop.xlane.xlu1 %2663 }
 0x810   :  { %v2666_v2 = vsub.f32 %v2653_v54, %v2664_v0 }
 0x812   :  { %v2669_v3 = vmul.f32 1.442695, %v2666_v2  ;;  %v9250_v2 = vld [vmem:[%s12921_s6] ss:$12 sps:$4 sm:$0xff]  }
 0x814   :  { %10020 = vpow2.f32 %v2669_v3 }
 0x816   :  { %v10019_v4 = vpop.eup %10018 }
 0x817   :  { %v2671_v7 = vsel %vm2253_vm3, %v10019_v4, 0.0 }
 0x818   :  { %2672 = vadd.xlane.f32.xlu0 %v2671_v7  ;;  %v9253_v7 = vld [vmem:[%s12921_s6 + $0x18] ss:$12 sps:$4 sm:$0xff]  }
 0x81e   :  { %v10021_v8 = vpop.eup %10020 }
 0x81f   :  { %v2674_v10 = vsel %vm2253_vm3, %v10021_v8, 0.0 }
 0x820   :  { %2675 = vadd.xlane.f32.xlu1 %v2674_v10 }
 0x8a5   :  { %v2673_v11 = vpop.xlane.xlu0 %2672 }
 0x8a6   :  { %10022 = vrcp.f32 %v2673_v11 }
 0x8ad   :  { %v2676_v12 = vpop.xlane.xlu1 %2675 }
 0x8ae   :  { %10024 = vrcp.f32 %v2676_v12  ;;  %v9256_v12 = vld [vmem:[%s12921_s6 + $0x30] ss:$12 sps:$4 sm:$0xff]  }
 0x8b0   :  { %v10023_v13 = vpop.eup %10022 }
 0x8b1   :  { %v2678_v14 = vmul.f32 %v10023_v13, %v10019_v4  ;;  %v9255_v4 = vld [vmem:[%s12921_s6 + $0x1c] ss:$12 sps:$4 sm:$0xff]  }
 0x8b2   :  { %v9260_v13 = vld [vmem:[%s12921_s6 + $0x8] ss:$12 sps:$4 sm:$0xff]  }
 0x8b3   :  { %v2681_v15 = vpack.c.bf16 %v2678_v14, %v2678_v14 }
 0x8b5   :  { %8759 = vmatmul.mubr.msk.bf16.vlgmr.msra.gmra.mrb[28].mxu0 %vm2253_vm3, %v2681_v15  ;;  %v9263_v15 = vld [vmem:[%s12921_s6 + $0x4c] ss:$12 sps:$4 sm:$0xff]  }
 0x8b6   :  { %8769 = vmatpush3.bf16.xpose.msra.mxu0 %v2778_v16  ;;  %8770 = vmatprep.mubr.msk.bf16.mxu0 %vm10070_vm1, %v10069_v43  ;;  %v9264_v16 = vld [vmem:[%s12921_s6 + $0xe0] ss:$12 sps:$4 sm:$0xff]  }
 0x8b7   :  { %8780 = vmatprep.subr.bf16.mxu0 %v10069_v43 }
 0x8b8   :  { %v10025_v17 = vpop.eup %10024 }
 0x8b9   :  { %v2680_v19 = vmul.f32 %v10025_v17, %v10021_v8  ;;  %v9258_v8 = vld [vmem:[%s12921_s6 + $0x34] ss:$12 sps:$4 sm:$0xff]  }
 0x8ba   :  { %v9261_v17 = vld [vmem:[%s12921_s6 + $0x48] ss:$12 sps:$4 sm:$0xff]  }
 0x8bb   :  { %v2682_v25 = vpack.c.bf16 %v2680_v19, %v2680_v19  ;;  %v9268_v19 = vld [vmem:[%s12921_s6 + $0x64] ss:$12 sps:$4 sm:$0xff]  }
 0x8bd   :  { %8765 = vmatmul.mubr.msk.bf16.vlgmr.msra.gmra.mrb[40].mxu1 %vm2253_vm3, %v2682_v25  ;;  %8771 = vmatmul.mubr.bf16.vlgmr.msra.gmra.mrb[32].mxu0 %v2776_v21  ;;  %v9269_v21 = vld [vmem:[%s12921_s6 + $0xf8] ss:$12 sps:$4 sm:$0xff]   ;;  %v9266_v25 = vld [vmem:[%s12921_s6 + $0x60] ss:$12 sps:$4 sm:$0xff]  }
 0x8be   :  { %8775 = vmatpush3.bf16.xpose.msra.mxu1 %v2822_v26  ;;  %8781 = vmatpush3.bf16.msra.mxu0 %v2893_v59  ;;  %v9273_v26 = vld [vmem:[%s12921_s6 + $0x7c] ss:$12 sps:$4 sm:$0xff]  }
 0x8bf   :  { %8776 = vmatprep.mubr.msk.bf16.mxu1 %vm10070_vm1, %v10069_v43  ;;  %8786 = vmatprep.subr.bf16.mxu1 %v10069_v43  ;;  %v9274_v59 = vld [vmem:[%s12921_s6 + $0x110] ss:$12 sps:$4 sm:$0xff]  }
 0x8c0   :  { %8782 = vmatprep.mubr.msk.bf16.mxu0 %vm10070_vm1, %v10069_v43  ;;  %3640 = vmatprep.subr.bf16.mxu0 %v9252_v58  ;;  %v9356_v58 = vld [vmem:[%s12921_s6 + $0x290] ss:$12 sps:$4 sm:$0xff]  }
 0x8c5   :  { %8777 = vmatmul.mubr.bf16.vlgmr.msra.gmra.mrb[44].mxu1 %v2820_v6  ;;  %v9275_v6 = vld [vmem:[%s12921_s6 + $0x50] ss:$12 sps:$4 sm:$0xff]  }
 0x8c6   :  { %8787 = vmatpush3.bf16.msra.mxu1 %v2940_v1  ;;  %8788 = vmatprep.mubr.msk.bf16.mxu1 %vm10070_vm1, %v10069_v43  ;;  %v9278_v1 = vld [vmem:[%s12921_s6 + $0x94] ss:$12 sps:$4 sm:$0xff]  }
 0x8c7   :  { %8542 = vmatprep.subr.bf16.mxu1 %v9259_v60  ;;  %v9305_v60 = vld [vmem:[%s12921_s6 + $0x138] ss:$12 sps:$4 sm:$0xff]  }
 0x988   :  { %v2723_v27 = vpop.f32.mrb[28].mxu0 }
 0x989   :  { %v8760_v29 = vpop.f32.mrb[29].mxu0 }
 0x98a   :  { %v2726_v31 = vpop.f32.mrb[30].mxu0  ;;  %v9276_v29 = vld [vmem:[%s12921_s6 + $0x90] ss:$12 sps:$4 sm:$0xff]  }
 0x98b   :  { %v8761_v32 = vpop.f32.mrb[31].mxu0  ;;  %v9280_v31 = vld [vmem:[%s12921_s6 + $0x68] ss:$12 sps:$4 sm:$0xff]  }
 0x98c   :  { %v9283_v32 = vld [vmem:[%s12921_s6 + $0xac] ss:$12 sps:$4 sm:$0xff]  }
 0x990   :  { %v2769_v36 = vpop.f32.mrb[40].mxu1  ;;  %v2814_v37 = vpop.f32.mrb[32].mxu0 }
 0x991   :  { %v11096_v38 = vpack.c.bf16 %v2769_v36, %v2723_v27  ;;  %v8766_v39 = vpop.f32.mrb[41].mxu1  ;;  %v8772_v40 = vpop.f32.mrb[33].mxu0  ;;  %v2864_v9 = vsel %vm2253_vm3, %v2814_v37, -inf  ;;  %v9279_v27 = vld [vmem:[%s12921_s6 + $0x128] ss:$12 sps:$4 sm:$0xff]  }
 0x992   :  { %2865 = vmax.xlane.f32.xlu0 %v2864_v9  ;;  %v2772_v55 = vpop.f32.mrb[42].mxu1  ;;  %v2817_v57 = vpop.f32.mrb[34].mxu0  ;;  %v9284_v36 = vld [vmem:[%s12921_s6 + $0x140] ss:$12 sps:$4 sm:$0xff]   ;;  %v9288_v40 = vld [vmem:[%s12921_s6 + $0xc4] ss:$12 sps:$4 sm:$0xff]  }
 0x993   :  { %v8767_v34 = vpop.f32.mrb[43].mxu1  ;;  %v8773_v44 = vpop.f32.mrb[35].mxu0  ;;  %v9285_v39 = vld [vmem:[%s12921_s6 + $0x80] ss:$12 sps:$4 sm:$0xff]   ;;  %v9289_v9 = vld [vmem:[%s12921_s6 + $0x158] ss:$12 sps:$4 sm:$0xff]  }
 0x994   :  { %v9286_v55 = vld [vmem:[%s12921_s6 + $0xc0] ss:$12 sps:$4 sm:$0xff]   ;;  %v9290_v57 = vld [vmem:[%s12921_s6 + $0x98] ss:$12 sps:$4 sm:$0xff]   ;;  %v9293_v34 = vld [vmem:[%s12921_s6 + $0xdc] ss:$12 sps:$4 sm:$0xff]  }
 0x995   :  { %v9294_v44 = vld [vmem:[%s12921_s6 + $0x170] ss:$12 sps:$4 sm:$0xff]  }
 0x998   :  { %v2858_v45 = vpop.f32.mrb[44].mxu1 }
 0x999   :  { %v8778_v35 = vpop.f32.mrb[45].mxu1  ;;  %v2867_v43 = vsel %vm2253_vm3, %v2858_v45, -inf }
 0x99a   :  { %2868 = vmax.xlane.f32.xlu1 %v2867_v43  ;;  %v2861_v47 = vpop.f32.mrb[46].mxu1  ;;  %v9295_v35 = vld [vmem:[%s12921_s6 + $0xb0] ss:$12 sps:$4 sm:$0xff]   ;;  %v9298_v43 = vld [vmem:[%s12921_s6 + $0xf4] ss:$12 sps:$4 sm:$0xff]  }
 0x99b   :  { %v8779_v33 = vpop.f32.mrb[47].mxu1  ;;  %v9341_v47 = vld [vmem:[%s12921_s6 + $0x248] ss:$12 sps:$4 sm:$0xff]  }
 0x99c   :  { %v9296_v33 = vld [vmem:[%s12921_s6 + $0xf0] ss:$12 sps:$4 sm:$0xff]  }
 0xa1f   :  { %v2866_v50 = vpop.xlane.xlu0 %2865 }
 0xa20   :  { %v2870_v52 = vsub.f32 %v2814_v37, %v2866_v50  ;;  %v9281_v37 = vld [vmem:[%s12921_s6 + $0xa8] ss:$12 sps:$4 sm:$0xff]  }
 0xa21   :  { %v9342_v50 = vld [vmem:[%s12921_s6 + $0x188] ss:$12 sps:$4 sm:$0xff]  }
 0xa22   :  { %v2872_v46 = vmul.f32 1.442695, %v2870_v52  ;;  %v9301_v52 = vld [vmem:[%s12921_s6 + $0x10c] ss:$12 sps:$4 sm:$0xff]  }
 0xa24   :  { %10026 = vpow2.f32 %v2872_v46  ;;  %v9346_v46 = vld [vmem:[%s12921_s6 + $0x260] ss:$12 sps:$4 sm:$0xff]  }
 0xa27   :  { %v2869_v28 = vpop.xlane.xlu1 %2868 }
 0xa28   :  { %v2871_v51 = vsub.f32 %v2858_v45, %v2869_v28  ;;  %v9291_v45 = vld [vmem:[%s12921_s6 + $0xd8] ss:$12 sps:$4 sm:$0xff]   ;;  %v9299_v28 = vld [vmem:[%s12921_s6 + $0x108] ss:$12 sps:$4 sm:$0xff]  }
 0xa2a   :  { %v2874_v42 = vmul.f32 1.442695, %v2871_v51  ;;  %v9347_v51 = vld [vmem:[%s12921_s6 + $0x1a0] ss:$12 sps:$4 sm:$0xff]  }
 0xa2c   :  { %10028 = vpow2.f32 %v2874_v42  ;;  %v9304_v42 = vld [vmem:[%s12921_s6 + $0x124] ss:$12 sps:$4 sm:$0xff]  }
 0xa2e   :  { %v10027_v53 = vpop.eup %10026 }
 0xa2f   :  { %v2876_v54 = vsel %vm2253_vm3, %v10027_v53, 0.0 }
 0xa30   :  { %2877 = vadd.xlane.f32.xlu0 %v2876_v54  ;;  %v9302_v54 = vld [vmem:[%s12921_s6 + $0x120] ss:$12 sps:$4 sm:$0xff]  }
 0xa36   :  { %v10029_v41 = vpop.eup %10028 }
 0xa37   :  { %v2879_v56 = vsel %vm2253_vm3, %v10029_v41, 0.0 }
 0xa38   :  { %2880 = vadd.xlane.f32.xlu1 %v2879_v56  ;;  %v9307_v56 = vld [vmem:[%s12921_s6 + $0x13c] ss:$12 sps:$4 sm:$0xff]  }
 0xabd   :  { %v2878_v62 = vpop.xlane.xlu0 %2877 }
 0xabe   :  { %10030 = vrcp.f32 %v2878_v62  ;;  %v9357_v62 = vld [vmem:[%s12921_s6 + $0x1d0] ss:$12 sps:$4 sm:$0xff]  }
 0xac5   :  { %v2881_v63 = vpop.xlane.xlu1 %2880 }
 0xac6   :  { %10032 = vrcp.f32 %v2881_v63  ;;  %v9310_v63 = vld [vmem:[%s12921_s6 + $0x154] ss:$12 sps:$4 sm:$0xff]  }
 0xac8   :  { %v10031_v30 = vpop.eup %10030 }
 0xac9   :  { %v2883_v0 = vmul.f32 %v10031_v30, %v10027_v53  ;;  %v9351_v53 = vld [vmem:[%s12921_s6 + $0x278] ss:$12 sps:$4 sm:$0xff]   ;;  %v9361_v30 = vld [vmem:[%s12921_s6 + $0x2a8] ss:$12 sps:$4 sm:$0xff]  }
 0xacb   :  { %v2886_v3 = vpack.c.bf16 %v2883_v0, %v2883_v0  ;;  %v9308_v0 = vld [vmem:[%s12921_s6 + $0x150] ss:$12 sps:$4 sm:$0xff]  }
 0xacd   :  { %8783 = vmatmul.mubr.msk.bf16.vlgmr.msra.gmra.mrb[36].mxu0 %vm2253_vm3, %v2886_v3  ;;  %v9313_v3 = vld [vmem:[%s12921_s6 + $0x16c] ss:$12 sps:$4 sm:$0xff]  }
 0xace   :  { %3641 = vmatpush1.bf16.msra.mxu0 %v9250_v2  ;;  %3672 = vmatprep.mubr.bf16.mxu0 %v11070_v49  ;;  %v9362_v2 = vld [vmem:[%s12921_s6 + $0x1e8] ss:$12 sps:$4 sm:$0xff]  }
 0xacf   :  { %3642 = vmatprep.subr.bf16.mxu0 %v9255_v4  ;;  %v9311_v4 = vld [vmem:[%s12921_s6 + $0x168] ss:$12 sps:$4 sm:$0xff]  }
 0xad0   :  { %v10033_v10 = vpop.eup %10032 }
 0xad1   :  { %v2885_v11 = vmul.f32 %v10033_v10, %v10029_v41  ;;  %v9352_v41 = vld [vmem:[%s12921_s6 + $0x1b8] ss:$12 sps:$4 sm:$0xff]   ;;  %v9319_v10 = vld [vmem:[%s12921_s6 + $0x19c] ss:$12 sps:$4 sm:$0xff]  }
 0xad2   :  { %3643 = vmatpush1.bf16.msra.mxu0 %v9253_v7  ;;  %v9316_v7 = vld [vmem:[%s12921_s6 + $0x184] ss:$12 sps:$4 sm:$0xff]  }
 0xad3   :  { %3644 = vmatprep.subr.bf16.mxu0 %v9258_v8  ;;  %v2887_v14 = vpack.c.bf16 %v2885_v11, %v2885_v11  ;;  %v9314_v8 = vld [vmem:[%s12921_s6 + $0x180] ss:$12 sps:$4 sm:$0xff]   ;;  %v9317_v11 = vld [vmem:[%s12921_s6 + $0x198] ss:$12 sps:$4 sm:$0xff]  }
 0xad5   :  { %8789 = vmatmul.mubr.msk.bf16.vlgmr.msra.gmra.mrb[48].mxu1 %vm2253_vm3, %v2887_v14  ;;  %v9323_v14 = vld [vmem:[%s12921_s6 + $0x1c8] ss:$12 sps:$4 sm:$0xff]  }
 0xad6   :  { %3645 = vmatpush1.bf16.msra.mxu0 %v9256_v12  ;;  %8543 = vmatpush3.bf16.msra.mxu1 %v9260_v13  ;;  %v9322_v12 = vld [vmem:[%s12921_s6 + $0x1b4] ss:$12 sps:$4 sm:$0xff]   ;;  %v9320_v13 = vld [vmem:[%s12921_s6 + $0x1b0] ss:$12 sps:$4 sm:$0xff]  }
 0xad7   :  { %3758 = vmatprep.mubr.bf16.mxu1 %v11070_v49  ;;  %3646 = vmatprep.subr.bf16.mxu0 %v9263_v15  ;;  %v9270_v49 = vld [vmem:[%s12921_s6 + $0x38] ss:$12 sps:$4 sm:$0xff]  }
 0xad8   :  { %8544 = vmatprep.subr.bf16.mxu1 %v9264_v16  ;;  %v9328_v15 = vld [vmem:[%s12921_s6 + $0x1e4] ss:$12 sps:$4 sm:$0xff]   ;;  %v9326_v16 = vld [vmem:[%s12921_s6 + $0x1e0] ss:$12 sps:$4 sm:$0xff]  }
 0xada   :  { %3647 = vmatpush1.bf16.msra.mxu0 %v9261_v17  ;;  %8545 = vmatpush3.bf16.msra.mxu1 %v9265_v18  ;;  %v9331_v17 = vld [vmem:[%s12921_s6 + $0x1fc] ss:$12 sps:$4 sm:$0xff]   ;;  %v9329_v18 = vld [vmem:[%s12921_s6 + $0x1f8] ss:$12 sps:$4 sm:$0xff]  }
 0xadb   :  { %3648 = vmatprep.subr.bf16.mxu0 %v9268_v19  ;;  %8546 = vmatprep.subr.bf16.mxu1 %v9269_v21  ;;  %v9334_v19 = vld [vmem:[%s12921_s6 + $0x214] ss:$12 sps:$4 sm:$0xff]  }
 0xadc   :  { %v9366_v21 = vld [vmem:[%s12921_s6 + $0x2c0] ss:$12 sps:$4 sm:$0xff]  }
 0xade   :  { %3649 = vmatpush1.bf16.msra.mxu0 %v9266_v25  ;;  %8547 = vmatpush3.bf16.msra.mxu1 %v9270_v49  ;;  %v9367_v25 = vld [vmem:[%s12921_s6 + $0x200] ss:$12 sps:$4 sm:$0xff]   ;;  %v9332_v49 = vld [vmem:[%s12921_s6 + $0x210] ss:$12 sps:$4 sm:$0xff]  }
 0xadf   :  { %3650 = vmatprep.subr.bf16.mxu0 %v9273_v26  ;;  %8548 = vmatprep.subr.bf16.mxu1 %v9274_v59  ;;  %v9337_v26 = vld [vmem:[%s12921_s6 + $0x22c] ss:$12 sps:$4 sm:$0xff]  }
 0xae0   :  { %v9371_v59 = vld [vmem:[%s12921_s6 + $0x2d8] ss:$12 sps:$4 sm:$0xff]  }
 0xae2   :  { %3651 = vmatpush1.bf16.msra.mxu0 %v9271_v48  ;;  %8549 = vmatpush3.bf16.msra.mxu1 %v9275_v6  ;;  %v9372_v48 = vld [vmem:[%s12921_s6 + $0x218] ss:$12 sps:$4 sm:$0xff]   ;;  %v9335_v6 = vld [vmem:[%s12921_s6 + $0x228] ss:$12 sps:$4 sm:$0xff]  }
 0xae3   :  { %3652 = vmatprep.subr.bf16.mxu0 %v9278_v1  ;;  %8550 = vmatprep.subr.bf16.mxu1 %v9279_v27  ;;  %v9340_v1 = vld [vmem:[%s12921_s6 + $0x244] ss:$12 sps:$4 sm:$0xff]  }
 0xae4   :  { %v9376_v27 = vld [vmem:[%s12921_s6 + $0x2f0] ss:$12 sps:$4 sm:$0xff]  }
 0xae6   :  { %3653 = vmatpush1.bf16.msra.mxu0 %v9276_v29  ;;  %8551 = vmatpush3.bf16.msra.mxu1 %v9280_v31  ;;  %v9377_v29 = vld [vmem:[%s12921_s6 + $0x230] ss:$12 sps:$4 sm:$0xff]   ;;  %v9338_v31 = vld [vmem:[%s12921_s6 + $0x240] ss:$12 sps:$4 sm:$0xff]  }
 0xae7   :  { %3654 = vmatprep.subr.bf16.mxu0 %v9283_v32  ;;  %8552 = vmatprep.subr.bf16.mxu1 %v9284_v36  ;;  %v9345_v32 = vld [vmem:[%s12921_s6 + $0x25c] ss:$12 sps:$4 sm:$0xff]   ;;  %v9343_v36 = vld [vmem:[%s12921_s6 + $0x258] ss:$12 sps:$4 sm:$0xff]  }
 0xaea   :  { %3655 = vmatpush1.bf16.msra.mxu0 %v9281_v37  ;;  %8553 = vmatpush3.bf16.msra.mxu1 %v9285_v39  ;;  %v9350_v37 = vld [vmem:[%s12921_s6 + $0x274] ss:$12 sps:$4 sm:$0xff]   ;;  %v9348_v39 = vld [vmem:[%s12921_s6 + $0x270] ss:$12 sps:$4 sm:$0xff]  }
 0xaeb   :  { %3656 = vmatprep.subr.bf16.mxu0 %v9288_v40  ;;  %8554 = vmatprep.subr.bf16.mxu1 %v9289_v9  ;;  %v9355_v40 = vld [vmem:[%s12921_s6 + $0x28c] ss:$12 sps:$4 sm:$0xff]   ;;  %v9353_v9 = vld [vmem:[%s12921_s6 + $0x288] ss:$12 sps:$4 sm:$0xff]  }
 0xaee   :  { %3657 = vmatpush1.bf16.msra.mxu0 %v9286_v55  ;;  %8555 = vmatpush3.bf16.msra.mxu1 %v9290_v57  ;;  %v9360_v55 = vld [vmem:[%s12921_s6 + $0x2a4] ss:$12 sps:$4 sm:$0xff]   ;;  %v9358_v57 = vld [vmem:[%s12921_s6 + $0x2a0] ss:$12 sps:$4 sm:$0xff]  }
 0xaef   :  { %3658 = vmatprep.subr.bf16.mxu0 %v9293_v34  ;;  %8556 = vmatprep.subr.bf16.mxu1 %v9294_v44  ;;  %v9365_v34 = vld [vmem:[%s12921_s6 + $0x2bc] ss:$12 sps:$4 sm:$0xff]   ;;  %v9363_v44 = vld [vmem:[%s12921_s6 + $0x2b8] ss:$12 sps:$4 sm:$0xff]  }
 0xaf2   :  { %3659 = vmatpush1.bf16.msra.mxu0 %v9291_v45  ;;  %8557 = vmatpush3.bf16.msra.mxu1 %v9295_v35  ;;  %v9370_v45 = vld [vmem:[%s12921_s6 + $0x2d4] ss:$12 sps:$4 sm:$0xff]   ;;  %v9368_v35 = vld [vmem:[%s12921_s6 + $0x2d0] ss:$12 sps:$4 sm:$0xff]  }
 0xaf3   :  { %3660 = vmatprep.subr.bf16.mxu0 %v9298_v43  ;;  %8564 = vmatprep.subr.bf16.mxu1 %v9341_v47  ;;  %v9375_v43 = vld [vmem:[%s12921_s6 + $0x2ec] ss:$12 sps:$4 sm:$0xff]   ;;  %v9373_v47 = vld [vmem:[%s12921_s6 + $0x2e8] ss:$12 sps:$4 sm:$0xff]  }
 0xaf5   :  { %3759 = vmatmul.mubr.bf16.vlgmr.msra.gmra.mrb[52].mxu1 %v11042_v61 }
 0xaf6   :  { %3661 = vmatpush1.bf16.msra.mxu0 %v9296_v33  ;;  %8565 = vmatpush3.bf16.msra.mxu1 %v9342_v50 }
 0xaf7   :  { %3662 = vmatprep.subr.bf16.mxu0 %v9301_v52  ;;  %8566 = vmatprep.subr.bf16.mxu1 %v9346_v46 }
 0xafa   :  { %3663 = vmatpush1.bf16.msra.mxu0 %v9299_v28  ;;  %8567 = vmatpush3.bf16.msra.mxu1 %v9347_v51 }
 0xafb   :  { %3664 = vmatprep.subr.bf16.mxu0 %v9304_v42  ;;  %8568 = vmatprep.subr.bf16.mxu1 %v9351_v53 }
 0xafe   :  { %3665 = vmatpush1.bf16.msra.mxu0 %v9302_v54  ;;  %8569 = vmatpush3.bf16.msra.mxu1 %v9352_v41 }
 0xaff   :  { %3666 = vmatprep.subr.bf16.mxu0 %v9307_v56  ;;  %8570 = vmatprep.subr.bf16.mxu1 %v9356_v58 }
 0xb02   :  { %3667 = vmatpush1.bf16.msra.mxu0 %v9305_v60  ;;  %8571 = vmatpush3.bf16.msra.mxu1 %v9357_v62 }
 0xb03   :  { %3668 = vmatprep.subr.bf16.mxu0 %v9310_v63  ;;  %8572 = vmatprep.subr.bf16.mxu1 %v9361_v30  ;;  %v3111_v30 = vld [vmem:[%s12922_s7] sm:$0x7] }
 0xb06   :  { %3669 = vmatpush1.bf16.msra.mxu0 %v9308_v0  ;;  %8573 = vmatpush3.bf16.msra.mxu1 %v9362_v2  ;;  %v3116_v0 = vrot.slane %v3111_v30, %v10324_v24  ;;  %v3124_v2 = vrot.slane %v3111_v30, %v10321_v23 }
 0xb07   :  { %3670 = vmatprep.subr.bf16.mxu0 %v9313_v3  ;;  %8574 = vmatprep.subr.bf16.mxu1 %v9366_v21  ;;  %v3120_v3 = vrot.slane %v3111_v30, %v10318_v22  ;;  %v9405_v30 = vld [vmem:[%s12923_s8 + $0x148] ss:$40 sps:$4 sm:$0xff]  }
 0xb0a   :  { %3671 = vmatpush1.bf16.msra.mxu0 %v9311_v4  ;;  %8575 = vmatpush3.bf16.msra.mxu1 %v9367_v25  ;;  %v10039_v25 = vld [vmem:[%s12915_s0 + $0x8] sm:$0xff] }
 0xb0b   :  { %3683 = vmatprep.subr.bf16.mxu0 %v9316_v7  ;;  %8576 = vmatprep.subr.bf16.mxu1 %v9371_v59 }
 0xb0d   :  { %3673 = vmatmul.mubr.bf16.vlgmr.msra.gmra.mrb[40].mxu0 %v11042_v61  ;;  %v9325_v61 = vld [vmem:[%s12921_s6 + $0x1cc] ss:$12 sps:$4 sm:$0xff]  }
 0xb0e   :  { %3684 = vmatpush1.bf16.msra.mxu0 %v9314_v8  ;;  %8577 = vmatpush3.bf16.msra.mxu1 %v9372_v48 }
 0xb0f   :  { %3685 = vmatprep.subr.bf16.mxu0 %v9319_v10  ;;  %8578 = vmatprep.subr.bf16.mxu1 %v9376_v27  ;;  %v10041_v27 = vld [vmem:[%s12915_s0 + $0x10] sm:$0xff] }
 0xb12   :  { %3686 = vmatpush1.bf16.msra.mxu0 %v9317_v11  ;;  %8579 = vmatpush3.bf16.msra.mxu1 %v9377_v29 }
 0xb13   :  { %3687 = vmatprep.subr.bf16.mxu0 %v9322_v12 }
 0xb16   :  { %3688 = vmatpush1.bf16.msra.mxu0 %v9320_v13 }
 0xb17   :  { %3689 = vmatprep.subr.bf16.mxu0 %v9325_v61 }
 0xb1a   :  { %3690 = vmatpush1.bf16.msra.mxu0 %v9323_v14 }
 0xb1b   :  { %3691 = vmatprep.subr.bf16.mxu0 %v9328_v15 }
 0xb1e   :  { %3692 = vmatpush1.bf16.msra.mxu0 %v9326_v16  ;;  %v10038_v16 = vld [vmem:[%s12915_s0] sm:$0xff] }
 0xb1f   :  { %3693 = vmatprep.subr.bf16.mxu0 %v9331_v17 }
 0xb22   :  { %3694 = vmatpush1.bf16.msra.mxu0 %v9329_v18 }
 0xb23   :  { %3695 = vmatprep.subr.bf16.mxu0 %v9334_v19 }
 0xb26   :  { %3696 = vmatpush1.bf16.msra.mxu0 %v9332_v49 }
 0xb27   :  { %3697 = vmatprep.subr.bf16.mxu0 %v9337_v26 }
 0xb2a   :  { %3698 = vmatpush1.bf16.msra.mxu0 %v9335_v6  ;;  %v10040_v6 = vld [vmem:[%s12915_s0 + $0x18] sm:$0xff] }
 0xb2b   :  { %3699 = vmatprep.subr.bf16.mxu0 %v9340_v1 }
 0xb2e   :  { %3700 = vmatpush1.bf16.msra.mxu0 %v9338_v31  ;;  %v10042_v31 = vld [vmem:[%s12915_s0 + $0x20] sm:$0xff] }
 0xb2f   :  { %3701 = vmatprep.subr.bf16.mxu0 %v9345_v32 }
 0xb32   :  { %3702 = vmatpush1.bf16.msra.mxu0 %v9343_v36 }
 0xb33   :  { %3703 = vmatprep.subr.bf16.mxu0 %v9350_v37 }
 0xb36   :  { %3704 = vmatpush1.bf16.msra.mxu0 %v9348_v39  ;;  %v10043_v39 = vld [vmem:[%s12915_s0 + $0x28] sm:$0xff] }
 0xb37   :  { %3705 = vmatprep.subr.bf16.mxu0 %v9355_v40 }
 0xb3a   :  { %3706 = vmatpush1.bf16.msra.mxu0 %v9353_v9 }
 0xb3b   :  { %3707 = vmatprep.subr.bf16.mxu0 %v9360_v55 }
 0xb3e   :  { %3708 = vmatpush1.bf16.msra.mxu0 %v9358_v57 }
 0xb3f   :  { %3709 = vmatprep.subr.bf16.mxu0 %v9365_v34 }
 0xb42   :  { %3710 = vmatpush1.bf16.msra.mxu0 %v9363_v44 }
 0xb43   :  { %3711 = vmatprep.subr.bf16.mxu0 %v9370_v45  ;;  %v9378_v45 = vld [vmem:[%s12923_s8] ss:$40 sps:$4 sm:$0xff]  }
 0xb46   :  { %3712 = vmatpush1.bf16.msra.mxu0 %v9368_v35  ;;  %v9380_v35 = vld [vmem:[%s12923_s8 + $0x4] ss:$40 sps:$4 sm:$0xff]  }
 0xb47   :  { %3713 = vmatprep.subr.bf16.mxu0 %v9375_v43  ;;  %v9381_v43 = vld [vmem:[%s12923_s8 + $0x8] ss:$40 sps:$4 sm:$0xff]   ;;  %5166 = vmatprep.subr.bf16.mxu1 %v9380_v35 }
 0xb4a   :  { %3714 = vmatpush1.bf16.msra.mxu0 %v9373_v47  ;;  %v9383_v47 = vld [vmem:[%s12923_s8 + $0xc] ss:$40 sps:$4 sm:$0xff]  }
 0xb4b   :  { %5252 = vmatprep.subr.bf16.mxu0 %v9383_v47 }
 0xba0   :  { %v2929_v33 = vpop.f32.mrb[36].mxu0 }
 0xba1   :  { %v8784_v50 = vpop.f32.mrb[37].mxu0 }
 0xba2   :  { %v2932_v52 = vpop.f32.mrb[38].mxu0  ;;  %v9389_v50 = vld [vmem:[%s12923_s8 + $0x5c] ss:$40 sps:$4 sm:$0xff]  }
 0xba3   :  { %v8785_v46 = vpop.f32.mrb[39].mxu0  ;;  %v9384_v52 = vld [vmem:[%s12923_s8 + $0x50] ss:$40 sps:$4 sm:$0xff]  }
 0xba4   :  { %v9387_v46 = vld [vmem:[%s12923_s8 + $0x58] ss:$40 sps:$4 sm:$0xff]  }
 0xba8   :  { %v2976_v28 = vpop.f32.mrb[48].mxu1 }
 0xba9   :  { %v2982_v51 = vpack.c.bf16 %v2976_v28, %v2929_v33  ;;  %v8790_v42 = vpop.f32.mrb[49].mxu1  ;;  %v9386_v33 = vld [vmem:[%s12923_s8 + $0x54] ss:$40 sps:$4 sm:$0xff]   ;;  %v9392_v28 = vld [vmem:[%s12923_s8 + $0xa4] ss:$40 sps:$4 sm:$0xff]  }
 0xbaa   :  { %v2979_v53 = vpop.f32.mrb[50].mxu1  ;;  %v9390_v42 = vld [vmem:[%s12923_s8 + $0xa0] ss:$40 sps:$4 sm:$0xff]  }
 0xbab   :  { %v8791_v54 = vpop.f32.mrb[51].mxu1  ;;  %3715 = vmatprep.mubr.bf16.mxu0 %v2982_v51  ;;  %3799 = vmatprep.mubr.bf16.mxu1 %v2982_v51  ;;  %v9395_v51 = vld [vmem:[%s12923_s8 + $0xac] ss:$40 sps:$4 sm:$0xff]   ;;  %v9393_v53 = vld [vmem:[%s12923_s8 + $0xa8] ss:$40 sps:$4 sm:$0xff]  }
 0xbac   :  { %3716 = vmatmul.mubr.bf16.vlgmr.msra.gmra.mrb[40].mxu0 %v11096_v38  ;;  %3800 = vmatmul.mubr.bf16.vlgmr.msra.gmra.mrb[56].mxu1 %v11096_v38  ;;  %v9398_v54 = vld [vmem:[%s12923_s8 + $0xf4] ss:$40 sps:$4 sm:$0xff]  }
 0xbad   :  { %5167 = vmatpush1.bf16.msra.mxu1 %v9378_v45  ;;  %5253 = vmatpush1.bf16.msra.mxu0 %v9381_v43 }
 0xbae   :  { %5168 = vmatprep.subr.bf16.mxu1 %v9386_v33  ;;  %5254 = vmatprep.subr.bf16.mxu0 %v9389_v50 }
 0xbb1   :  { %5169 = vmatpush1.bf16.msra.mxu1 %v9384_v52  ;;  %5255 = vmatpush1.bf16.msra.mxu0 %v9387_v46 }
 0xbb2   :  { %5170 = vmatprep.subr.bf16.mxu1 %v9392_v28  ;;  %5256 = vmatprep.subr.bf16.mxu0 %v9395_v51  ;;  %v9440_v51 = vld [vmem:[%s12923_s8 + $0x324] ss:$40 sps:$4 sm:$0xff]  }
 0xbb5   :  { %5171 = vmatpush1.bf16.msra.mxu1 %v9390_v42  ;;  %5257 = vmatpush1.bf16.msra.mxu0 %v9393_v53  ;;  %v9443_v42 = vld [vmem:[%s12923_s8 + $0x32c] ss:$40 sps:$4 sm:$0xff]   ;;  %v9438_v53 = vld [vmem:[%s12923_s8 + $0x320] ss:$40 sps:$4 sm:$0xff]  }
 0xbb6   :  { %5172 = vmatprep.subr.bf16.mxu1 %v9398_v54  ;;  %v9441_v54 = vld [vmem:[%s12923_s8 + $0x328] ss:$40 sps:$4 sm:$0xff]  }
 0xbc8   :  { %v8558_v41 = vpop.f32.mrb[52].mxu1 }
 0xbc9   :  { %v8559_v56 = vpop.f32.mrb[53].mxu1 }
 0xbca   :  { %v8560_v58 = vadd.f32 %v8559_v56, %v8558_v41  ;;  %v8561_v60 = vpop.f32.mrb[54].mxu1  ;;  %v9401_v41 = vld [vmem:[%s12923_s8 + $0xfc] ss:$40 sps:$4 sm:$0xff]   ;;  %v9396_v56 = vld [vmem:[%s12923_s8 + $0xf0] ss:$40 sps:$4 sm:$0xff]  }
 0xbcb   :  { %v8562_v62 = vpop.f32.mrb[55].mxu1  ;;  %5258 = vmatprep.subr.bf16.mxu0 %v9401_v41  ;;  %5173 = vmatpush1.bf16.msra.mxu1 %v9396_v56  ;;  %v9446_v41 = vld [vmem:[%s12923_s8 + $0x374] ss:$40 sps:$4 sm:$0xff]  }
 0xbcc   :  { %v8563_v63 = vadd.f32 %v8562_v62, %v8561_v60  ;;  %v3761_v11 = vadd.f32 %v8560_v58, %v3124_v2  ;;  %v9399_v58 = vld [vmem:[%s12923_s8 + $0xf8] ss:$40 sps:$4 sm:$0xff]   ;;  %v9404_v60 = vld [vmem:[%s12923_s8 + $0x144] ss:$40 sps:$4 sm:$0xff]  }
 0xbcd   :  { %v9407_v62 = vld [vmem:[%s12923_s8 + $0x14c] ss:$40 sps:$4 sm:$0xff]   ;;  %5259 = vmatpush1.bf16.msra.mxu0 %v9399_v58  ;;  %5174 = vmatprep.subr.bf16.mxu1 %v9404_v60  ;;  %v9449_v56 = vld [vmem:[%s12923_s8 + $0x37c] ss:$40 sps:$4 sm:$0xff]   ;;  %v9444_v58 = vld [vmem:[%s12923_s8 + $0x370] ss:$40 sps:$4 sm:$0xff]  }
 0xbce   :  { %v3764_v15 = vadd.f32 %v8563_v63, %v3124_v2  ;;  %v9402_v63 = vld [vmem:[%s12923_s8 + $0x140] ss:$40 sps:$4 sm:$0xff]   ;;  %5260 = vmatprep.subr.bf16.mxu0 %v9407_v62  ;;  %v9413_v2 = vld [vmem:[%s12923_s8 + $0x19c] ss:$40 sps:$4 sm:$0xff]  }
 0xbcf   :  { %5175 = vmatpush1.bf16.msra.mxu1 %v9402_v63  ;;  %v9447_v60 = vld [vmem:[%s12923_s8 + $0x378] ss:$40 sps:$4 sm:$0xff]   ;;  %v9452_v62 = vld [vmem:[%s12923_s8 + $0x3c4] ss:$40 sps:$4 sm:$0xff]  }
 0xbd0   :  { %v9450_v63 = vld [vmem:[%s12923_s8 + $0x3c0] ss:$40 sps:$4 sm:$0xff]  }
 0xbd1   :  { %5261 = vmatpush1.bf16.msra.mxu0 %v9405_v30  ;;  %v9453_v30 = vld [vmem:[%s12923_s8 + $0x3c8] ss:$40 sps:$4 sm:$0xff]  }
 0xbd2   :  { %5262 = vmatprep.subr.bf16.mxu0 %v9413_v2  ;;  %v9458_v2 = vld [vmem:[%s12923_s8 + $0x414] ss:$40 sps:$4 sm:$0xff]  }
 0xc7f   :  { %v3717_v4 = vpop.f32.mrb[40].mxu0  ;;  %v8580_v7 = vpop.f32.mrb[56].mxu1 }
 0xc80   :  { %v8796_v8 = vadd.f32 %v3717_v4, %v3116_v0  ;;  %v3719_v38 = vpop.f32.mrb[41].mxu0  ;;  %v8581_v10 = vpop.f32.mrb[57].mxu1  ;;  %v9411_v4 = vld [vmem:[%s12923_s8 + $0x198] ss:$40 sps:$4 sm:$0xff]  }
 0xc81   :  { %v8797_v12 = vadd.f32 %v3719_v38, %v3120_v3  ;;  %v8582_v13 = vadd.f32 %v8581_v10, %v8580_v7  ;;  %v3721_v61 = vpop.f32.mrb[42].mxu0  ;;  %v8583_v14 = vpop.f32.mrb[58].mxu1  ;;  %v9416_v7 = vld [vmem:[%s12923_s8 + $0x1e4] ss:$40 sps:$4 sm:$0xff]   ;;  %v9414_v38 = vld [vmem:[%s12923_s8 + $0x1e0] ss:$40 sps:$4 sm:$0xff]   ;;  %5263 = vmatpush1.bf16.msra.mxu0 %v9411_v4 }
 0xc82   :  { %v11407_v17 = vadd.f32 %v10038_v16, %v8796_v8  ;;  %v8798_v18 = vadd.f32 %v3721_v61, %v3116_v0  ;;  %v3723_v19 = vpop.f32.mrb[43].mxu0  ;;  %v8584_v21 = vpop.f32.mrb[59].mxu1  ;;  %v9410_v0 = vld [vmem:[%s12923_s8 + $0x194] ss:$40 sps:$4 sm:$0xff]   ;;  %v9417_v10 = vld [vmem:[%s12923_s8 + $0x1e8] ss:$40 sps:$4 sm:$0xff]  }
 0xc83   :  { %v11412_v49 = vadd.f32 %v10039_v25, %v8797_v12  ;;  %v3802_v26 = vadd.f32 %v8582_v13, %v3761_v11  ;;  %v8799_v59 = vadd.f32 %v3723_v19, %v3120_v3  ;;  %v8585_v48 = vadd.f32 %v8584_v21, %v8583_v14  ;;  %v9408_v3 = vld [vmem:[%s12923_s8 + $0x190] ss:$40 sps:$4 sm:$0xff]   ;;  %5176 = vmatprep.subr.bf16.mxu1 %v9410_v0  ;;  %v9419_v8 = vld [vmem:[%s12923_s8 + $0x1ec] ss:$40 sps:$4 sm:$0xff]   ;;  %v9425_v12 = vld [vmem:[%s12923_s8 + $0x23c] ss:$40 sps:$4 sm:$0xff]  }
 0xc84   :  { %v11417_v1 = vadd.f32 %v10040_v6, %v8798_v18  ;;  %5177 = vmatpush1.bf16.msra.mxu1 %v9408_v3  ;;  %v9422_v11 = vld [vmem:[%s12923_s8 + $0x234] ss:$40 sps:$4 sm:$0xff]   ;;  %5264 = vmatprep.subr.bf16.mxu0 %v9419_v8  ;;  %v9420_v13 = vld [vmem:[%s12923_s8 + $0x230] ss:$40 sps:$4 sm:$0xff]   ;;  %v9428_v14 = vld [vmem:[%s12923_s8 + $0x284] ss:$40 sps:$4 sm:$0xff]  }
 0xc85   :  { %v11422_v29 = vadd.f32 %v10041_v27, %v3802_v26  ;;  %v11427_v32 = vadd.f32 %v10042_v31, %v8799_v59  ;;  %v3805_v36 = vadd.f32 %v8585_v48, %v3764_v15  ;;  %v3814_v37 = vadd.f32 %v11412_v49, %v11407_v17  ;;  %5178 = vmatprep.subr.bf16.mxu1 %v9416_v7  ;;  %v9423_v61 = vld [vmem:[%s12923_s8 + $0x238] ss:$40 sps:$4 sm:$0xff]   ;;  %v9431_v15 = vld [vmem:[%s12923_s8 + $0x28c] ss:$40 sps:$4 sm:$0xff]   ;;  %v9429_v18 = vld [vmem:[%s12923_s8 + $0x288] ss:$40 sps:$4 sm:$0xff]  }
 0xc86   :  { %5265 = vmatpush1.bf16.msra.mxu0 %v9417_v10  ;;  %v9426_v16 = vld [vmem:[%s12923_s8 + $0x280] ss:$40 sps:$4 sm:$0xff]   ;;  %v9434_v19 = vld [vmem:[%s12923_s8 + $0x2d4] ss:$40 sps:$4 sm:$0xff]   ;;  %v9432_v25 = vld [vmem:[%s12923_s8 + $0x2d0] ss:$40 sps:$4 sm:$0xff]  }
 0xc87   :  { %v11434_v40 = vadd.f32 %v10043_v39, %v3805_v36  ;;  %v3815_v9 = vsel %vm50_vm0, %v11422_v29, 0.0  ;;  %v3819_v55 = vadd.f32 %v11427_v32, %v11417_v1  ;;  %5266 = vmatprep.subr.bf16.mxu0 %v9425_v12  ;;  %v9437_v21 = vld [vmem:[%s12923_s8 + $0x2dc] ss:$40 sps:$4 sm:$0xff]   ;;  %v9435_v26 = vld [vmem:[%s12923_s8 + $0x2d8] ss:$40 sps:$4 sm:$0xff]  }
 0xc88   :  { %v3816_v57 = vadd.f32 %v3815_v9, %v3814_v37  ;;  %5179 = vmatpush1.bf16.msra.mxu1 %v9414_v38  ;;  %v9455_v0 = vld [vmem:[%s12923_s8 + $0x3cc] ss:$40 sps:$4 sm:$0xff]   ;;  %v9461_v3 = vld [vmem:[%s12923_s8 + $0x41c] ss:$40 sps:$4 sm:$0xff]   ;;  %v9456_v4 = vld [vmem:[%s12923_s8 + $0x410] ss:$40 sps:$4 sm:$0xff]  }
 0xc89   :  { %v3820_v34 = vsel %vm50_vm0, %v11434_v40, 0.0  ;;  %5180 = vmatprep.subr.bf16.mxu1 %v9422_v11  ;;  %v9459_v7 = vld [vmem:[%s12923_s8 + $0x418] ss:$40 sps:$4 sm:$0xff]   ;;  %v9464_v8 = vld [vmem:[%s12923_s8 + $0x464] ss:$40 sps:$4 sm:$0xff]  }
 0xc8a   :  { %3817 = vadd.xlane.f32.xlu0 %v3816_v57  ;;  %v3821_v44 = vadd.f32 %v3820_v34, %v3819_v55  ;;  %5267 = vmatpush1.bf16.msra.mxu0 %v9423_v61  ;;  %v9467_v38 = vld [vmem:[%s12923_s8 + $0x46c] ss:$40 sps:$4 sm:$0xff]   ;;  %v9462_v10 = vld [vmem:[%s12923_s8 + $0x460] ss:$40 sps:$4 sm:$0xff]   ;;  %v9468_v61 = vld [vmem:[%s12923_s8 + $0x4b0] ss:$40 sps:$4 sm:$0xff]  }
 0xc8b   :  { %5268 = vmatprep.subr.bf16.mxu0 %v9431_v15  ;;  %v9465_v11 = vld [vmem:[%s12923_s8 + $0x468] ss:$40 sps:$4 sm:$0xff]   ;;  %v9470_v12 = vld [vmem:[%s12923_s8 + $0x4b4] ss:$40 sps:$4 sm:$0xff]   ;;  %v9476_v15 = vld [vmem:[%s12923_s8 + $0x504] ss:$40 sps:$4 sm:$0xff]  }
 0xc8c   :  { %3822 = vadd.xlane.f32.xlu1 %v3821_v44  ;;  %5181 = vmatpush1.bf16.msra.mxu1 %v9420_v13  ;;  %v9473_v13 = vld [vmem:[%s12923_s8 + $0x4bc] ss:$40 sps:$4 sm:$0xff]  }
 0xc8d   :  { %5182 = vmatprep.subr.bf16.mxu1 %v9428_v14  ;;  %v9471_v14 = vld [vmem:[%s12923_s8 + $0x4b8] ss:$40 sps:$4 sm:$0xff]  }
 0xc8e   :  { %5269 = vmatpush1.bf16.msra.mxu0 %v9429_v18 }
 0xc8f   :  { %5270 = vmatprep.subr.bf16.mxu0 %v9437_v21 }
 0xc90   :  { %5183 = vmatpush1.bf16.msra.mxu1 %v9426_v16  ;;  %v9479_v16 = vld [vmem:[%s12923_s8 + $0x50c] ss:$40 sps:$4 sm:$0xff]  }
 0xc91   :  { %5184 = vmatprep.subr.bf16.mxu1 %v9434_v19 }
 0xc92   :  { %5271 = vmatpush1.bf16.msra.mxu0 %v9435_v26 }
 0xc93   :  { %5272 = vmatprep.subr.bf16.mxu0 %v9443_v42 }
 0xc94   :  { %5185 = vmatpush1.bf16.msra.mxu1 %v9432_v25 }
 0xc95   :  { %5186 = vmatprep.subr.bf16.mxu1 %v9440_v51 }
 0xc96   :  { %5273 = vmatpush1.bf16.msra.mxu0 %v9441_v54 }
 0xc97   :  { %5274 = vmatprep.subr.bf16.mxu0 %v9449_v56 }
 0xc98   :  { %5187 = vmatpush1.bf16.msra.mxu1 %v9438_v53 }
 0xc99   :  { %5188 = vmatprep.subr.bf16.mxu1 %v9446_v41 }
 0xc9a   :  { %5275 = vmatpush1.bf16.msra.mxu0 %v9447_v60  ;;  %v9480_v60 = vld [vmem:[%s12923_s8 + $0x550] ss:$40 sps:$4 sm:$0xff]  }
 0xc9b   :  { %5276 = vmatprep.subr.bf16.mxu0 %v9455_v0 }
 0xc9c   :  { %5189 = vmatpush1.bf16.msra.mxu1 %v9444_v58  ;;  %v9485_v58 = vld [vmem:[%s12923_s8 + $0x55c] ss:$40 sps:$4 sm:$0xff]  }
 0xc9d   :  { %5190 = vmatprep.subr.bf16.mxu1 %v9452_v62  ;;  %v9483_v62 = vld [vmem:[%s12923_s8 + $0x558] ss:$40 sps:$4 sm:$0xff]  }
 0xc9e   :  { %5277 = vmatpush1.bf16.msra.mxu0 %v9453_v30  ;;  %v9491_v30 = vld [vmem:[%s12923_s8 + $0x5ac] ss:$40 sps:$4 sm:$0xff]  }
 0xc9f   :  { %5278 = vmatprep.subr.bf16.mxu0 %v9461_v3 }
 0xca0   :  { %5191 = vmatpush1.bf16.msra.mxu1 %v9450_v63  ;;  %v9488_v63 = vld [vmem:[%s12923_s8 + $0x5a4] ss:$40 sps:$4 sm:$0xff]  }
 0xca1   :  { %5192 = vmatprep.subr.bf16.mxu1 %v9458_v2 }
 0xca2   :  { %5279 = vmatpush1.bf16.msra.mxu0 %v9459_v7  ;;  %v9489_v7 = vld [vmem:[%s12923_s8 + $0x5a8] ss:$40 sps:$4 sm:$0xff]  }
 0xca3   :  { %5280 = vmatprep.subr.bf16.mxu0 %v9467_v38 }
 0xca4   :  { %5193 = vmatpush1.bf16.msra.mxu1 %v9456_v4  ;;  %v9486_v4 = vld [vmem:[%s12923_s8 + $0x5a0] ss:$40 sps:$4 sm:$0xff]  }
 0xca5   :  { %5194 = vmatprep.subr.bf16.mxu1 %v9464_v8 }
 0xca6   :  { %5281 = vmatpush1.bf16.msra.mxu0 %v9465_v11  ;;  %v9492_v11 = vld [vmem:[%s12923_s8 + $0x5f0] ss:$40 sps:$4 sm:$0xff]  }
 0xca7   :  { %5282 = vmatprep.subr.bf16.mxu0 %v9473_v13 }
 0xca8   :  { %5195 = vmatpush1.bf16.msra.mxu1 %v9462_v10 }
 0xca9   :  { %5196 = vmatprep.subr.bf16.mxu1 %v9470_v12  ;;  %v9495_v12 = vld [vmem:[%s12923_s8 + $0x5f8] ss:$40 sps:$4 sm:$0xff]  }
 0xcaa   :  { %5283 = vmatpush1.bf16.msra.mxu0 %v9471_v14  ;;  %v9503_v14 = vld [vmem:[%s12923_s8 + $0x1c] ss:$40 sps:$4 sm:$0xff]  }
 0xcab   :  { %5295 = vmatprep.subr.bf16.mxu0 %v9479_v16  ;;  %v9498_v16 = vld [vmem:[%s12923_s8 + $0x10] ss:$40 sps:$4 sm:$0xff]  }
 0xcac   :  { %5197 = vmatpush1.bf16.msra.mxu1 %v9468_v61  ;;  %v9500_v61 = vld [vmem:[%s12923_s8 + $0x14] ss:$40 sps:$4 sm:$0xff]  }
 0xcad   :  { %5209 = vmatprep.subr.bf16.mxu1 %v9476_v15 }
 0xd17   :  { %v3818_v59 = vpop.xlane.xlu0 %3817 }
 0xd18   :  { %v3824_v48 = vmul.f32 0.003125, %v3818_v59 }
 0xd19   :  { %v3823_v6 = vpop.xlane.xlu1 %3822 }
 0xd1a   :  { %v11563_v27 = vsub.f32 %v11407_v17, %v3824_v48  ;;  %v11566_v31 = vsub.f32 %v11412_v49, %v3824_v48  ;;  %v11569_v36 = vsub.f32 %v11422_v29, %v3824_v48  ;;  %v3825_v37 = vmul.f32 0.003125, %v3823_v6  ;;  %v3860_v48 = vld [vmem:[%s12918_s3] sm:$0x7] }
 0xd1b   :  { %v3869_v6 = vrot.slane %v3860_v48, %v10318_v22  ;;  %v3873_v3 = vrot.slane %v3860_v48, %v10321_v23 }
 0xd1c   :  { %v11572_v39 = vsub.f32 %v11417_v1, %v3825_v37  ;;  %v11575_v9 = vsub.f32 %v11427_v32, %v3825_v37  ;;  %v11578_v55 = vsub.f32 %v11434_v40, %v3825_v37  ;;  %v3832_v57 = vmul.f32 %v11563_v27, %v11563_v27  ;;  %v3883_v37 = vld [vmem:[%s12919_s4] sm:$0x7] }
 0xd1d   :  { %v3833_v34 = vmul.f32 %v11566_v31, %v11566_v31  ;;  %v3834_v44 = vmul.f32 %v11569_v36, %v11569_v36  ;;  %v3896_v10 = vrot.slane %v3883_v37, %v10321_v23 }
 0xd1e   :  { %v3835_v45 = vmul.f32 %v11572_v39, %v11572_v39  ;;  %v3836_v35 = vmul.f32 %v11575_v9, %v11575_v9  ;;  %v3837_v43 = vmul.f32 %v11578_v55, %v11578_v55 }
 0xd1f   :  { %v3838_v47 = vadd.f32 %v3833_v34, %v3832_v57  ;;  %v3839_v33 = vsel %vm50_vm0, %v3834_v44, 0.0  ;;  %v3865_v57 = vrot.slane %v3860_v48, %v10324_v24  ;;  %v9512_v48 = vld [vmem:[%s12923_s8 + $0xb4] ss:$40 sps:$4 sm:$0xff]  }
 0xd20   :  { %v3843_v50 = vadd.f32 %v3836_v35, %v3835_v45  ;;  %v3844_v52 = vsel %vm50_vm0, %v3837_v43, 0.0 }
 0xd21   :  { %v3840_v46 = vadd.f32 %v3839_v33, %v3838_v47  ;;  %v3892_v47 = vrot.slane %v3883_v37, %v10318_v22 }
 0xd22   :  { %v3845_v28 = vadd.f32 %v3844_v52, %v3843_v50  ;;  %v3888_v50 = vrot.slane %v3883_v37, %v10324_v24  ;;  %v9510_v37 = vld [vmem:[%s12923_s8 + $0xb0] ss:$40 sps:$4 sm:$0xff]  }
 0xd23   :  { %3841 = vadd.xlane.f32.xlu0 %v3840_v46 }
 0xd24   :  { %3846 = vadd.xlane.f32.xlu1 %v3845_v28 }
 0xdb0   :  { %v3842_v18 = vpop.xlane.xlu0 %3841 }
 0xdb1   :  { %v3848_v19 = vmul.f32 0.003125, %v3842_v18  ;;  %v3847_v21 = vpop.xlane.xlu1 %3846 }
 0xdb2   :  { %v3849_v25 = vmul.f32 0.003125, %v3847_v21  ;;  %v9506_v21 = vld [vmem:[%s12923_s8 + $0x64] ss:$40 sps:$4 sm:$0xff]  }
 0xdb3   :  { %v3850_v26 = vadd.f32 1e-05, %v3848_v19  ;;  %v9501_v19 = vld [vmem:[%s12923_s8 + $0x18] ss:$40 sps:$4 sm:$0xff]  }
 0xdb4   :  { %v3851_v59 = vadd.f32 1e-05, %v3849_v25  ;;  %v9509_v25 = vld [vmem:[%s12923_s8 + $0x6c] ss:$40 sps:$4 sm:$0xff]  }
 0xdb5   :  { %10034 = vrsqrt.f32 %v3850_v26  ;;  %v9504_v26 = vld [vmem:[%s12923_s8 + $0x60] ss:$40 sps:$4 sm:$0xff]  }
 0xdb6   :  { %10036 = vrsqrt.f32 %v3851_v59  ;;  %v9507_v59 = vld [vmem:[%s12923_s8 + $0x68] ss:$40 sps:$4 sm:$0xff]  }
 0xdbf   :  { %v10035_v34 = vpop.eup %10034 }
 0xdc0   :  { %v10037_v44 = vpop.eup %10036  ;;  %v3855_v45 = vmul.f32 %v10035_v34, %v11566_v31  ;;  %v3854_v35 = vmul.f32 %v10035_v34, %v11563_v27  ;;  %v9474_v27 = vld [vmem:[%s12923_s8 + $0x500] ss:$40 sps:$4 sm:$0xff]   ;;  %v3856_v2 = vmul.f32 %v10035_v34, %v11569_v36  ;;  %v9497_v36 = vld [vmem:[%s12923_s8 + $0x5fc] ss:$40 sps:$4 sm:$0xff]  }
 0xdc1   :  { %v3858_v43 = vmul.f32 %v10037_v44, %v11575_v9  ;;  %v3857_v33 = vmul.f32 %v10037_v44, %v11572_v39  ;;  %v9477_v31 = vld [vmem:[%s12923_s8 + $0x508] ss:$40 sps:$4 sm:$0xff]   ;;  %v9482_v9 = vld [vmem:[%s12923_s8 + $0x554] ss:$40 sps:$4 sm:$0xff]   ;;  %v3859_v0 = vmul.f32 %v10037_v44, %v11578_v55  ;;  %v9518_v34 = vld [vmem:[%s12923_s8 + $0x104] ss:$40 sps:$4 sm:$0xff]  }
 0xdc2   :  { %v3878_v52 = vmul.f32 %v3869_v6, %v3855_v45  ;;  %v3877_v46 = vmul.f32 %v3865_v57, %v3854_v35  ;;  %v9494_v55 = vld [vmem:[%s12923_s8 + $0x5f4] ss:$40 sps:$4 sm:$0xff]   ;;  %v3879_v38 = vmul.f32 %v3873_v3, %v3856_v2  ;;  %v9516_v45 = vld [vmem:[%s12923_s8 + $0x100] ss:$40 sps:$4 sm:$0xff]  }
 0xdc3   :  { %v3881_v28 = vmul.f32 %v3869_v6, %v3858_v43  ;;  %v3880_v51 = vmul.f32 %v3865_v57, %v3857_v33  ;;  %v3882_v8 = vmul.f32 %v3873_v3, %v3859_v0  ;;  %v9515_v6 = vld [vmem:[%s12923_s8 + $0xbc] ss:$40 sps:$4 sm:$0xff]   ;;  %v9513_v57 = vld [vmem:[%s12923_s8 + $0xb8] ss:$40 sps:$4 sm:$0xff]   ;;  %v9521_v44 = vld [vmem:[%s12923_s8 + $0x10c] ss:$40 sps:$4 sm:$0xff]  }
 0xdc4   :  { %v3901_v42 = vadd.f32 %v3892_v47, %v3878_v52  ;;  %v3900_v54 = vadd.f32 %v3888_v50, %v3877_v46  ;;  %v3902_v15 = vadd.f32 %v3896_v10, %v3879_v38  ;;  %v9519_v35 = vld [vmem:[%s12923_s8 + $0x108] ss:$40 sps:$4 sm:$0xff]   ;;  %v9524_v43 = vld [vmem:[%s12923_s8 + $0x154] ss:$40 sps:$4 sm:$0xff]   ;;  %v9530_v52 = vld [vmem:[%s12923_s8 + $0x1a4] ss:$40 sps:$4 sm:$0xff]  }
 0xdc5   :  { %v3904_v53 = vadd.f32 %v3892_v47, %v3881_v28  ;;  %v3903_v41 = vadd.f32 %v3888_v50, %v3880_v51  ;;  %v3905_v13 = vadd.f32 %v3896_v10, %v3882_v8  ;;  %v9527_v47 = vld [vmem:[%s12923_s8 + $0x15c] ss:$40 sps:$4 sm:$0xff]   ;;  %v9522_v33 = vld [vmem:[%s12923_s8 + $0x150] ss:$40 sps:$4 sm:$0xff]   ;;  %v9533_v46 = vld [vmem:[%s12923_s8 + $0x1ac] ss:$40 sps:$4 sm:$0xff]  }
 0xdc6   :  { %v9525_v50 = vld [vmem:[%s12923_s8 + $0x158] ss:$40 sps:$4 sm:$0xff]   ;;  %v9531_v51 = vld [vmem:[%s12923_s8 + $0x1a8] ss:$40 sps:$4 sm:$0xff]   ;;  %v9554_v0 = vld [vmem:[%s12923_s8 + $0x2e4] ss:$40 sps:$4 sm:$0xff]  }
 0xdc7   :  { %v11686_v56 = vpack.c.bf16 %v3904_v53, %v3901_v42  ;;  %v11694_v39 = vpack.c.bf16 %v3903_v41, %v3900_v54  ;;  %v11751_v18 = vpack.c.bf16 %v3905_v13, %v3902_v15  ;;  %v9528_v28 = vld [vmem:[%s12923_s8 + $0x1a0] ss:$40 sps:$4 sm:$0xff]   ;;  %v9536_v42 = vld [vmem:[%s12923_s8 + $0x1f4] ss:$40 sps:$4 sm:$0xff]   ;;  %v9534_v54 = vld [vmem:[%s12923_s8 + $0x1f0] ss:$40 sps:$4 sm:$0xff]  }
 0xdc8   :  { %v9539_v53 = vld [vmem:[%s12923_s8 + $0x1fc] ss:$40 sps:$4 sm:$0xff]   ;;  %v9537_v41 = vld [vmem:[%s12923_s8 + $0x1f8] ss:$40 sps:$4 sm:$0xff]   ;;  %v9557_v2 = vld [vmem:[%s12923_s8 + $0x2ec] ss:$40 sps:$4 sm:$0xff]  }
 0xdc9   :  { %5198 = vmatprep.mubr.bf16.mxu1 %v11686_v56  ;;  %5284 = vmatprep.mubr.bf16.mxu0 %v11686_v56  ;;  %v9552_v3 = vld [vmem:[%s12923_s8 + $0x2e0] ss:$40 sps:$4 sm:$0xff]   ;;  %v9566_v38 = vld [vmem:[%s12923_s8 + $0x384] ss:$40 sps:$4 sm:$0xff]   ;;  %v9572_v13 = vld [vmem:[%s12923_s8 + $0x3d4] ss:$40 sps:$4 sm:$0xff]  }
 0xdca   :  { %5199 = vmatmul.mubr.bf16.vlgmr.msra.gmra.mrb[60].mxu1 %v11694_v39  ;;  %5285 = vmatmul.mubr.bf16.vlgmr.msra.gmra.mrb[44].mxu0 %v11694_v39  ;;  %v9561_v8 = vld [vmem:[%s12923_s8 + $0x338] ss:$40 sps:$4 sm:$0xff]   ;;  %v9569_v10 = vld [vmem:[%s12923_s8 + $0x38c] ss:$40 sps:$4 sm:$0xff]  }
 0xdcb   :  { %5210 = vmatpush1.bf16.msra.mxu1 %v9474_v27  ;;  %5296 = vmatpush1.bf16.msra.mxu0 %v9477_v31  ;;  %v9542_v27 = vld [vmem:[%s12923_s8 + $0x244] ss:$40 sps:$4 sm:$0xff]   ;;  %v9573_v15 = vld [vmem:[%s12923_s8 + $0x3d8] ss:$40 sps:$4 sm:$0xff]  }
 0xdcc   :  { %5211 = vmatprep.subr.bf16.mxu1 %v9482_v9  ;;  %5297 = vmatprep.subr.bf16.mxu0 %v9485_v58  ;;  %v9545_v31 = vld [vmem:[%s12923_s8 + $0x24c] ss:$40 sps:$4 sm:$0xff]   ;;  %v9540_v9 = vld [vmem:[%s12923_s8 + $0x240] ss:$40 sps:$4 sm:$0xff]  }
 0xdcd   :  { %5241 = vmatprep.mubr.bf16.mxu1 %v10068_v5  ;;  %5327 = vmatprep.mubr.bf16.mxu0 %v10068_v5  ;;  %v9543_v58 = vld [vmem:[%s12923_s8 + $0x248] ss:$40 sps:$4 sm:$0xff]  }
 0xdcf   :  { %5212 = vmatpush1.bf16.msra.mxu1 %v9480_v60  ;;  %5298 = vmatpush1.bf16.msra.mxu0 %v9483_v62  ;;  %v9548_v60 = vld [vmem:[%s12923_s8 + $0x294] ss:$40 sps:$4 sm:$0xff]  }
 0xdd0   :  { %5213 = vmatprep.subr.bf16.mxu1 %v9488_v63  ;;  %5299 = vmatprep.subr.bf16.mxu0 %v9491_v30  ;;  %v9551_v62 = vld [vmem:[%s12923_s8 + $0x29c] ss:$40 sps:$4 sm:$0xff]   ;;  %v9546_v63 = vld [vmem:[%s12923_s8 + $0x290] ss:$40 sps:$4 sm:$0xff]  }
 0xdd1   :  { %v9549_v30 = vld [vmem:[%s12923_s8 + $0x298] ss:$40 sps:$4 sm:$0xff]  }
 0xdd3   :  { %5214 = vmatpush1.bf16.msra.mxu1 %v9486_v4  ;;  %5300 = vmatpush1.bf16.msra.mxu0 %v9489_v7  ;;  %v9555_v4 = vld [vmem:[%s12923_s8 + $0x2e8] ss:$40 sps:$4 sm:$0xff]   ;;  %v9560_v7 = vld [vmem:[%s12923_s8 + $0x334] ss:$40 sps:$4 sm:$0xff]  }
 0xdd4   :  { %5215 = vmatprep.subr.bf16.mxu1 %v9494_v55  ;;  %5301 = vmatprep.subr.bf16.mxu0 %v9497_v36  ;;  %v9563_v55 = vld [vmem:[%s12923_s8 + $0x33c] ss:$40 sps:$4 sm:$0xff]   ;;  %v9558_v36 = vld [vmem:[%s12923_s8 + $0x330] ss:$40 sps:$4 sm:$0xff]  }
 0xdd7   :  { %5216 = vmatpush1.bf16.msra.mxu1 %v9492_v11  ;;  %5302 = vmatpush1.bf16.msra.mxu0 %v9495_v12  ;;  %v9564_v11 = vld [vmem:[%s12923_s8 + $0x380] ss:$40 sps:$4 sm:$0xff]  }
 0xdd8   :  { %5338 = vmatprep.subr.bf16.mxu1 %v9500_v61  ;;  %5424 = vmatprep.subr.bf16.mxu0 %v9503_v14  ;;  %v9567_v12 = vld [vmem:[%s12923_s8 + $0x388] ss:$40 sps:$4 sm:$0xff]   ;;  %v9575_v61 = vld [vmem:[%s12923_s8 + $0x3dc] ss:$40 sps:$4 sm:$0xff]  }
 0xdd9   :  { %v9570_v14 = vld [vmem:[%s12923_s8 + $0x3d0] ss:$40 sps:$4 sm:$0xff]  }
 0xdda   :  { %8253 = vmatmul.mubr.msk.bf16.vlgmr.msra.gmra.mrb[60].mxu1 %vm50_vm0, %v11751_v18  ;;  %8254 = vmatmul.mubr.msk.bf16.vlgmr.msra.gmra.mrb[44].mxu0 %vm50_vm0, %v11751_v18 }
 0xddb   :  { %5339 = vmatpush1.bf16.msra.mxu1 %v9498_v16  ;;  %5370 = vmatprep.mubr.bf16.mxu1 %v11686_v56  ;;  %v9578_v16 = vld [vmem:[%s12923_s8 + $0x424] ss:$40 sps:$4 sm:$0xff]  }
 0xddc   :  { %5425 = vmatpush1.bf16.msra.mxu0 %v9501_v19  ;;  %5456 = vmatprep.mubr.bf16.mxu0 %v11686_v56  ;;  %v9581_v19 = vld [vmem:[%s12923_s8 + $0x42c] ss:$40 sps:$4 sm:$0xff]  }
 0xddd   :  { %5340 = vmatprep.subr.bf16.mxu1 %v9506_v21  ;;  %5426 = vmatprep.subr.bf16.mxu0 %v9509_v25  ;;  %v9576_v21 = vld [vmem:[%s12923_s8 + $0x420] ss:$40 sps:$4 sm:$0xff]  }
 0xdde   :  { %v9579_v25 = vld [vmem:[%s12923_s8 + $0x428] ss:$40 sps:$4 sm:$0xff]  }
 0xddf   :  { %5341 = vmatpush1.bf16.msra.mxu1 %v9504_v26  ;;  %v9584_v26 = vld [vmem:[%s12923_s8 + $0x474] ss:$40 sps:$4 sm:$0xff]  }
 0xde0   :  { %5427 = vmatpush1.bf16.msra.mxu0 %v9507_v59  ;;  %5342 = vmatprep.subr.bf16.mxu1 %v9512_v48  ;;  %v9587_v59 = vld [vmem:[%s12923_s8 + $0x47c] ss:$40 sps:$4 sm:$0xff]   ;;  %v9582_v48 = vld [vmem:[%s12923_s8 + $0x470] ss:$40 sps:$4 sm:$0xff]  }
 0xde1   :  { %5428 = vmatprep.subr.bf16.mxu0 %v9515_v6  ;;  %v9585_v6 = vld [vmem:[%s12923_s8 + $0x478] ss:$40 sps:$4 sm:$0xff]  }
 0xde3   :  { %5343 = vmatpush1.bf16.msra.mxu1 %v9510_v37  ;;  %v9590_v37 = vld [vmem:[%s12923_s8 + $0x4c4] ss:$40 sps:$4 sm:$0xff]  }
 0xde4   :  { %5429 = vmatpush1.bf16.msra.mxu0 %v9513_v57  ;;  %5344 = vmatprep.subr.bf16.mxu1 %v9518_v34  ;;  %v9593_v57 = vld [vmem:[%s12923_s8 + $0x4cc] ss:$40 sps:$4 sm:$0xff]   ;;  %v9588_v34 = vld [vmem:[%s12923_s8 + $0x4c0] ss:$40 sps:$4 sm:$0xff]  }
 0xde5   :  { %5430 = vmatprep.subr.bf16.mxu0 %v9521_v44  ;;  %v9591_v44 = vld [vmem:[%s12923_s8 + $0x4c8] ss:$40 sps:$4 sm:$0xff]  }
 0xde7   :  { %5345 = vmatpush1.bf16.msra.mxu1 %v9516_v45  ;;  %v9596_v45 = vld [vmem:[%s12923_s8 + $0x514] ss:$40 sps:$4 sm:$0xff]  }
 0xde8   :  { %5431 = vmatpush1.bf16.msra.mxu0 %v9519_v35  ;;  %5346 = vmatprep.subr.bf16.mxu1 %v9524_v43  ;;  %v9599_v35 = vld [vmem:[%s12923_s8 + $0x51c] ss:$40 sps:$4 sm:$0xff]   ;;  %v9594_v43 = vld [vmem:[%s12923_s8 + $0x510] ss:$40 sps:$4 sm:$0xff]  }
 0xde9   :  { %5432 = vmatprep.subr.bf16.mxu0 %v9527_v47  ;;  %v9597_v47 = vld [vmem:[%s12923_s8 + $0x518] ss:$40 sps:$4 sm:$0xff]  }
 0xdeb   :  { %5347 = vmatpush1.bf16.msra.mxu1 %v9522_v33  ;;  %v9602_v33 = vld [vmem:[%s12923_s8 + $0x564] ss:$40 sps:$4 sm:$0xff]  }
 0xdec   :  { %5433 = vmatpush1.bf16.msra.mxu0 %v9525_v50  ;;  %5348 = vmatprep.subr.bf16.mxu1 %v9530_v52  ;;  %v9605_v50 = vld [vmem:[%s12923_s8 + $0x56c] ss:$40 sps:$4 sm:$0xff]   ;;  %v9600_v52 = vld [vmem:[%s12923_s8 + $0x560] ss:$40 sps:$4 sm:$0xff]  }
 0xded   :  { %5434 = vmatprep.subr.bf16.mxu0 %v9533_v46  ;;  %v9603_v46 = vld [vmem:[%s12923_s8 + $0x568] ss:$40 sps:$4 sm:$0xff]  }
 0xdef   :  { %5349 = vmatpush1.bf16.msra.mxu1 %v9528_v28  ;;  %v9608_v28 = vld [vmem:[%s12923_s8 + $0x5b4] ss:$40 sps:$4 sm:$0xff]  }
 0xdf0   :  { %5435 = vmatpush1.bf16.msra.mxu0 %v9531_v51  ;;  %5350 = vmatprep.subr.bf16.mxu1 %v9536_v42  ;;  %v9611_v51 = vld [vmem:[%s12923_s8 + $0x5bc] ss:$40 sps:$4 sm:$0xff]   ;;  %v9606_v42 = vld [vmem:[%s12923_s8 + $0x5b0] ss:$40 sps:$4 sm:$0xff]  }
 0xdf1   :  { %5436 = vmatprep.subr.bf16.mxu0 %v9539_v53  ;;  %v9609_v53 = vld [vmem:[%s12923_s8 + $0x5b8] ss:$40 sps:$4 sm:$0xff]  }
 0xdf3   :  { %5351 = vmatpush1.bf16.msra.mxu1 %v9534_v54  ;;  %v9614_v54 = vld [vmem:[%s12923_s8 + $0x604] ss:$40 sps:$4 sm:$0xff]  }
 0xdf4   :  { %5437 = vmatpush1.bf16.msra.mxu0 %v9537_v41  ;;  %5352 = vmatprep.subr.bf16.mxu1 %v9542_v27  ;;  %v9617_v41 = vld [vmem:[%s12923_s8 + $0x60c] ss:$40 sps:$4 sm:$0xff]   ;;  %v9612_v27 = vld [vmem:[%s12923_s8 + $0x600] ss:$40 sps:$4 sm:$0xff]  }
 0xdf5   :  { %5438 = vmatprep.subr.bf16.mxu0 %v9545_v31  ;;  %v9615_v31 = vld [vmem:[%s12923_s8 + $0x608] ss:$40 sps:$4 sm:$0xff]  }
 0xdf7   :  { %5353 = vmatpush1.bf16.msra.mxu1 %v9540_v9  ;;  %v9620_v9 = vld [vmem:[%s12923_s8 + $0x24] ss:$40 sps:$4 sm:$0xff]  }
 0xdf8   :  { %5439 = vmatpush1.bf16.msra.mxu0 %v9543_v58  ;;  %5354 = vmatprep.subr.bf16.mxu1 %v9548_v60  ;;  %v9680_v58 = vld [vmem:[%s12925_s10 + $0x4] ss:$12 sps:$4 sm:$0xff]   ;;  %v9618_v60 = vld [vmem:[%s12923_s8 + $0x20] ss:$40 sps:$4 sm:$0xff]  }
 0xdf9   :  { %5440 = vmatprep.subr.bf16.mxu0 %v9551_v62  ;;  %v9623_v62 = vld [vmem:[%s12923_s8 + $0x74] ss:$40 sps:$4 sm:$0xff]  }
 0xdfb   :  { %5355 = vmatpush1.bf16.msra.mxu1 %v9546_v63  ;;  %v9678_v63 = vld [vmem:[%s12925_s10] ss:$12 sps:$4 sm:$0xff]  }
 0xdfc   :  { %5441 = vmatpush1.bf16.msra.mxu0 %v9549_v30  ;;  %5356 = vmatprep.subr.bf16.mxu1 %v9554_v0  ;;  %v9683_v30 = vld [vmem:[%s12925_s10 + $0x1c] ss:$12 sps:$4 sm:$0xff]   ;;  %v9621_v0 = vld [vmem:[%s12923_s8 + $0x70] ss:$40 sps:$4 sm:$0xff]  }
 0xdfd   :  { %5442 = vmatprep.subr.bf16.mxu0 %v9557_v2  ;;  %v9626_v2 = vld [vmem:[%s12923_s8 + $0xc4] ss:$40 sps:$4 sm:$0xff]  }
 0xdff   :  { %5357 = vmatpush1.bf16.msra.mxu1 %v9552_v3  ;;  %v9681_v3 = vld [vmem:[%s12925_s10 + $0x18] ss:$12 sps:$4 sm:$0xff]  }
 0xe00   :  { %5443 = vmatpush1.bf16.msra.mxu0 %v9555_v4  ;;  %5358 = vmatprep.subr.bf16.mxu1 %v9560_v7  ;;  %v9686_v4 = vld [vmem:[%s12925_s10 + $0x34] ss:$12 sps:$4 sm:$0xff]  }
 0xe01   :  { %5444 = vmatprep.subr.bf16.mxu0 %v9563_v55  ;;  %v9629_v7 = vld [vmem:[%s12923_s8 + $0x114] ss:$40 sps:$4 sm:$0xff]  }
 0xe02   :  { %v9684_v55 = vld [vmem:[%s12925_s10 + $0x30] ss:$12 sps:$4 sm:$0xff]  }
 0xe03   :  { %5359 = vmatpush1.bf16.msra.mxu1 %v9558_v36  ;;  %v9689_v36 = vld [vmem:[%s12925_s10 + $0x4c] ss:$12 sps:$4 sm:$0xff]  }
 0xe04   :  { %5445 = vmatpush1.bf16.msra.mxu0 %v9561_v8  ;;  %5360 = vmatprep.subr.bf16.mxu1 %v9566_v38  ;;  %v9627_v8 = vld [vmem:[%s12923_s8 + $0x110] ss:$40 sps:$4 sm:$0xff]   ;;  %v9632_v38 = vld [vmem:[%s12923_s8 + $0x164] ss:$40 sps:$4 sm:$0xff]  }
 0xe05   :  { %5446 = vmatprep.subr.bf16.mxu0 %v9569_v10  ;;  %v9687_v10 = vld [vmem:[%s12925_s10 + $0x48] ss:$12 sps:$4 sm:$0xff]  }
 0xe07   :  { %5361 = vmatpush1.bf16.msra.mxu1 %v9564_v11  ;;  %v9692_v11 = vld [vmem:[%s12925_s10 + $0x64] ss:$12 sps:$4 sm:$0xff]  }
 0xe08   :  { %5447 = vmatpush1.bf16.msra.mxu0 %v9567_v12  ;;  %5362 = vmatprep.subr.bf16.mxu1 %v9572_v13  ;;  %v9630_v12 = vld [vmem:[%s12923_s8 + $0x160] ss:$40 sps:$4 sm:$0xff]   ;;  %v9635_v13 = vld [vmem:[%s12923_s8 + $0x1b4] ss:$40 sps:$4 sm:$0xff]  }
 0xe09   :  { %5448 = vmatprep.subr.bf16.mxu0 %v9575_v61  ;;  %v9690_v61 = vld [vmem:[%s12925_s10 + $0x60] ss:$12 sps:$4 sm:$0xff]  }
 0xe0b   :  { %5363 = vmatpush1.bf16.msra.mxu1 %v9570_v14  ;;  %v9695_v14 = vld [vmem:[%s12925_s10 + $0x7c] ss:$12 sps:$4 sm:$0xff]  }
 0xe0c   :  { %5449 = vmatpush1.bf16.msra.mxu0 %v9573_v15  ;;  %5364 = vmatprep.subr.bf16.mxu1 %v9578_v16  ;;  %v9633_v15 = vld [vmem:[%s12923_s8 + $0x1b0] ss:$40 sps:$4 sm:$0xff]   ;;  %v9638_v16 = vld [vmem:[%s12923_s8 + $0x204] ss:$40 sps:$4 sm:$0xff]  }
 0xe0d   :  { %5450 = vmatprep.subr.bf16.mxu0 %v9581_v19  ;;  %v9693_v19 = vld [vmem:[%s12925_s10 + $0x78] ss:$12 sps:$4 sm:$0xff]  }
 0xe0f   :  { %5365 = vmatpush1.bf16.msra.mxu1 %v9576_v21  ;;  %v9698_v21 = vld [vmem:[%s12925_s10 + $0x94] ss:$12 sps:$4 sm:$0xff]  }
 0xe10   :  { %5451 = vmatpush1.bf16.msra.mxu0 %v9579_v25  ;;  %5366 = vmatprep.subr.bf16.mxu1 %v9584_v26  ;;  %v9636_v25 = vld [vmem:[%s12923_s8 + $0x200] ss:$40 sps:$4 sm:$0xff]   ;;  %v9641_v26 = vld [vmem:[%s12923_s8 + $0x254] ss:$40 sps:$4 sm:$0xff]  }
 0xe11   :  { %5452 = vmatprep.subr.bf16.mxu0 %v9587_v59  ;;  %v9696_v59 = vld [vmem:[%s12925_s10 + $0x90] ss:$12 sps:$4 sm:$0xff]  }
 0xe13   :  { %5367 = vmatpush1.bf16.msra.mxu1 %v9582_v48  ;;  %v9701_v48 = vld [vmem:[%s12925_s10 + $0xac] ss:$12 sps:$4 sm:$0xff]  }
 0xe14   :  { %5453 = vmatpush1.bf16.msra.mxu0 %v9585_v6  ;;  %5368 = vmatprep.subr.bf16.mxu1 %v9590_v37  ;;  %v9639_v6 = vld [vmem:[%s12923_s8 + $0x250] ss:$40 sps:$4 sm:$0xff]   ;;  %v9644_v37 = vld [vmem:[%s12923_s8 + $0x2a4] ss:$40 sps:$4 sm:$0xff]  }
 0xe15   :  { %5454 = vmatprep.subr.bf16.mxu0 %v9593_v57  ;;  %v9699_v57 = vld [vmem:[%s12925_s10 + $0xa8] ss:$12 sps:$4 sm:$0xff]  }
 0xe17   :  { %5369 = vmatpush1.bf16.msra.mxu1 %v9588_v34  ;;  %v9704_v34 = vld [vmem:[%s12925_s10 + $0xc4] ss:$12 sps:$4 sm:$0xff]  }
 0xe18   :  { %5455 = vmatpush1.bf16.msra.mxu0 %v9591_v44  ;;  %5381 = vmatprep.subr.bf16.mxu1 %v9596_v45  ;;  %v9642_v44 = vld [vmem:[%s12923_s8 + $0x2a0] ss:$40 sps:$4 sm:$0xff]   ;;  %v9647_v45 = vld [vmem:[%s12923_s8 + $0x2f4] ss:$40 sps:$4 sm:$0xff]  }
 0xe19   :  { %5467 = vmatprep.subr.bf16.mxu0 %v9599_v35  ;;  %v9702_v35 = vld [vmem:[%s12925_s10 + $0xc0] ss:$12 sps:$4 sm:$0xff]  }
 0xe1a   :  { %5371 = vmatmul.mubr.bf16.vlgmr.msra.gmra.mrb[64].mxu1 %v11694_v39 }
 0xe1b   :  { %5457 = vmatmul.mubr.bf16.vlgmr.msra.gmra.mrb[48].mxu0 %v11694_v39  ;;  %5382 = vmatpush1.bf16.msra.mxu1 %v9594_v43  ;;  %v9709_v43 = vld [vmem:[%s12925_s10 + $0xdc] ss:$12 sps:$4 sm:$0xff]  }
 0xe1c   :  { %5468 = vmatpush1.bf16.msra.mxu0 %v9597_v47  ;;  %5383 = vmatprep.subr.bf16.mxu1 %v9602_v33  ;;  %v9645_v47 = vld [vmem:[%s12923_s8 + $0x2f0] ss:$40 sps:$4 sm:$0xff]   ;;  %v9650_v33 = vld [vmem:[%s12923_s8 + $0x344] ss:$40 sps:$4 sm:$0xff]  }
 0xe1d   :  { %5469 = vmatprep.subr.bf16.mxu0 %v9605_v50  ;;  %5413 = vmatprep.mubr.bf16.mxu1 %v10068_v5  ;;  %v9707_v50 = vld [vmem:[%s12925_s10 + $0xd8] ss:$12 sps:$4 sm:$0xff]  }
 0xe1e   :  { %5499 = vmatprep.mubr.bf16.mxu0 %v10068_v5 }
 0xe1f   :  { %5384 = vmatpush1.bf16.msra.mxu1 %v9600_v52  ;;  %v9714_v52 = vld [vmem:[%s12925_s10 + $0xf4] ss:$12 sps:$4 sm:$0xff]  }
 0xe20   :  { %5470 = vmatpush1.bf16.msra.mxu0 %v9603_v46  ;;  %5385 = vmatprep.subr.bf16.mxu1 %v9608_v28  ;;  %v9648_v46 = vld [vmem:[%s12923_s8 + $0x340] ss:$40 sps:$4 sm:$0xff]   ;;  %v9653_v28 = vld [vmem:[%s12923_s8 + $0x394] ss:$40 sps:$4 sm:$0xff]  }
 0xe21   :  { %5471 = vmatprep.subr.bf16.mxu0 %v9611_v51  ;;  %v9712_v51 = vld [vmem:[%s12925_s10 + $0xf0] ss:$12 sps:$4 sm:$0xff]  }
 0xe23   :  { %5386 = vmatpush1.bf16.msra.mxu1 %v9606_v42  ;;  %v9719_v42 = vld [vmem:[%s12925_s10 + $0x10c] ss:$12 sps:$4 sm:$0xff]  }
 0xe24   :  { %5472 = vmatpush1.bf16.msra.mxu0 %v9609_v53  ;;  %5387 = vmatprep.subr.bf16.mxu1 %v9614_v54  ;;  %v9651_v53 = vld [vmem:[%s12923_s8 + $0x390] ss:$40 sps:$4 sm:$0xff]   ;;  %v9656_v54 = vld [vmem:[%s12923_s8 + $0x3e4] ss:$40 sps:$4 sm:$0xff]  }
 0xe25   :  { %5473 = vmatprep.subr.bf16.mxu0 %v9617_v41  ;;  %v9717_v41 = vld [vmem:[%s12925_s10 + $0x108] ss:$12 sps:$4 sm:$0xff]  }
 0xe27   :  { %5388 = vmatpush1.bf16.msra.mxu1 %v9612_v27  ;;  %v9724_v27 = vld [vmem:[%s12925_s10 + $0x124] ss:$12 sps:$4 sm:$0xff]  }
 0xe28   :  { %5474 = vmatpush1.bf16.msra.mxu0 %v9615_v31  ;;  %5510 = vmatprep.subr.bf16.mxu1 %v9620_v9  ;;  %v9654_v31 = vld [vmem:[%s12923_s8 + $0x3e0] ss:$40 sps:$4 sm:$0xff]   ;;  %v9659_v9 = vld [vmem:[%s12923_s8 + $0x434] ss:$40 sps:$4 sm:$0xff]  }
 0xe29   :  { %7243 = vmatprep.subr.bf16.mxu0 %v9680_v58  ;;  %v9722_v58 = vld [vmem:[%s12925_s10 + $0x120] ss:$12 sps:$4 sm:$0xff]  }
 0xe2a   :  { %8255 = vmatmul.mubr.msk.bf16.vlgmr.msra.gmra.mrb[64].mxu1 %vm50_vm0, %v11751_v18 }
 0xe2b   :  { %8256 = vmatmul.mubr.msk.bf16.vlgmr.msra.gmra.mrb[48].mxu0 %vm50_vm0, %v11751_v18  ;;  %5511 = vmatpush1.bf16.msra.mxu1 %v9618_v60  ;;  %v9729_v60 = vld [vmem:[%s12925_s10 + $0x13c] ss:$12 sps:$4 sm:$0xff]  }
 0xe2c   :  { %5542 = vmatprep.mubr.bf16.mxu1 %v11686_v56  ;;  %5512 = vmatprep.subr.bf16.mxu1 %v9623_v62  ;;  %v9624_v56 = vld [vmem:[%s12923_s8 + $0xc0] ss:$40 sps:$4 sm:$0xff]   ;;  %v9657_v62 = vld [vmem:[%s12923_s8 + $0x430] ss:$40 sps:$4 sm:$0xff]  }
 0xe2d   :  { %7244 = vmatpush1.bf16.msra.mxu0 %v9678_v63  ;;  %v9662_v63 = vld [vmem:[%s12923_s8 + $0x484] ss:$40 sps:$4 sm:$0xff]  }
 0xe2e   :  { %7245 = vmatprep.subr.bf16.mxu0 %v9683_v30  ;;  %v9727_v30 = vld [vmem:[%s12925_s10 + $0x138] ss:$12 sps:$4 sm:$0xff]  }
 0xe2f   :  { %5513 = vmatpush1.bf16.msra.mxu1 %v9621_v0  ;;  %v9734_v0 = vld [vmem:[%s12925_s10 + $0x154] ss:$12 sps:$4 sm:$0xff]  }
 0xe30   :  { %5514 = vmatprep.subr.bf16.mxu1 %v9626_v2  ;;  %v9660_v2 = vld [vmem:[%s12923_s8 + $0x480] ss:$40 sps:$4 sm:$0xff]  }
 0xe31   :  { %7246 = vmatpush1.bf16.msra.mxu0 %v9681_v3  ;;  %v9665_v3 = vld [vmem:[%s12923_s8 + $0x4d4] ss:$40 sps:$4 sm:$0xff]  }
 0xe32   :  { %7247 = vmatprep.subr.bf16.mxu0 %v9686_v4  ;;  %v9732_v4 = vld [vmem:[%s12925_s10 + $0x150] ss:$12 sps:$4 sm:$0xff]  }
 0xe33   :  { %5515 = vmatpush1.bf16.msra.mxu1 %v9624_v56  ;;  %v9739_v56 = vld [vmem:[%s12925_s10 + $0x16c] ss:$12 sps:$4 sm:$0xff]  }
 0xe34   :  { %5516 = vmatprep.subr.bf16.mxu1 %v9629_v7  ;;  %v9663_v7 = vld [vmem:[%s12923_s8 + $0x4d0] ss:$40 sps:$4 sm:$0xff]  }
 0xe35   :  { %7248 = vmatpush1.bf16.msra.mxu0 %v9684_v55  ;;  %v9668_v55 = vld [vmem:[%s12923_s8 + $0x524] ss:$40 sps:$4 sm:$0xff]  }
 0xe36   :  { %7249 = vmatprep.subr.bf16.mxu0 %v9689_v36  ;;  %v9737_v36 = vld [vmem:[%s12925_s10 + $0x168] ss:$12 sps:$4 sm:$0xff]  }
 0xe37   :  { %5517 = vmatpush1.bf16.msra.mxu1 %v9627_v8  ;;  %v9744_v8 = vld [vmem:[%s12925_s10 + $0x184] ss:$12 sps:$4 sm:$0xff]  }
 0xe38   :  { %5518 = vmatprep.subr.bf16.mxu1 %v9632_v38  ;;  %v9666_v38 = vld [vmem:[%s12923_s8 + $0x520] ss:$40 sps:$4 sm:$0xff]  }
 0xe39   :  { %7250 = vmatpush1.bf16.msra.mxu0 %v9687_v10  ;;  %v9671_v10 = vld [vmem:[%s12923_s8 + $0x574] ss:$40 sps:$4 sm:$0xff]  }
 0xe3a   :  { %7251 = vmatprep.subr.bf16.mxu0 %v9692_v11  ;;  %v9669_v11 = vld [vmem:[%s12923_s8 + $0x570] ss:$40 sps:$4 sm:$0xff]  }
 0xe3b   :  { %5519 = vmatpush1.bf16.msra.mxu1 %v9630_v12  ;;  %v9674_v12 = vld [vmem:[%s12923_s8 + $0x5c4] ss:$40 sps:$4 sm:$0xff]  }
 0xe3c   :  { %5520 = vmatprep.subr.bf16.mxu1 %v9635_v13  ;;  %v9672_v13 = vld [vmem:[%s12923_s8 + $0x5c0] ss:$40 sps:$4 sm:$0xff]  }
 0xe3d   :  { %7252 = vmatpush1.bf16.msra.mxu0 %v9690_v61  ;;  %v9705_v61 = vld [vmem:[%s12925_s10 + $0xc8] ss:$12 sps:$4 sm:$0xff]  }
 0xe3e   :  { %7253 = vmatprep.subr.bf16.mxu0 %v9695_v14  ;;  %v9706_v14 = vld [vmem:[%s12925_s10 + $0x8] ss:$12 sps:$4 sm:$0xff]  }
 0xe3f   :  { %5521 = vmatpush1.bf16.msra.mxu1 %v9633_v15  ;;  %v9710_v15 = vld [vmem:[%s12925_s10 + $0xe0] ss:$12 sps:$4 sm:$0xff]  }
 0xe40   :  { %5522 = vmatprep.subr.bf16.mxu1 %v9638_v16  ;;  %v9711_v16 = vld [vmem:[%s12925_s10 + $0x20] ss:$12 sps:$4 sm:$0xff]  }
 0xe41   :  { %7254 = vmatpush1.bf16.msra.mxu0 %v9693_v19  ;;  %v9715_v19 = vld [vmem:[%s12925_s10 + $0xf8] ss:$12 sps:$4 sm:$0xff]  }
 0xe42   :  { %7255 = vmatprep.subr.bf16.mxu0 %v9698_v21  ;;  %v9716_v21 = vld [vmem:[%s12925_s10 + $0x38] ss:$12 sps:$4 sm:$0xff]  }
 0xe43   :  { %5523 = vmatpush1.bf16.msra.mxu1 %v9636_v25  ;;  %v9721_v25 = vld [vmem:[%s12925_s10 + $0x50] ss:$12 sps:$4 sm:$0xff]  }
 0xe44   :  { %5524 = vmatprep.subr.bf16.mxu1 %v9641_v26  ;;  %v9725_v26 = vld [vmem:[%s12925_s10 + $0x128] ss:$12 sps:$4 sm:$0xff]  }
 0xe45   :  { %7256 = vmatpush1.bf16.msra.mxu0 %v9696_v59  ;;  %v9726_v59 = vld [vmem:[%s12925_s10 + $0x68] ss:$12 sps:$4 sm:$0xff]  }
 0xe46   :  { %7257 = vmatprep.subr.bf16.mxu0 %v9701_v48  ;;  %v9730_v48 = vld [vmem:[%s12925_s10 + $0x140] ss:$12 sps:$4 sm:$0xff]  }
 0xe47   :  { %5525 = vmatpush1.bf16.msra.mxu1 %v9639_v6  ;;  %v9731_v6 = vld [vmem:[%s12925_s10 + $0x80] ss:$12 sps:$4 sm:$0xff]  }
 0xe48   :  { %5526 = vmatprep.subr.bf16.mxu1 %v9644_v37  ;;  %v9735_v37 = vld [vmem:[%s12925_s10 + $0x158] ss:$12 sps:$4 sm:$0xff]  }
 0xe49   :  { %7258 = vmatpush1.bf16.msra.mxu0 %v9699_v57  ;;  %v9736_v57 = vld [vmem:[%s12925_s10 + $0x98] ss:$12 sps:$4 sm:$0xff]  }
 0xe4a   :  { %7259 = vmatprep.subr.bf16.mxu0 %v9704_v34  ;;  %v9740_v34 = vld [vmem:[%s12925_s10 + $0x170] ss:$12 sps:$4 sm:$0xff]  }
 0xe4b   :  { %5527 = vmatpush1.bf16.msra.mxu1 %v9642_v44  ;;  %v9741_v44 = vld [vmem:[%s12925_s10 + $0xb0] ss:$12 sps:$4 sm:$0xff]  }
 0xe4c   :  { %5528 = vmatprep.subr.bf16.mxu1 %v9647_v45  ;;  %v9745_v45 = vld [vmem:[%s12925_s10 + $0x248] ss:$12 sps:$4 sm:$0xff]  }
 0xe4d   :  { %7260 = vmatpush1.bf16.msra.mxu0 %v9702_v35  ;;  %v12276_v35 = vld [vmem:[%s12924_s9] sm:$0xff] }
 0xe4e   :  { %7261 = vmatprep.subr.bf16.mxu0 %v9709_v43  ;;  %v4127_v43 = vsub.s32 3, %v10312_v20 }
 0xe4f   :  { %5529 = vmatpush1.bf16.msra.mxu1 %v9645_v47  ;;  %v4116_v47 = vrot.slane %v12276_v35, %v10324_v24 }
 0xe50   :  { %5530 = vmatprep.subr.bf16.mxu1 %v9650_v33  ;;  %v4124_v33 = vrot.slane %v12276_v35, %v10321_v23 }
 0xe51   :  { %7262 = vmatpush1.bf16.msra.mxu0 %v9707_v50  ;;  %v4120_v50 = vrot.slane %v12276_v35, %v10318_v22 }
 0xe52   :  { %7263 = vmatprep.subr.bf16.mxu0 %v9714_v52  ;;  %v4128_v52 = vrot.slane %v12276_v35, %v4127_v43  ;;  %v9767_v43 = vld [vmem:[%s12925_s10 + $0x1f8] ss:$12 sps:$4 sm:$0xff]  }
 0xe53   :  { %5531 = vmatpush1.bf16.msra.mxu1 %v9648_v46 }
 0xe54   :  { %5532 = vmatprep.subr.bf16.mxu1 %v9653_v28 }
 0xe55   :  { %7264 = vmatpush1.bf16.msra.mxu0 %v9712_v51 }
 0xe56   :  { %7265 = vmatprep.subr.bf16.mxu0 %v9719_v42 }
 0xe57   :  { %5533 = vmatpush1.bf16.msra.mxu1 %v9651_v53 }
 0xe58   :  { %5534 = vmatprep.subr.bf16.mxu1 %v9656_v54 }
 0xe59   :  { %7266 = vmatpush1.bf16.msra.mxu0 %v9717_v41 }
 0xe5a   :  { %7267 = vmatprep.subr.bf16.mxu0 %v9724_v27 }
 0xe5b   :  { %5535 = vmatpush1.bf16.msra.mxu1 %v9654_v31 }
 0xe5c   :  { %5536 = vmatprep.subr.bf16.mxu1 %v9659_v9 }
 0xe5d   :  { %7268 = vmatpush1.bf16.msra.mxu0 %v9722_v58 }
 0xe5e   :  { %7269 = vmatprep.subr.bf16.mxu0 %v9729_v60 }
 0xe5f   :  { %5537 = vmatpush1.bf16.msra.mxu1 %v9657_v62 }
 0xe60   :  { %5538 = vmatprep.subr.bf16.mxu1 %v9662_v63 }
 0xe61   :  { %7270 = vmatpush1.bf16.msra.mxu0 %v9727_v30 }
 0xe62   :  { %7271 = vmatprep.subr.bf16.mxu0 %v9734_v0 }
 0xe63   :  { %5539 = vmatpush1.bf16.msra.mxu1 %v9660_v2 }
 0xe64   :  { %5540 = vmatprep.subr.bf16.mxu1 %v9665_v3 }
 0xe65   :  { %7272 = vmatpush1.bf16.msra.mxu0 %v9732_v4 }
 0xe66   :  { %7273 = vmatprep.subr.bf16.mxu0 %v9739_v56 }
 0xe67   :  { %5541 = vmatpush1.bf16.msra.mxu1 %v9663_v7 }
 0xe68   :  { %5553 = vmatprep.subr.bf16.mxu1 %v9668_v55 }
 0xe69   :  { %7274 = vmatpush1.bf16.msra.mxu0 %v9737_v36 }
 0xe6a   :  { %5543 = vmatmul.mubr.bf16.vlgmr.msra.gmra.mrb[68].mxu1 %v11694_v39  ;;  %7286 = vmatprep.subr.bf16.mxu0 %v9744_v8  ;;  %v9677_v39 = vld [vmem:[%s12923_s8 + $0x614] ss:$40 sps:$4 sm:$0xff]  }
 0xe6b   :  { %5554 = vmatpush1.bf16.msra.mxu1 %v9666_v38  ;;  %5585 = vmatprep.mubr.bf16.mxu1 %v10068_v5  ;;  %v9675_v5 = vld [vmem:[%s12923_s8 + $0x610] ss:$40 sps:$4 sm:$0xff]  }
 0xe6c   :  { %5555 = vmatprep.subr.bf16.mxu1 %v9671_v10 }
 0xe6f   :  { %5556 = vmatpush1.bf16.msra.mxu1 %v9669_v11 }
 0xe70   :  { %5557 = vmatprep.subr.bf16.mxu1 %v9674_v12 }
 0xe73   :  { %5558 = vmatpush1.bf16.msra.mxu1 %v9672_v13  ;;  %v9742_v13 = vld [vmem:[%s12925_s10 + $0x180] ss:$12 sps:$4 sm:$0xff]  }
 0xe74   :  { %5559 = vmatprep.subr.bf16.mxu1 %v9677_v39  ;;  %v9746_v39 = vld [vmem:[%s12925_s10 + $0x188] ss:$12 sps:$4 sm:$0xff]  }
 0xe77   :  { %5560 = vmatpush1.bf16.msra.mxu1 %v9675_v5  ;;  %v9749_v5 = vld [vmem:[%s12925_s10 + $0x19c] ss:$12 sps:$4 sm:$0xff]  }
 0xe78   :  { %8586 = vmatprep.subr.bf16.mxu1 %v9705_v61  ;;  %v9750_v61 = vld [vmem:[%s12925_s10 + $0x260] ss:$12 sps:$4 sm:$0xff]  }
 0xe7a   :  { %8257 = vmatmul.mubr.msk.bf16.vlgmr.msra.gmra.mrb[68].mxu1 %vm50_vm0, %v11751_v18  ;;  %v9720_v18 = vld [vmem:[%s12925_s10 + $0x110] ss:$12 sps:$4 sm:$0xff]  }
 0xe7b   :  { %8587 = vmatpush3.bf16.msra.mxu1 %v9706_v14  ;;  %v9747_v14 = vld [vmem:[%s12925_s10 + $0x198] ss:$12 sps:$4 sm:$0xff]  }
 0xe7c   :  { %8588 = vmatprep.subr.bf16.mxu1 %v9710_v15  ;;  %v9751_v15 = vld [vmem:[%s12925_s10 + $0x1a0] ss:$12 sps:$4 sm:$0xff]  }
 0xe7f   :  { %8589 = vmatpush3.bf16.msra.mxu1 %v9711_v16  ;;  %v9754_v16 = vld [vmem:[%s12925_s10 + $0x1b4] ss:$12 sps:$4 sm:$0xff]  }
 0xe80   :  { %8590 = vmatprep.subr.bf16.mxu1 %v9715_v19  ;;  %v9755_v19 = vld [vmem:[%s12925_s10 + $0x278] ss:$12 sps:$4 sm:$0xff]  }
 0xe83   :  { %8591 = vmatpush3.bf16.msra.mxu1 %v9716_v21  ;;  %v9752_v21 = vld [vmem:[%s12925_s10 + $0x1b0] ss:$12 sps:$4 sm:$0xff]  }
 0xe84   :  { %8592 = vmatprep.subr.bf16.mxu1 %v9720_v18  ;;  %v9756_v18 = vld [vmem:[%s12925_s10 + $0x1b8] ss:$12 sps:$4 sm:$0xff]  }
 0xe87   :  { %8593 = vmatpush3.bf16.msra.mxu1 %v9721_v25  ;;  %v9759_v25 = vld [vmem:[%s12925_s10 + $0x1cc] ss:$12 sps:$4 sm:$0xff]  }
 0xe88   :  { %8594 = vmatprep.subr.bf16.mxu1 %v9725_v26  ;;  %v9760_v26 = vld [vmem:[%s12925_s10 + $0x290] ss:$12 sps:$4 sm:$0xff]  }
 0xe8b   :  { %8595 = vmatpush3.bf16.msra.mxu1 %v9726_v59  ;;  %v9757_v59 = vld [vmem:[%s12925_s10 + $0x1c8] ss:$12 sps:$4 sm:$0xff]  }
 0xe8c   :  { %8596 = vmatprep.subr.bf16.mxu1 %v9730_v48  ;;  %v9761_v48 = vld [vmem:[%s12925_s10 + $0x1d0] ss:$12 sps:$4 sm:$0xff]  }
 0xe8f   :  { %8597 = vmatpush3.bf16.msra.mxu1 %v9731_v6  ;;  %v9764_v6 = vld [vmem:[%s12925_s10 + $0x1e4] ss:$12 sps:$4 sm:$0xff]  }
 0xe90   :  { %8598 = vmatprep.subr.bf16.mxu1 %v9735_v37  ;;  %v9765_v37 = vld [vmem:[%s12925_s10 + $0x2a8] ss:$12 sps:$4 sm:$0xff]  }
 0xe93   :  { %8599 = vmatpush3.bf16.msra.mxu1 %v9736_v57  ;;  %v9762_v57 = vld [vmem:[%s12925_s10 + $0x1e0] ss:$12 sps:$4 sm:$0xff]  }
 0xe94   :  { %8600 = vmatprep.subr.bf16.mxu1 %v9740_v34  ;;  %v9766_v34 = vld [vmem:[%s12925_s10 + $0x1e8] ss:$12 sps:$4 sm:$0xff]  }
 0xe97   :  { %8601 = vmatpush3.bf16.msra.mxu1 %v9741_v44  ;;  %v9769_v44 = vld [vmem:[%s12925_s10 + $0x1fc] ss:$12 sps:$4 sm:$0xff]  }
 0xe98   :  { %8608 = vmatprep.subr.bf16.mxu1 %v9745_v45  ;;  %v9770_v45 = vld [vmem:[%s12925_s10 + $0x2c0] ss:$12 sps:$4 sm:$0xff]  }
 0xead   :  { %v5243_v46 = vpop.f32.mrb[60].mxu1  ;;  %v5329_v28 = vpop.f32.mrb[44].mxu0 }
 0xeae   :  { %v8800_v51 = vadd.f32 %v5243_v46, %v4116_v47  ;;  %v8804_v42 = vadd.f32 %v5329_v28, %v4124_v33  ;;  %v5245_v53 = vpop.f32.mrb[61].mxu1  ;;  %v5331_v54 = vpop.f32.mrb[45].mxu0  ;;  %v9776_v46 = vld [vmem:[%s12925_s10 + $0x218] ss:$12 sps:$4 sm:$0xff]  }
 0xeaf   :  { %v8801_v41 = vadd.f32 %v5245_v53, %v4120_v50  ;;  %v8805_v27 = vadd.f32 %v5331_v54, %v4128_v52  ;;  %v5247_v31 = vpop.f32.mrb[62].mxu1  ;;  %v5333_v9 = vpop.f32.mrb[46].mxu0  ;;  %v9779_v28 = vld [vmem:[%s12925_s10 + $0x22c] ss:$12 sps:$4 sm:$0xff]   ;;  %v9781_v53 = vld [vmem:[%s12925_s10 + $0x230] ss:$12 sps:$4 sm:$0xff]  }
 0xeb0   :  { %v8802_v58 = vadd.f32 %v5247_v31, %v4116_v47  ;;  %v8806_v60 = vadd.f32 %v5333_v9, %v4124_v33  ;;  %v5249_v62 = vpop.f32.mrb[63].mxu1  ;;  %v5335_v63 = vpop.f32.mrb[47].mxu0  ;;  %v5596_v2 = vmax.f32 %v8800_v51, 0.0  ;;  %v5598_v3 = vmax.f32 %v8804_v42, 0.0  ;;  %v9771_v47 = vld [vmem:[%s12925_s10 + $0x200] ss:$12 sps:$4 sm:$0xff]  }
 0xeb1   :  { %v8803_v30 = vadd.f32 %v5249_v62, %v4120_v50  ;;  %v8807_v0 = vadd.f32 %v5335_v63, %v4128_v52  ;;  %v5597_v7 = vmax.f32 %v8801_v41, 0.0  ;;  %v5599_v55 = vmax.f32 %v8805_v27, 0.0  ;;  %v9774_v33 = vld [vmem:[%s12925_s10 + $0x214] ss:$12 sps:$4 sm:$0xff]   ;;  %v9775_v50 = vld [vmem:[%s12925_s10 + $0x2d8] ss:$12 sps:$4 sm:$0xff]  }
 0xeb2   :  { %v5606_v4 = vmax.f32 %v8802_v58, 0.0  ;;  %v5608_v56 = vmax.f32 %v8806_v60, 0.0  ;;  %v9772_v52 = vld [vmem:[%s12925_s10 + $0x210] ss:$12 sps:$4 sm:$0xff]   ;;  %v9777_v42 = vld [vmem:[%s12925_s10 + $0x228] ss:$12 sps:$4 sm:$0xff]  }
 0xeb3   :  { %v5607_v36 = vmax.f32 %v8803_v30, 0.0  ;;  %v5609_v8 = vmax.f32 %v8807_v0, 0.0  ;;  %v9780_v51 = vld [vmem:[%s12925_s10 + $0x2f0] ss:$12 sps:$4 sm:$0xff]   ;;  %v9797_v41 = vld [vmem:[%s12925_s10 + $0x3c8] ss:$12 sps:$4 sm:$0xff]  }
 0xeb4   :  { %v5616_v38 = vpack.c.bf16 %v5606_v4, %v5596_v2  ;;  %v12286_v10 = vpack.c.bf16 %v5608_v56, %v5598_v3  ;;  %v9784_v54 = vld [vmem:[%s12925_s10 + $0x244] ss:$12 sps:$4 sm:$0xff]   ;;  %v9782_v27 = vld [vmem:[%s12925_s10 + $0x240] ss:$12 sps:$4 sm:$0xff]   ;;  %v9798_v31 = vld [vmem:[%s12925_s10 + $0x308] ss:$12 sps:$4 sm:$0xff]  }
 0xeb5   :  { %v5617_v11 = vpack.c.bf16 %v5607_v36, %v5597_v7  ;;  %v5619_v12 = vpack.c.bf16 %v5609_v8, %v5599_v55  ;;  %v9787_v9 = vld [vmem:[%s12925_s10 + $0x25c] ss:$12 sps:$4 sm:$0xff]   ;;  %v9802_v58 = vld [vmem:[%s12925_s10 + $0x3e0] ss:$12 sps:$4 sm:$0xff]   ;;  %v9785_v60 = vld [vmem:[%s12925_s10 + $0x258] ss:$12 sps:$4 sm:$0xff]  }
 0xeb6   :  { %v9803_v62 = vld [vmem:[%s12925_s10 + $0x320] ss:$12 sps:$4 sm:$0xff]   ;;  %v9807_v30 = vld [vmem:[%s12925_s10 + $0x3f8] ss:$12 sps:$4 sm:$0xff]   ;;  %v9788_v0 = vld [vmem:[%s12925_s10 + $0x270] ss:$12 sps:$4 sm:$0xff]  }
 0xeb7   :  { %7275 = vmatprep.mubr.bf16.mxu0 %v5617_v11  ;;  %7490 = vmatprep.mubr.bf16.mxu1 %v5617_v11  ;;  %v9790_v63 = vld [vmem:[%s12925_s10 + $0x274] ss:$12 sps:$4 sm:$0xff]   ;;  %v9808_v2 = vld [vmem:[%s12925_s10 + $0x338] ss:$12 sps:$4 sm:$0xff]   ;;  %v9812_v4 = vld [vmem:[%s12925_s10 + $0x410] ss:$12 sps:$4 sm:$0xff]  }
 0xeb8   :  { %7276 = vmatmul.mubr.bf16.vlgmr.msra.gmra.mrb[52].mxu0 %v5616_v38  ;;  %7491 = vmatmul.mubr.bf16.vlgmr.msra.gmra.mrb[72].mxu1 %v5616_v38  ;;  %v9793_v3 = vld [vmem:[%s12925_s10 + $0x28c] ss:$12 sps:$4 sm:$0xff]   ;;  %v9791_v56 = vld [vmem:[%s12925_s10 + $0x288] ss:$12 sps:$4 sm:$0xff]   ;;  %v9813_v7 = vld [vmem:[%s12925_s10 + $0x350] ss:$12 sps:$4 sm:$0xff]  }
 0xeb9   :  { %7287 = vmatpush1.bf16.msra.mxu0 %v9742_v13  ;;  %8609 = vmatpush3.bf16.msra.mxu1 %v9746_v39  ;;  %v9796_v55 = vld [vmem:[%s12925_s10 + $0x2a4] ss:$12 sps:$4 sm:$0xff]   ;;  %v9817_v36 = vld [vmem:[%s12925_s10 + $0x428] ss:$12 sps:$4 sm:$0xff]   ;;  %v9794_v8 = vld [vmem:[%s12925_s10 + $0x2a0] ss:$12 sps:$4 sm:$0xff]  }
 0xeba   :  { %7318 = vmatprep.mubr.bf16.mxu0 %v5619_v12  ;;  %7531 = vmatprep.mubr.bf16.mxu1 %v5619_v12  ;;  %v9818_v38 = vld [vmem:[%s12925_s10 + $0x368] ss:$12 sps:$4 sm:$0xff]   ;;  %v9822_v12 = vld [vmem:[%s12925_s10 + $0x440] ss:$12 sps:$4 sm:$0xff]   ;;  %v9799_v13 = vld [vmem:[%s12925_s10 + $0x2b8] ss:$12 sps:$4 sm:$0xff]  }
 0xebb   :  { %7288 = vmatprep.subr.bf16.mxu0 %v9749_v5  ;;  %8610 = vmatprep.subr.bf16.mxu1 %v9750_v61  ;;  %v9801_v11 = vld [vmem:[%s12925_s10 + $0x2bc] ss:$12 sps:$4 sm:$0xff]   ;;  %v9823_v39 = vld [vmem:[%s12925_s10 + $0x380] ss:$12 sps:$4 sm:$0xff]   ;;  %v9827_v61 = vld [vmem:[%s12925_s10 + $0x458] ss:$12 sps:$4 sm:$0xff]  }
 0xebc   :  { %v9806_v5 = vld [vmem:[%s12925_s10 + $0x2d4] ss:$12 sps:$4 sm:$0xff]  }
 0xebd   :  { %7289 = vmatpush1.bf16.msra.mxu0 %v9747_v14  ;;  %8611 = vmatpush3.bf16.msra.mxu1 %v9751_v15  ;;  %v9804_v14 = vld [vmem:[%s12925_s10 + $0x2d0] ss:$12 sps:$4 sm:$0xff]   ;;  %v9828_v15 = vld [vmem:[%s12925_s10 + $0x398] ss:$12 sps:$4 sm:$0xff]  }
 0xebe   :  { %7290 = vmatprep.subr.bf16.mxu0 %v9754_v16  ;;  %8612 = vmatprep.subr.bf16.mxu1 %v9755_v19  ;;  %v9811_v16 = vld [vmem:[%s12925_s10 + $0x2ec] ss:$12 sps:$4 sm:$0xff]   ;;  %v9832_v19 = vld [vmem:[%s12925_s10 + $0x470] ss:$12 sps:$4 sm:$0xff]  }
 0xec1   :  { %7291 = vmatpush1.bf16.msra.mxu0 %v9752_v21  ;;  %8613 = vmatpush3.bf16.msra.mxu1 %v9756_v18  ;;  %v9809_v21 = vld [vmem:[%s12925_s10 + $0x2e8] ss:$12 sps:$4 sm:$0xff]   ;;  %v9833_v18 = vld [vmem:[%s12925_s10 + $0x3b0] ss:$12 sps:$4 sm:$0xff]  }
 0xec2   :  { %7292 = vmatprep.subr.bf16.mxu0 %v9759_v25  ;;  %8614 = vmatprep.subr.bf16.mxu1 %v9760_v26  ;;  %v9816_v25 = vld [vmem:[%s12925_s10 + $0x304] ss:$12 sps:$4 sm:$0xff]   ;;  %v9837_v26 = vld [vmem:[%s12925_s10 + $0x548] ss:$12 sps:$4 sm:$0xff]  }
 0xec5   :  { %7293 = vmatpush1.bf16.msra.mxu0 %v9757_v59  ;;  %8615 = vmatpush3.bf16.msra.mxu1 %v9761_v48  ;;  %v9814_v59 = vld [vmem:[%s12925_s10 + $0x300] ss:$12 sps:$4 sm:$0xff]   ;;  %v9821_v48 = vld [vmem:[%s12925_s10 + $0x31c] ss:$12 sps:$4 sm:$0xff]  }
 0xec6   :  { %7294 = vmatprep.subr.bf16.mxu0 %v9764_v6  ;;  %8616 = vmatprep.subr.bf16.mxu1 %v9765_v37  ;;  %v4131_v6 = vsub.s32 4, %v10312_v20  ;;  %v4139_v37 = vsub.s32 6, %v10312_v20 }
 0xec9   :  { %7295 = vmatpush1.bf16.msra.mxu0 %v9762_v57  ;;  %8617 = vmatpush3.bf16.msra.mxu1 %v9766_v34  ;;  %v4135_v57 = vsub.s32 5, %v10312_v20  ;;  %v4143_v34 = vsub.s32 7, %v10312_v20 }
 0xeca   :  { %7296 = vmatprep.subr.bf16.mxu0 %v9769_v44  ;;  %8618 = vmatprep.subr.bf16.mxu1 %v9770_v45  ;;  %v9819_v44 = vld [vmem:[%s12925_s10 + $0x318] ss:$12 sps:$4 sm:$0xff]   ;;  %v4132_v45 = vrot.slane %v12276_v35, %v4131_v6  ;;  %v9853_v6 = vld [vmem:[%s12925_s10 + $0x4d0] ss:$12 sps:$4 sm:$0xff]  }
 0xecd   :  { %7297 = vmatpush1.bf16.msra.mxu0 %v9767_v43  ;;  %8619 = vmatpush3.bf16.msra.mxu1 %v9771_v47  ;;  %v9826_v43 = vld [vmem:[%s12925_s10 + $0x334] ss:$12 sps:$4 sm:$0xff]   ;;  %v4140_v47 = vrot.slane %v12276_v35, %v4139_v37  ;;  %v9856_v37 = vld [vmem:[%s12925_s10 + $0x3c4] ss:$12 sps:$4 sm:$0xff]  }
 0xece   :  { %7298 = vmatprep.subr.bf16.mxu0 %v9774_v33  ;;  %8620 = vmatprep.subr.bf16.mxu1 %v9775_v50  ;;  %v4136_v33 = vrot.slane %v12276_v35, %v4135_v57  ;;  %v9824_v50 = vld [vmem:[%s12925_s10 + $0x330] ss:$12 sps:$4 sm:$0xff]   ;;  %v9857_v57 = vld [vmem:[%s12925_s10 + $0x5a8] ss:$12 sps:$4 sm:$0xff]  }
 0xed1   :  { %7299 = vmatpush1.bf16.msra.mxu0 %v9772_v52  ;;  %8621 = vmatpush3.bf16.msra.mxu1 %v9776_v46 }
 0xed2   :  { %7300 = vmatprep.subr.bf16.mxu0 %v9779_v28  ;;  %8622 = vmatprep.subr.bf16.mxu1 %v9780_v51  ;;  %v9831_v51 = vld [vmem:[%s12925_s10 + $0x34c] ss:$12 sps:$4 sm:$0xff]  }
 0xed5   :  { %7301 = vmatpush1.bf16.msra.mxu0 %v9777_v42  ;;  %8623 = vmatpush3.bf16.msra.mxu1 %v9781_v53 }
 0xed6   :  { %7302 = vmatprep.subr.bf16.mxu0 %v9784_v54  ;;  %8630 = vmatprep.subr.bf16.mxu1 %v9797_v41 }
 0xed8   :  { %7532 = vmatmul.mubr.bf16.vlgmr.msra.gmra.mrb[76].mxu1 %v12286_v10 }
 0xed9   :  { %7303 = vmatpush1.bf16.msra.mxu0 %v9782_v27  ;;  %8631 = vmatpush3.bf16.msra.mxu1 %v9798_v31 }
 0xeda   :  { %7304 = vmatprep.subr.bf16.mxu0 %v9787_v9  ;;  %8632 = vmatprep.subr.bf16.mxu1 %v9802_v58 }
 0xedd   :  { %7305 = vmatpush1.bf16.msra.mxu0 %v9785_v60  ;;  %8633 = vmatpush3.bf16.msra.mxu1 %v9803_v62 }
 0xede   :  { %7306 = vmatprep.subr.bf16.mxu0 %v9790_v63  ;;  %8634 = vmatprep.subr.bf16.mxu1 %v9807_v30  ;;  %v9829_v63 = vld [vmem:[%s12925_s10 + $0x348] ss:$12 sps:$4 sm:$0xff]  }
 0xee1   :  { %7307 = vmatpush1.bf16.msra.mxu0 %v9788_v0  ;;  %8635 = vmatpush3.bf16.msra.mxu1 %v9808_v2 }
 0xee2   :  { %7308 = vmatprep.subr.bf16.mxu0 %v9793_v3  ;;  %8636 = vmatprep.subr.bf16.mxu1 %v9812_v4  ;;  %v9836_v3 = vld [vmem:[%s12925_s10 + $0x364] ss:$12 sps:$4 sm:$0xff]  }
 0xee5   :  { %7309 = vmatpush1.bf16.msra.mxu0 %v9791_v56  ;;  %8637 = vmatpush3.bf16.msra.mxu1 %v9813_v7 }
 0xee6   :  { %7310 = vmatprep.subr.bf16.mxu0 %v9796_v55  ;;  %8638 = vmatprep.subr.bf16.mxu1 %v9817_v36 }
 0xee9   :  { %7311 = vmatpush1.bf16.msra.mxu0 %v9794_v8  ;;  %8639 = vmatpush3.bf16.msra.mxu1 %v9818_v38 }
 0xeea   :  { %7312 = vmatprep.subr.bf16.mxu0 %v9801_v11  ;;  %8640 = vmatprep.subr.bf16.mxu1 %v9822_v12 }
 0xeed   :  { %7313 = vmatpush1.bf16.msra.mxu0 %v9799_v13  ;;  %8641 = vmatpush3.bf16.msra.mxu1 %v9823_v39  ;;  %v9834_v13 = vld [vmem:[%s12925_s10 + $0x360] ss:$12 sps:$4 sm:$0xff]   ;;  %v9838_v39 = vld [vmem:[%s12925_s10 + $0x488] ss:$12 sps:$4 sm:$0xff]  }
 0xeee   :  { %7314 = vmatprep.subr.bf16.mxu0 %v9806_v5  ;;  %8642 = vmatprep.subr.bf16.mxu1 %v9827_v61  ;;  %v9841_v61 = vld [vmem:[%s12925_s10 + $0x37c] ss:$12 sps:$4 sm:$0xff]  }
 0xef1   :  { %7315 = vmatpush1.bf16.msra.mxu0 %v9804_v14  ;;  %8643 = vmatpush3.bf16.msra.mxu1 %v9828_v15  ;;  %v9842_v14 = vld [vmem:[%s12925_s10 + $0x560] ss:$12 sps:$4 sm:$0xff]   ;;  %v9839_v15 = vld [vmem:[%s12925_s10 + $0x378] ss:$12 sps:$4 sm:$0xff]  }
 0xef2   :  { %7316 = vmatprep.subr.bf16.mxu0 %v9811_v16  ;;  %8644 = vmatprep.subr.bf16.mxu1 %v9832_v19  ;;  %v9843_v16 = vld [vmem:[%s12925_s10 + $0x4a0] ss:$12 sps:$4 sm:$0xff]  }
 0xef3   :  { %v9846_v19 = vld [vmem:[%s12925_s10 + $0x394] ss:$12 sps:$4 sm:$0xff]  }
 0xef5   :  { %7317 = vmatpush1.bf16.msra.mxu0 %v9809_v21  ;;  %8645 = vmatpush3.bf16.msra.mxu1 %v9833_v18  ;;  %v9847_v21 = vld [vmem:[%s12925_s10 + $0x578] ss:$12 sps:$4 sm:$0xff]   ;;  %v9844_v18 = vld [vmem:[%s12925_s10 + $0x390] ss:$12 sps:$4 sm:$0xff]  }
 0xef6   :  { %7329 = vmatprep.subr.bf16.mxu0 %v9816_v25  ;;  %8652 = vmatprep.subr.bf16.mxu1 %v9837_v26  ;;  %v9848_v25 = vld [vmem:[%s12925_s10 + $0x4b8] ss:$12 sps:$4 sm:$0xff]  }
 0xef7   :  { %v9851_v26 = vld [vmem:[%s12925_s10 + $0x3ac] ss:$12 sps:$4 sm:$0xff]  }
 0xef8   :  { %7319 = vmatmul.mubr.bf16.vlgmr.msra.gmra.mrb[52].mxu0 %v12286_v10  ;;  %v4144_v10 = vrot.slane %v12276_v35, %v4143_v34  ;;  %v9854_v34 = vld [vmem:[%s12925_s10 + $0x3c0] ss:$12 sps:$4 sm:$0xff]  }
 0xef9   :  { %7330 = vmatpush1.bf16.msra.mxu0 %v9814_v59  ;;  %v9852_v59 = vld [vmem:[%s12925_s10 + $0x590] ss:$12 sps:$4 sm:$0xff]  }
 0xefa   :  { %7331 = vmatprep.subr.bf16.mxu0 %v9821_v48  ;;  %v9849_v48 = vld [vmem:[%s12925_s10 + $0x3a8] ss:$12 sps:$4 sm:$0xff]  }
 0xefd   :  { %7332 = vmatpush1.bf16.msra.mxu0 %v9819_v44  ;;  %v5415_v20 = vpop.f32.mrb[64].mxu1  ;;  %v9858_v44 = vld [vmem:[%s12925_s10 + $0x4e8] ss:$12 sps:$4 sm:$0xff]  }
 0xefe   :  { %v8808_v52 = vadd.f32 %v5415_v20, %v4132_v45  ;;  %v5501_v46 = vpop.f32.mrb[48].mxu0  ;;  %v5417_v28 = vpop.f32.mrb[65].mxu1  ;;  %7333 = vmatprep.subr.bf16.mxu0 %v9826_v43  ;;  %v9862_v43 = vld [vmem:[%s12925_s10 + $0x5c0] ss:$12 sps:$4 sm:$0xff]   ;;  %v9867_v20 = vld [vmem:[%s12925_s10 + $0x5d8] ss:$12 sps:$4 sm:$0xff]  }
 0xeff   :  { %v8812_v42 = vadd.f32 %v5501_v46, %v4140_v47  ;;  %v8809_v53 = vadd.f32 %v5417_v28, %v4136_v33  ;;  %v5503_v54 = vpop.f32.mrb[49].mxu0  ;;  %v5419_v41 = vpop.f32.mrb[66].mxu1  ;;  %v9871_v46 = vld [vmem:[%s12925_s10 + $0x40c] ss:$12 sps:$4 sm:$0xff]   ;;  %v9872_v28 = vld [vmem:[%s12925_s10 + $0x5f0] ss:$12 sps:$4 sm:$0xff]  }
 0xf00   :  { %v8813_v27 = vadd.f32 %v5503_v54, %v4144_v10  ;;  %v8810_v35 = vadd.f32 %v5419_v41, %v4132_v45  ;;  %v5505_v31 = vpop.f32.mrb[50].mxu0  ;;  %v5421_v9 = vpop.f32.mrb[67].mxu1  ;;  %v5600_v30 = vmax.f32 %v8808_v52, 0.0  ;;  %v9861_v45 = vld [vmem:[%s12925_s10 + $0x3dc] ss:$12 sps:$4 sm:$0xff]  }
 0xf01   :  { %v8814_v58 = vadd.f32 %v5505_v31, %v4140_v47  ;;  %v8811_v60 = vadd.f32 %v5421_v9, %v4136_v33  ;;  %v5507_v62 = vpop.f32.mrb[51].mxu0  ;;  %7334 = vmatpush1.bf16.msra.mxu0 %v9824_v50  ;;  %v5602_v4 = vmax.f32 %v8812_v42, 0.0  ;;  %v5601_v56 = vmax.f32 %v8809_v53, 0.0  ;;  %v9859_v47 = vld [vmem:[%s12925_s10 + $0x3d8] ss:$12 sps:$4 sm:$0xff]  }
 0xf02   :  { %v5610_v0 = vmax.f32 %v8810_v35, 0.0  ;;  %v8815_v2 = vadd.f32 %v5507_v62, %v4144_v10  ;;  %7335 = vmatprep.subr.bf16.mxu0 %v9831_v51  ;;  %v5603_v36 = vmax.f32 %v8813_v27, 0.0  ;;  %v9863_v33 = vld [vmem:[%s12925_s10 + $0x500] ss:$12 sps:$4 sm:$0xff]   ;;  %v9864_v50 = vld [vmem:[%s12925_s10 + $0x3f0] ss:$12 sps:$4 sm:$0xff]  }
 0xf03   :  { %v5612_v7 = vmax.f32 %v8814_v58, 0.0  ;;  %v5611_v55 = vmax.f32 %v8811_v60, 0.0  ;;  %v9866_v10 = vld [vmem:[%s12925_s10 + $0x3f4] ss:$12 sps:$4 sm:$0xff]   ;;  %v9868_v52 = vld [vmem:[%s12925_s10 + $0x518] ss:$12 sps:$4 sm:$0xff]  }
 0xf04   :  { %v12514_v8 = vpack.c.bf16 %v5610_v0, %v5600_v30  ;;  %v5613_v38 = vmax.f32 %v8815_v2, 0.0  ;;  %v9869_v51 = vld [vmem:[%s12925_s10 + $0x408] ss:$12 sps:$4 sm:$0xff]   ;;  %v9873_v42 = vld [vmem:[%s12925_s10 + $0x530] ss:$12 sps:$4 sm:$0xff]  }
 0xf05   :  { %v12516_v11 = vpack.c.bf16 %v5612_v7, %v5602_v4  ;;  %v5621_v12 = vpack.c.bf16 %v5611_v55, %v5601_v56  ;;  %7336 = vmatpush1.bf16.msra.mxu0 %v9829_v63  ;;  %v9876_v53 = vld [vmem:[%s12925_s10 + $0x424] ss:$12 sps:$4 sm:$0xff]   ;;  %v9889_v54 = vld [vmem:[%s12925_s10 + $0x6c8] ss:$12 sps:$4 sm:$0xff]   ;;  %v9874_v41 = vld [vmem:[%s12925_s10 + $0x420] ss:$12 sps:$4 sm:$0xff]  }
 0xf06   :  { %v12524_v5 = vpack.c.bf16 %v5613_v38, %v5603_v36  ;;  %7337 = vmatprep.subr.bf16.mxu0 %v9836_v3  ;;  %v9890_v27 = vld [vmem:[%s12925_s10 + $0x608] ss:$12 sps:$4 sm:$0xff]   ;;  %v9894_v31 = vld [vmem:[%s12925_s10 + $0x6e0] ss:$12 sps:$4 sm:$0xff]   ;;  %v9877_v9 = vld [vmem:[%s12925_s10 + $0x438] ss:$12 sps:$4 sm:$0xff]  }
 0xf07   :  { %7361 = vmatprep.mubr.bf16.mxu0 %v5621_v12  ;;  %7572 = vmatprep.mubr.bf16.mxu1 %v5621_v12  ;;  %v9879_v35 = vld [vmem:[%s12925_s10 + $0x43c] ss:$12 sps:$4 sm:$0xff]   ;;  %v9895_v58 = vld [vmem:[%s12925_s10 + $0x620] ss:$12 sps:$4 sm:$0xff]   ;;  %v9899_v62 = vld [vmem:[%s12925_s10 + $0x6f8] ss:$12 sps:$4 sm:$0xff]  }
 0xf08   :  { %7573 = vmatmul.mubr.bf16.vlgmr.msra.gmra.mrb[80].mxu1 %v12514_v8  ;;  %v9882_v60 = vld [vmem:[%s12925_s10 + $0x454] ss:$12 sps:$4 sm:$0xff]   ;;  %v9880_v63 = vld [vmem:[%s12925_s10 + $0x450] ss:$12 sps:$4 sm:$0xff]   ;;  %v9900_v30 = vld [vmem:[%s12925_s10 + $0x638] ss:$12 sps:$4 sm:$0xff]  }
 0xf09   :  { %7338 = vmatpush1.bf16.msra.mxu0 %v9834_v13  ;;  %8653 = vmatpush3.bf16.msra.mxu1 %v9838_v39  ;;  %v9885_v0 = vld [vmem:[%s12925_s10 + $0x46c] ss:$12 sps:$4 sm:$0xff]   ;;  %v9904_v2 = vld [vmem:[%s12925_s10 + $0x710] ss:$12 sps:$4 sm:$0xff]   ;;  %v9883_v3 = vld [vmem:[%s12925_s10 + $0x468] ss:$12 sps:$4 sm:$0xff]  }
 0xf0a   :  { %7613 = vmatprep.mubr.bf16.mxu1 %v12524_v5  ;;  %7339 = vmatprep.subr.bf16.mxu0 %v9841_v61  ;;  %v9905_v4 = vld [vmem:[%s12925_s10 + $0x650] ss:$12 sps:$4 sm:$0xff]   ;;  %v9909_v7 = vld [vmem:[%s12925_s10 + $0x728] ss:$12 sps:$4 sm:$0xff]   ;;  %v9886_v55 = vld [vmem:[%s12925_s10 + $0x480] ss:$12 sps:$4 sm:$0xff]  }
 0xf0b   :  { %8654 = vmatprep.subr.bf16.mxu1 %v9842_v14  ;;  %v9888_v56 = vld [vmem:[%s12925_s10 + $0x484] ss:$12 sps:$4 sm:$0xff]   ;;  %v9893_v36 = vld [vmem:[%s12925_s10 + $0x49c] ss:$12 sps:$4 sm:$0xff]   ;;  %v9914_v12 = vld [vmem:[%s12925_s10 + $0x740] ss:$12 sps:$4 sm:$0xff]  }
 0xf0c   :  { %v9910_v38 = vld [vmem:[%s12925_s10 + $0x668] ss:$12 sps:$4 sm:$0xff]   ;;  %v9891_v13 = vld [vmem:[%s12925_s10 + $0x498] ss:$12 sps:$4 sm:$0xff]   ;;  %v9915_v61 = vld [vmem:[%s12925_s10 + $0x680] ss:$12 sps:$4 sm:$0xff]  }
 0xf0d   :  { %7340 = vmatpush1.bf16.msra.mxu0 %v9839_v15  ;;  %8655 = vmatpush3.bf16.msra.mxu1 %v9843_v16  ;;  %v9898_v39 = vld [vmem:[%s12925_s10 + $0x4b4] ss:$12 sps:$4 sm:$0xff]   ;;  %v9903_v14 = vld [vmem:[%s12925_s10 + $0x4cc] ss:$12 sps:$4 sm:$0xff]   ;;  %v9924_v16 = vld [vmem:[%s12925_s10 + $0x770] ss:$12 sps:$4 sm:$0xff]  }
 0xf0e   :  { %7341 = vmatprep.subr.bf16.mxu0 %v9846_v19  ;;  %8656 = vmatprep.subr.bf16.mxu1 %v9847_v21  ;;  %v9920_v15 = vld [vmem:[%s12925_s10 + $0x698] ss:$12 sps:$4 sm:$0xff]   ;;  %v9901_v19 = vld [vmem:[%s12925_s10 + $0x4c8] ss:$12 sps:$4 sm:$0xff]  }
 0xf0f   :  { %v9908_v21 = vld [vmem:[%s12925_s10 + $0x4e4] ss:$12 sps:$4 sm:$0xff]  }
 0xf11   :  { %7342 = vmatpush1.bf16.msra.mxu0 %v9844_v18  ;;  %8657 = vmatpush3.bf16.msra.mxu1 %v9848_v25  ;;  %v9925_v18 = vld [vmem:[%s12925_s10 + $0x6b0] ss:$12 sps:$4 sm:$0xff]   ;;  %v9906_v25 = vld [vmem:[%s12925_s10 + $0x4e0] ss:$12 sps:$4 sm:$0xff]  }
 0xf12   :  { %7343 = vmatprep.subr.bf16.mxu0 %v9851_v26  ;;  %8658 = vmatprep.subr.bf16.mxu1 %v9852_v59  ;;  %v9913_v26 = vld [vmem:[%s12925_s10 + $0x4fc] ss:$12 sps:$4 sm:$0xff]  }
 0xf13   :  { %v4110_v59 = vld [vmem:[%s12924_s9 + $0x8] sm:$0x3] }
 0xf15   :  { %7344 = vmatpush1.bf16.msra.mxu0 %v9849_v48  ;;  %8659 = vmatpush3.bf16.msra.mxu1 %v9853_v6  ;;  %v9911_v48 = vld [vmem:[%s12925_s10 + $0x4f8] ss:$12 sps:$4 sm:$0xff]   ;;  %v4148_v6 = vrot.slane %v4110_v59, %v10324_v24 }
 0xf16   :  { %7345 = vmatprep.subr.bf16.mxu0 %v9856_v37  ;;  %8660 = vmatprep.subr.bf16.mxu1 %v9857_v57  ;;  %v9918_v37 = vld [vmem:[%s12925_s10 + $0x514] ss:$12 sps:$4 sm:$0xff]   ;;  %v4152_v57 = vrot.slane %v4110_v59, %v10318_v22  ;;  %v9968_v59 = vld [vmem:[%s12925_s10 + $0x690] ss:$12 sps:$4 sm:$0xff]  }
 0xf19   :  { %7346 = vmatpush1.bf16.msra.mxu0 %v9854_v34  ;;  %8661 = vmatpush3.bf16.msra.mxu1 %v9858_v44  ;;  %v9916_v44 = vld [vmem:[%s12925_s10 + $0x510] ss:$12 sps:$4 sm:$0xff]  }
 0xf1a   :  { %7347 = vmatprep.subr.bf16.mxu0 %v9861_v45  ;;  %8662 = vmatprep.subr.bf16.mxu1 %v9862_v43 }
 0xf1d   :  { %7348 = vmatpush1.bf16.msra.mxu0 %v9859_v47  ;;  %8663 = vmatpush3.bf16.msra.mxu1 %v9863_v33  ;;  %v9923_v47 = vld [vmem:[%s12925_s10 + $0x52c] ss:$12 sps:$4 sm:$0xff]  }
 0xf1e   :  { %7349 = vmatprep.subr.bf16.mxu0 %v9866_v10  ;;  %8664 = vmatprep.subr.bf16.mxu1 %v9867_v20 }
 0xf21   :  { %7350 = vmatpush1.bf16.msra.mxu0 %v9864_v50  ;;  %8665 = vmatpush3.bf16.msra.mxu1 %v9868_v52 }
 0xf22   :  { %7351 = vmatprep.subr.bf16.mxu0 %v9871_v46  ;;  %8666 = vmatprep.subr.bf16.mxu1 %v9872_v28  ;;  %v9921_v46 = vld [vmem:[%s12925_s10 + $0x528] ss:$12 sps:$4 sm:$0xff]  }
 0xf25   :  { %7352 = vmatpush1.bf16.msra.mxu0 %v9869_v51  ;;  %8667 = vmatpush3.bf16.msra.mxu1 %v9873_v42  ;;  %v9928_v42 = vld [vmem:[%s12925_s10 + $0x544] ss:$12 sps:$4 sm:$0xff]  }
 0xf26   :  { %7353 = vmatprep.subr.bf16.mxu0 %v9876_v53  ;;  %8674 = vmatprep.subr.bf16.mxu1 %v9889_v54 }
 0xf28   :  { %7614 = vmatmul.mubr.bf16.vlgmr.msra.gmra.mrb[84].mxu1 %v12516_v11 }
 0xf29   :  { %7354 = vmatpush1.bf16.msra.mxu0 %v9874_v41  ;;  %8675 = vmatpush3.bf16.msra.mxu1 %v9890_v27 }
 0xf2a   :  { %7355 = vmatprep.subr.bf16.mxu0 %v9879_v35  ;;  %8676 = vmatprep.subr.bf16.mxu1 %v9894_v31  ;;  %v9926_v35 = vld [vmem:[%s12925_s10 + $0x540] ss:$12 sps:$4 sm:$0xff]   ;;  %v9931_v31 = vld [vmem:[%s12925_s10 + $0x55c] ss:$12 sps:$4 sm:$0xff]  }
 0xf2d   :  { %7356 = vmatpush1.bf16.msra.mxu0 %v9877_v9  ;;  %8677 = vmatpush3.bf16.msra.mxu1 %v9895_v58  ;;  %v9929_v9 = vld [vmem:[%s12925_s10 + $0x558] ss:$12 sps:$4 sm:$0xff]   ;;  %v9934_v58 = vld [vmem:[%s12925_s10 + $0x574] ss:$12 sps:$4 sm:$0xff]  }
 0xf2e   :  { %7357 = vmatprep.subr.bf16.mxu0 %v9882_v60  ;;  %8678 = vmatprep.subr.bf16.mxu1 %v9899_v62  ;;  %v9932_v60 = vld [vmem:[%s12925_s10 + $0x570] ss:$12 sps:$4 sm:$0xff]   ;;  %v9937_v62 = vld [vmem:[%s12925_s10 + $0x58c] ss:$12 sps:$4 sm:$0xff]  }
 0xf31   :  { %7358 = vmatpush1.bf16.msra.mxu0 %v9880_v63  ;;  %8679 = vmatpush3.bf16.msra.mxu1 %v9900_v30  ;;  %v9935_v63 = vld [vmem:[%s12925_s10 + $0x588] ss:$12 sps:$4 sm:$0xff]   ;;  %v9940_v30 = vld [vmem:[%s12925_s10 + $0x5a4] ss:$12 sps:$4 sm:$0xff]  }
 0xf32   :  { %7359 = vmatprep.subr.bf16.mxu0 %v9885_v0  ;;  %8680 = vmatprep.subr.bf16.mxu1 %v9904_v2  ;;  %v9938_v0 = vld [vmem:[%s12925_s10 + $0x5a0] ss:$12 sps:$4 sm:$0xff]   ;;  %v9943_v2 = vld [vmem:[%s12925_s10 + $0x5bc] ss:$12 sps:$4 sm:$0xff]  }
 0xf35   :  { %7360 = vmatpush1.bf16.msra.mxu0 %v9883_v3  ;;  %8681 = vmatpush3.bf16.msra.mxu1 %v9905_v4  ;;  %v9941_v3 = vld [vmem:[%s12925_s10 + $0x5b8] ss:$12 sps:$4 sm:$0xff]   ;;  %v9946_v4 = vld [vmem:[%s12925_s10 + $0x5d4] ss:$12 sps:$4 sm:$0xff]  }
 0xf36   :  { %7372 = vmatprep.subr.bf16.mxu0 %v9888_v56  ;;  %8682 = vmatprep.subr.bf16.mxu1 %v9909_v7  ;;  %v9944_v56 = vld [vmem:[%s12925_s10 + $0x5d0] ss:$12 sps:$4 sm:$0xff]   ;;  %v9949_v7 = vld [vmem:[%s12925_s10 + $0x5ec] ss:$12 sps:$4 sm:$0xff]  }
 0xf38   :  { %7362 = vmatmul.mubr.bf16.vlgmr.msra.gmra.mrb[52].mxu0 %v12514_v8  ;;  %v9919_v8 = vld [vmem:[%s12925_s10 + $0x758] ss:$12 sps:$4 sm:$0xff]  }
 0xf39   :  { %7373 = vmatpush1.bf16.msra.mxu0 %v9886_v55  ;;  %7404 = vmatprep.mubr.bf16.mxu0 %v12524_v5  ;;  %v9896_v5 = vld [vmem:[%s12925_s10 + $0x4b0] ss:$12 sps:$4 sm:$0xff]   ;;  %v9947_v55 = vld [vmem:[%s12925_s10 + $0x5e8] ss:$12 sps:$4 sm:$0xff]  }
 0xf3a   :  { %7374 = vmatprep.subr.bf16.mxu0 %v9893_v36  ;;  %8683 = vmatpush3.bf16.msra.mxu1 %v9910_v38  ;;  %v9952_v36 = vld [vmem:[%s12925_s10 + $0x604] ss:$12 sps:$4 sm:$0xff]   ;;  %v9950_v38 = vld [vmem:[%s12925_s10 + $0x600] ss:$12 sps:$4 sm:$0xff]  }
 0xf3b   :  { %8684 = vmatprep.subr.bf16.mxu1 %v9914_v12  ;;  %v9955_v12 = vld [vmem:[%s12925_s10 + $0x61c] ss:$12 sps:$4 sm:$0xff]  }
 0xf3d   :  { %7375 = vmatpush1.bf16.msra.mxu0 %v9891_v13  ;;  %v9953_v13 = vld [vmem:[%s12925_s10 + $0x618] ss:$12 sps:$4 sm:$0xff]  }
 0xf3e   :  { %7376 = vmatprep.subr.bf16.mxu0 %v9898_v39  ;;  %8685 = vmatpush3.bf16.msra.mxu1 %v9915_v61  ;;  %v9958_v39 = vld [vmem:[%s12925_s10 + $0x634] ss:$12 sps:$4 sm:$0xff]   ;;  %v9956_v61 = vld [vmem:[%s12925_s10 + $0x630] ss:$12 sps:$4 sm:$0xff]  }
 0xf3f   :  { %8686 = vmatprep.subr.bf16.mxu1 %v9919_v8  ;;  %v9959_v8 = vld [vmem:[%s12925_s10 + $0x648] ss:$12 sps:$4 sm:$0xff]  }
 0xf41   :  { %7377 = vmatpush1.bf16.msra.mxu0 %v9896_v5  ;;  %v9964_v5 = vld [vmem:[%s12925_s10 + $0x664] ss:$12 sps:$4 sm:$0xff]  }
 0xf42   :  { %7378 = vmatprep.subr.bf16.mxu0 %v9903_v14  ;;  %8687 = vmatpush3.bf16.msra.mxu1 %v9920_v15  ;;  %v9962_v14 = vld [vmem:[%s12925_s10 + $0x660] ss:$12 sps:$4 sm:$0xff]   ;;  %v9967_v15 = vld [vmem:[%s12925_s10 + $0x67c] ss:$12 sps:$4 sm:$0xff]  }
 0xf43   :  { %8688 = vmatprep.subr.bf16.mxu1 %v9924_v16  ;;  %v9965_v16 = vld [vmem:[%s12925_s10 + $0x678] ss:$12 sps:$4 sm:$0xff]  }
 0xf45   :  { %7379 = vmatpush1.bf16.msra.mxu0 %v9901_v19  ;;  %v9970_v19 = vld [vmem:[%s12925_s10 + $0x694] ss:$12 sps:$4 sm:$0xff]  }
 0xf46   :  { %7380 = vmatprep.subr.bf16.mxu0 %v9908_v21  ;;  %8689 = vmatpush3.bf16.msra.mxu1 %v9925_v18 }
 0xf49   :  { %7381 = vmatpush1.bf16.msra.mxu0 %v9906_v25 }
 0xf4a   :  { %7382 = vmatprep.subr.bf16.mxu0 %v9913_v26 }
 0xf4d   :  { %7383 = vmatpush1.bf16.msra.mxu0 %v9911_v48  ;;  %v5587_v34 = vpop.f32.mrb[68].mxu1 }
 0xf4e   :  { %v8816_v45 = vadd.f32 %v5587_v34, %v4148_v6  ;;  %v5589_v43 = vpop.f32.mrb[69].mxu1  ;;  %7384 = vmatprep.subr.bf16.mxu0 %v9918_v37  ;;  %v9976_v34 = vld [vmem:[%s12925_s10 + $0x6c4] ss:$12 sps:$4 sm:$0xff]  }
 0xf4f   :  { %v8817_v33 = vadd.f32 %v5589_v43, %v4152_v57  ;;  %v5591_v10 = vpop.f32.mrb[70].mxu1  ;;  %v9977_v43 = vld [vmem:[%s12925_s10 + $0x6d8] ss:$12 sps:$4 sm:$0xff]  }
 0xf50   :  { %v8818_v20 = vadd.f32 %v5591_v10, %v4148_v6  ;;  %v5593_v50 = vpop.f32.mrb[71].mxu1  ;;  %v5604_v28 = vmax.f32 %v8816_v45, 0.0  ;;  %v9973_v6 = vld [vmem:[%s12925_s10 + $0x6ac] ss:$12 sps:$4 sm:$0xff]   ;;  %v9979_v45 = vld [vmem:[%s12925_s10 + $0x6dc] ss:$12 sps:$4 sm:$0xff]  }
 0xf51   :  { %v8819_v52 = vadd.f32 %v5593_v50, %v4152_v57  ;;  %7385 = vmatpush1.bf16.msra.mxu0 %v9916_v44  ;;  %v5605_v53 = vmax.f32 %v8817_v33, 0.0  ;;  %v9971_v57 = vld [vmem:[%s12925_s10 + $0x6a8] ss:$12 sps:$4 sm:$0xff]   ;;  %v9974_v44 = vld [vmem:[%s12925_s10 + $0x6c0] ss:$12 sps:$4 sm:$0xff]  }
 0xf52   :  { %v5614_v51 = vmax.f32 %v8818_v20, 0.0  ;;  %7386 = vmatprep.subr.bf16.mxu0 %v9923_v47  ;;  %v9982_v47 = vld [vmem:[%s12925_s10 + $0x6f4] ss:$12 sps:$4 sm:$0xff]   ;;  %v9980_v33 = vld [vmem:[%s12925_s10 + $0x6f0] ss:$12 sps:$4 sm:$0xff]  }
 0xf53   :  { %v5615_v54 = vmax.f32 %v8819_v52, 0.0  ;;  %v9985_v10 = vld [vmem:[%s12925_s10 + $0x70c] ss:$12 sps:$4 sm:$0xff]   ;;  %v9983_v20 = vld [vmem:[%s12925_s10 + $0x708] ss:$12 sps:$4 sm:$0xff]  }
 0xf54   :  { %v12743_v41 = vpack.c.bf16 %v5614_v51, %v5604_v28  ;;  %v9988_v50 = vld [vmem:[%s12925_s10 + $0x724] ss:$12 sps:$4 sm:$0xff]   ;;  %v9986_v52 = vld [vmem:[%s12925_s10 + $0x720] ss:$12 sps:$4 sm:$0xff]   ;;  %v9991_v28 = vld [vmem:[%s12925_s10 + $0x73c] ss:$12 sps:$4 sm:$0xff]  }
 0xf55   :  { %v5625_v27 = vpack.c.bf16 %v5615_v54, %v5605_v53  ;;  %7387 = vmatpush1.bf16.msra.mxu0 %v9921_v46  ;;  %v5946_v46 = vld [vmem:[%s12926_s11] sm:$0x7] }
 0xf56   :  { %7388 = vmatprep.subr.bf16.mxu0 %v9928_v42  ;;  %v5959_v51 = vrot.slane %v5946_v46, %v10321_v23  ;;  %v9989_v42 = vld [vmem:[%s12925_s10 + $0x738] ss:$12 sps:$4 sm:$0xff]   ;;  %v9994_v53 = vld [vmem:[%s12925_s10 + $0x754] ss:$12 sps:$4 sm:$0xff]   ;;  %v9992_v23 = vld [vmem:[%s12925_s10 + $0x750] ss:$12 sps:$4 sm:$0xff]  }
 0xf57   :  { %7654 = vmatprep.mubr.bf16.mxu1 %v5625_v27 }
 0xf58   :  { %7655 = vmatmul.mubr.bf16.vlgmr.msra.gmra.mrb[88].mxu1 %v12743_v41 }
 0xf59   :  { %7389 = vmatpush1.bf16.msra.mxu0 %v9926_v35 }
 0xf5a   :  { %7390 = vmatprep.subr.bf16.mxu0 %v9931_v31 }
 0xf5d   :  { %7391 = vmatpush1.bf16.msra.mxu0 %v9929_v9 }
 0xf5e   :  { %7392 = vmatprep.subr.bf16.mxu0 %v9934_v58 }
 0xf61   :  { %7393 = vmatpush1.bf16.msra.mxu0 %v9932_v60  ;;  %v9997_v60 = vld [vmem:[%s12925_s10 + $0x76c] ss:$12 sps:$4 sm:$0xff]  }
 0xf62   :  { %7394 = vmatprep.subr.bf16.mxu0 %v9937_v62 }
 0xf65   :  { %7395 = vmatpush1.bf16.msra.mxu0 %v9935_v63 }
 0xf66   :  { %7396 = vmatprep.subr.bf16.mxu0 %v9940_v30 }
 0xf69   :  { %7397 = vmatpush1.bf16.msra.mxu0 %v9938_v0 }
 0xf6a   :  { %7398 = vmatprep.subr.bf16.mxu0 %v9943_v2  ;;  %v9995_v2 = vld [vmem:[%s12925_s10 + $0x768] ss:$12 sps:$4 sm:$0xff]  }
 0xf6d   :  { %7399 = vmatpush1.bf16.msra.mxu0 %v9941_v3 }
 0xf6e   :  { %7400 = vmatprep.subr.bf16.mxu0 %v9946_v4 }
 0xf71   :  { %7401 = vmatpush1.bf16.msra.mxu0 %v9944_v56 }
 0xf72   :  { %7402 = vmatprep.subr.bf16.mxu0 %v9949_v7 }
 0xf75   :  { %7403 = vmatpush1.bf16.msra.mxu0 %v9947_v55 }
 0xf76   :  { %7415 = vmatprep.subr.bf16.mxu0 %v9952_v36 }
 0xf78   :  { %7405 = vmatmul.mubr.bf16.vlgmr.msra.gmra.mrb[52].mxu0 %v12516_v11  ;;  %v9961_v11 = vld [vmem:[%s12925_s10 + $0x64c] ss:$12 sps:$4 sm:$0xff]   ;;  %s10071_s10 = smov [#allocation2]  }
 0xf79   :  { %7416 = vmatpush1.bf16.msra.mxu0 %v9950_v38  ;;  %7447 = vmatprep.mubr.bf16.mxu0 %v5625_v27  ;;  %s7680_s16 = sshll.u32 %s10071_s10, 4  ;;  %s7681_s16 = int_to_ptr.vmem [resolvable:$true] %s7680_s16 }
 0xf7a   :  { %7417 = vmatprep.subr.bf16.mxu0 %v9955_v12  ;;  %s10044_s17 = scalar_lea.vmem %s7681_s16, 768  ;;  %p10049_p1 = scmp.lt.s32.totalorder %s7681_s16, %s7681_s16 }
 0xf7b   :  { %p10045_p0 = scmp.ne.s32.totalorder %s7681_s16, %s10044_s17  ;;  %p10050_p2 = scmp.lt.s32.totalorder %s10044_s17, %s10044_s17 }
 0xf7d   :  { %7418 = vmatpush1.bf16.msra.mxu0 %v9953_v13  ;;  %p10051_p3 = por %p10050_p2, %p10049_p1 }
 0xf7e   :  { %7419 = vmatprep.subr.bf16.mxu0 %v9958_v39 }
 0xf7f   :  { %p10052_p4 = pnand %p10051_p3, %p10045_p0 }
 0xf81   :  { %7420 = vmatpush1.bf16.msra.mxu0 %v9956_v61 }
 0xf82   :  { %7421 = vmatprep.subr.bf16.mxu0 %v9961_v11 }
 0xf85   :  { %7422 = vmatpush1.bf16.msra.mxu0 %v9959_v8 }
 0xf86   :  { %7423 = vmatprep.subr.bf16.mxu0 %v9964_v5 }
 0xf89   :  { %7424 = vmatpush1.bf16.msra.mxu0 %v9962_v14 }
 0xf8a   :  { %7425 = vmatprep.subr.bf16.mxu0 %v9967_v15 }
 0xf8b   :  { %v8602_v21 = vpop.f32.mrb[72].mxu1 }
 0xf8c   :  { %v8603_v18 = vpop.f32.mrb[73].mxu1 }
 0xf8d   :  { %7426 = vmatpush1.bf16.msra.mxu0 %v9965_v16  ;;  %v8604_v25 = vadd.f32 %v8603_v18, %v8602_v21  ;;  %v8605_v26 = vpop.f32.mrb[74].mxu1 }
 0xf8e   :  { %v8606_v48 = vpop.f32.mrb[75].mxu1  ;;  %7427 = vmatprep.subr.bf16.mxu0 %v9970_v19 }
 0xf8f   :  { %v8607_v37 = vadd.f32 %v8606_v48, %v8605_v26  ;;  %v7493_v35 = vadd.f32 %v8604_v25, %v5959_v51 }
 0xf91   :  { %7428 = vmatpush1.bf16.msra.mxu0 %v9968_v59  ;;  %v7496_v62 = vadd.f32 %v8607_v37, %v5959_v51  ;;  %v5951_v37 = vrot.slane %v5946_v46, %v10324_v24 }
 0xf92   :  { %7429 = vmatprep.subr.bf16.mxu0 %v9973_v6 }
 0xf95   :  { %7430 = vmatpush1.bf16.msra.mxu0 %v9971_v57  ;;  %v5955_v57 = vrot.slane %v5946_v46, %v10318_v22 }
 0xf96   :  { %7431 = vmatprep.subr.bf16.mxu0 %v9976_v34 }
 0xf99   :  { %7432 = vmatpush1.bf16.msra.mxu0 %v9974_v44 }
 0xf9a   :  { %7433 = vmatprep.subr.bf16.mxu0 %v9979_v45 }
 0xf9d   :  { %7434 = vmatpush1.bf16.msra.mxu0 %v9977_v43 }
 0xf9e   :  { %7435 = vmatprep.subr.bf16.mxu0 %v9982_v47 }
 0xfa1   :  { %7436 = vmatpush1.bf16.msra.mxu0 %v9980_v33 }
 0xfa2   :  { %7437 = vmatprep.subr.bf16.mxu0 %v9985_v10 }
 0xfa5   :  { %7438 = vmatpush1.bf16.msra.mxu0 %v9983_v20 }
 0xfa6   :  { %7439 = vmatprep.subr.bf16.mxu0 %v9988_v50 }
 0xfa9   :  { %7440 = vmatpush1.bf16.msra.mxu0 %v9986_v52 }
 0xfaa   :  { %7441 = vmatprep.subr.bf16.mxu0 %v9991_v28 }
 0xfab   :  { %v8624_v54 = vpop.f32.mrb[76].mxu1 }
 0xfac   :  { %v8625_v27 = vpop.f32.mrb[77].mxu1 }
 0xfad   :  { %v8626_v31 = vadd.f32 %v8625_v27, %v8624_v54  ;;  %7442 = vmatpush1.bf16.msra.mxu0 %v9989_v42  ;;  %v8627_v9 = vpop.f32.mrb[78].mxu1 }
 0xfae   :  { %v8628_v58 = vpop.f32.mrb[79].mxu1  ;;  %7443 = vmatprep.subr.bf16.mxu0 %v9994_v53 }
 0xfaf   :  { %v7534_v63 = vadd.f32 %v8626_v31, %v7493_v35  ;;  %v8629_v30 = vadd.f32 %v8628_v58, %v8627_v9 }
 0xfb1   :  { %v7537_v0 = vadd.f32 %v8629_v30, %v7496_v62  ;;  %7444 = vmatpush1.bf16.msra.mxu0 %v9992_v23 }
 0xfb2   :  { %7445 = vmatprep.subr.bf16.mxu0 %v9997_v60 }
 0xfb5   :  { %7446 = vmatpush1.bf16.msra.mxu0 %v9995_v2 }
 0xfb8   :  { %7448 = vmatmul.mubr.bf16.vlgmr.msra.gmra.mrb[52].mxu0 %v12743_v41 }
 0xfdb   :  { %v8646_v3 = vpop.f32.mrb[80].mxu1 }
 0xfdc   :  { %v8647_v4 = vpop.f32.mrb[81].mxu1 }
 0xfdd   :  { %v8648_v56 = vadd.f32 %v8647_v4, %v8646_v3  ;;  %v8649_v7 = vpop.f32.mrb[82].mxu1 }
 0xfde   :  { %v8650_v55 = vpop.f32.mrb[83].mxu1 }
 0xfdf   :  { %v7575_v36 = vadd.f32 %v8648_v56, %v7534_v63  ;;  %v8651_v38 = vadd.f32 %v8650_v55, %v8649_v7 }
 0xfe1   :  { %v7578_v12 = vadd.f32 %v8651_v38, %v7537_v0 }
 0xffb   :  { %v8668_v13 = vpop.f32.mrb[84].mxu1 }
 0xffc   :  { %v8669_v39 = vpop.f32.mrb[85].mxu1 }
 0xffd   :  { %v8670_v61 = vadd.f32 %v8669_v39, %v8668_v13  ;;  %v8671_v11 = vpop.f32.mrb[86].mxu1 }
 0xffe   :  { %v8672_v8 = vpop.f32.mrb[87].mxu1 }
 0xfff   :  { %v7616_v5 = vadd.f32 %v8670_v61, %v7575_v36  ;;  %v8673_v14 = vadd.f32 %v8672_v8, %v8671_v11 }
0x1001   :  { %v7619_v15 = vadd.f32 %v8673_v14, %v7578_v12 }
0x102b   :  { %v8690_v16 = vpop.f32.mrb[88].mxu1 }
0x102c   :  { %v8691_v19 = vpop.f32.mrb[89].mxu1 }
0x102d   :  { %v8692_v21 = vadd.f32 %v8691_v19, %v8690_v16  ;;  %v8693_v41 = vpop.f32.mrb[90].mxu1 }
0x102e   :  { %v8694_v18 = vpop.f32.mrb[91].mxu1 }
0x102f   :  { %v7657_v25 = vadd.f32 %v8692_v21, %v7616_v5  ;;  %v8695_v26 = vadd.f32 %v8694_v18, %v8693_v41 }
0x1031   :  { %v7665_v59 = vadd.f32 %v7657_v25, %v11422_v29  ;;  %v7660_v48 = vadd.f32 %v8695_v26, %v7619_v15 }
0x1033   :  { %7671 = vst.msk [vmem:[#allocation2 + $0x10] sm:$0xff] %vm50_vm0, %v7665_v59  ;;  %v7668_v6 = vadd.f32 %v7660_v48, %v11434_v40 }
0x1035   :  { %7674 = vst.msk [vmem:[#allocation2 + $0x28] sm:$0xff] %vm50_vm0, %v7668_v6 }
0x108b   :  { %v7449_v34 = vpop.f32.mrb[52].mxu0 }
0x108c   :  { %v8820_v44 = vadd.f32 %v7449_v34, %v5951_v37  ;;  %v7451_v45 = vpop.f32.mrb[53].mxu0 }
0x108d   :  { %v8821_v43 = vadd.f32 %v7451_v45, %v5955_v57  ;;  %v7453_v47 = vpop.f32.mrb[54].mxu0 }
0x108e   :  { %v7663_v29 = vadd.f32 %v8820_v44, %v11407_v17  ;;  %v8822_v33 = vadd.f32 %v7453_v47, %v5951_v37  ;;  %v7455_v10 = vpop.f32.mrb[55].mxu0 }
0x108f   :  { %v7664_v20 = vadd.f32 %v8821_v43, %v11412_v49  ;;  %v8823_v40 = vadd.f32 %v7455_v10, %v5955_v57 }
0x1090   :  { %7669 = vst [vmem:[#allocation2] sm:$0xff] %v7663_v29  ;;  %v7666_v50 = vadd.f32 %v8822_v33, %v11417_v1 }
0x1091   :  { %7670 = vst [vmem:[#allocation2 + $0x8] sm:$0xff] %v7664_v20  ;;  %v7667_v22 = vadd.f32 %v8823_v40, %v11427_v32 }
0x1092   :  { %7672 = vst [vmem:[#allocation2 + $0x18] sm:$0xff] %v7666_v50 }
0x1093   :  { %7673 = vst [vmem:[#allocation2 + $0x20] sm:$0xff] %v7667_v22 }
0x1094   :  { %10055 = shalt.err (!%p10052_p4)
}
0x1095   :  { %s10056_s20 = scalar_lea.hbm %s12927_s12, 768 }
0x1096   :  { %p10057_p5 = scmp.ne.s32.totalorder %s12927_s12, %s10056_s20  ;;  %p10060_p6 = scmp.lt.u32.totalorder %s10056_s20, %s12927_s12 }
0x1098   :  { %p10062_p7 = pnand %p10060_p6, %p10057_p5 }
0x109a   :  { %10065 = shalt.err (!%p10062_p7)
}
0x109b   :  { %s10072_s24 = smov 384   ;;  %s10073_s25 = smov 24  }
0x109c   :  { %7686 = dma.vmem_to_hbm [thread:$0]  %s7681_s16, 768, %s12927_s12, [#allocation3], %s10072_s24, %s10072_s24, %s10073_s25  }
0x109d   :  { %10066 = dma.done.wait [#allocation3], 768  }
0x109e   :  { %10067 = vsyncadd [#allocation3], 4294966528 }
0x109f   :  { %7690 = vsyncpa [#allocation3], 1 }

</bundles_post_ra>
